<compile_context>
chip_gen: v5e
topology: v5e:2x2
jax: 0.10.0
libtpu: 0.0.40
codegen_flags: <defaults>
</compile_context>

<pallas_src>
import functools

import jax
import jax.numpy as jnp
from jax.experimental import pallas as pl
from jax.experimental.pallas import tpu as pltpu


_VMEM_SPEC = pl.BlockSpec(memory_space=pltpu.MemorySpace.VMEM)


# --------------------------------------------------------------------------
# Fused Pallas kernel: the entire SeqEncoder forward
# --------------------------------------------------------------------------
def _seq_encoder_kernel(tok_ref, len_ref, emb_ref, l1w_ref, l1b_ref,
                        wih_ref, whh_ref, bih_ref, bhh_ref,
                        w1_ref, b1_ref, w2_ref, b2_ref, o_ref,
                        *, T, B, num_layer):
    f32 = jnp.float32
    H = l1w_ref.shape[1]
    vocab = emb_ref.shape[0]
    TB = T * B

    # ---- embedding lookup as a one-hot matmul on the MXU ----
    tok = tok_ref[...]                                           # (T*B, 1) int32, time-major
    iota_v = jax.lax.broadcasted_iota(jnp.int32, (TB, vocab), 1)
    onehot = (iota_v == tok).astype(f32)                         # (T*B, vocab)
    emb_x = jnp.dot(onehot, emb_ref[...], preferred_element_type=f32)

    # ---- lin1 ----
    x_all = jnp.dot(emb_x, l1w_ref[...], preferred_element_type=f32) + l1b_ref[...]
    # x_all: (T*B, H), time-major rows (row = t*B + b)

    # ---- GRU stack: fully unrolled over time (static T / num_layer) ----
    cur_len = jnp.minimum(len_ref[...], T)                       # (B, 1) int32, clamp like PyTorch
    outs = []                                                    # per-step outputs of current layer
    for l in range(num_layer):
        wih_r = wih_ref[3 * l + 0]
        wih_z = wih_ref[3 * l + 1]
        wih_n = wih_ref[3 * l + 2]
        whh_r = whh_ref[3 * l + 0]
        whh_z = whh_ref[3 * l + 1]
        whh_n = whh_ref[3 * l + 2]
        b_r = bih_ref[3 * l + 0] + bhh_ref[3 * l + 0]            # bias combine hoisted out of loop
        b_z = bih_ref[3 * l + 1] + bhh_ref[3 * l + 1]
        bi_n = bih_ref[3 * l + 2]
        bh_n = bhh_ref[3 * l + 2]                                # stays inside r * (.) term

        if l == 0:
            # Hoisted input projections: one (T*B, H) matmul per gate, off the
            # serial recurrence chain.
            gx_r = jnp.dot(x_all, wih_r, preferred_element_type=f32) + b_r
            gx_z = jnp.dot(x_all, wih_z, preferred_element_type=f32) + b_z
            gx_n = jnp.dot(x_all, wih_n, preferred_element_type=f32) + bi_n

        prev = outs
        h = jnp.zeros((B, H), f32)
        outs = []
        for t in range(T):                                       # static -> fully unrolled
            if l == 0:
                sl = slice(t * B, (t + 1) * B)
                xr, xz, xn = gx_r[sl], gx_z[sl], gx_n[sl]
            else:
                # Depends only on the previous layer's step-t output, not on this
                # layer's recurrent h -> scheduler keeps it off the critical path.
                x_t = prev[t]
                xr = jnp.dot(x_t, wih_r, preferred_element_type=f32) + b_r
                xz = jnp.dot(x_t, wih_z, preferred_element_type=f32) + b_z
                xn = jnp.dot(x_t, wih_n, preferred_element_type=f32) + bi_n

            gh_r = jnp.dot(h, whh_r, preferred_element_type=f32)
            gh_z = jnp.dot(h, whh_z, preferred_element_type=f32)
            gh_n = jnp.dot(h, whh_n, preferred_element_type=f32) + bh_n
            r = jax.nn.sigmoid(xr + gh_r)
            z = jax.nn.sigmoid(xz + gh_z)
            n = jnp.tanh(xn + r * gh_n)
            h = (1.0 - z) * n + z * h
            outs.append(h)

    # ---- pack/pad zero-mask + flatten + first MLP layer fused ----
    # flat(B, T*H) @ W1(T*H, H)  ==  sum_t  h_t(B, H) @ W1[t*H:(t+1)*H, :]
    w1 = w1_ref[...]                                             # (T*H, H); 32-row blocks are sublane-aligned
    acc = jnp.zeros((B, H), f32)
    for t in range(T):
        keep = (cur_len > t).astype(f32)                         # (B, 1): zero outputs at t >= len
        acc = acc + jnp.dot(outs[t] * keep, w1[t * H:(t + 1) * H, :],
                            preferred_element_type=f32)
    hmid = jnp.maximum(acc + b1_ref[...], 0.0)                   # ReLU
    # Dropout(p=0.5): identity in eval/inference mode.
    o_ref[...] = jnp.dot(hmid, w2_ref[...], preferred_element_type=f32) + b2_ref[...]


# --------------------------------------------------------------------------
# Parameters (kernel-ready layout; GRU gate order [r, z, n], weights stored
# transposed to (in, out) like W.T relative to PyTorch)
# --------------------------------------------------------------------------
def init_params(key, *, vocab=250, emb_dim=16, hid_dim=32, out_dim=8,
                num_layer=2, max_len=8):
    ks = jax.random.split(key, 12)
    ki = iter(ks)

    def uni(k, shape, fan_in):
        bound = 1.0 / (fan_in ** 0.5)
        return jax.random.uniform(k, shape, jnp.float32, -bound, bound)

    p = {}
    p["emb"] = jax.random.normal(next(ki), (vocab, emb_dim), jnp.float32)

    # lin1: emb_dim -> hid_dim
    p["lin1_w"] = uni(next(ki), (emb_dim, hid_dim), emb_dim)
    p["lin1_b"] = uni(next(ki), (1, hid_dim), emb_dim)

    # GRU layers, per-gate split; index = 3*layer + gate, gate in {0:r, 1:z, 2:n}
    p["wih"] = uni(next(ki), (num_layer * 3, hid_dim, hid_dim), hid_dim)
    p["whh"] = uni(next(ki), (num_layer * 3, hid_dim, hid_dim), hid_dim)
    p["bih"] = uni(next(ki), (num_layer * 3, 1, hid_dim), hid_dim)
    p["bhh"] = uni(next(ki), (num_layer * 3, 1, hid_dim), hid_dim)

    # MLP head: (hid*max_len -> hid), ReLU, Dropout(eval), (hid -> out)
    p["mlp_w1"] = uni(next(ki), (hid_dim * max_len, hid_dim), hid_dim * max_len)
    p["mlp_b1"] = uni(next(ki), (1, hid_dim), hid_dim * max_len)
    p["mlp_w2"] = uni(next(ki), (hid_dim, out_dim), hid_dim)
    p["mlp_b2"] = uni(next(ki), (1, out_dim), hid_dim)
    return p


# --------------------------------------------------------------------------
# Forward: one pallas_call; only glue left outside is a tiny int re-layout
# --------------------------------------------------------------------------
@functools.partial(jax.jit, static_argnames=("max_len",))
def seq_encoder_forward(params, x_tokens, length, *, max_len):
    B, T = x_tokens.shape
    assert T == max_len, "sequence dim must equal max_len (as in the PyTorch module)"
    out_dim = params["mlp_w2"].shape[1]
    num_layer = params["wih"].shape[0] // 3

    tok_tm = x_tokens.astype(jnp.int32).T.reshape(T * B, 1)      # time-major (row = t*B + b)
    len_col = length.astype(jnp.int32).reshape(B, 1)

    kernel = functools.partial(_seq_encoder_kernel, T=T, B=B, num_layer=num_layer)
    return pl.pallas_call(
        kernel,
        out_shape=jax.ShapeDtypeStruct((B, out_dim), jnp.float32),
        in_specs=[_VMEM_SPEC] * 13,
        out_specs=_VMEM_SPEC,
    )(tok_tm, len_col,
      params["emb"], params["lin1_w"], params["lin1_b"],
      params["wih"], params["whh"], params["bih"], params["bhh"],
      params["mlp_w1"], params["mlp_b1"], params["mlp_w2"], params["mlp_b2"])


# --------------------------------------------------------------------------
# Pure-JAX reference (mirrors PyTorch semantics) for a correctness check
# --------------------------------------------------------------------------
def reference_forward(params, x_tokens, length, max_len):
    B, T = x_tokens.shape
    H = params["lin1_w"].shape[1]
    num_layer = params["wih"].shape[0] // 3

    seq = params["emb"][x_tokens] @ params["lin1_w"] + params["lin1_b"]   # (B, T, H)
    for l in range(num_layer):
        h = jnp.zeros((B, H), jnp.float32)
        outs = []
        for t in range(T):
            xt = seq[:, t, :]
            r = jax.nn.sigmoid(xt @ params["wih"][3 * l + 0] + params["bih"][3 * l + 0]
                               + h @ params["whh"][3 * l + 0] + params["bhh"][3 * l + 0])
            z = jax.nn.sigmoid(xt @ params["wih"][3 * l + 1] + params["bih"][3 * l + 1]
                               + h @ params["whh"][3 * l + 1] + params["bhh"][3 * l + 1])
            n = jnp.tanh(xt @ params["wih"][3 * l + 2] + params["bih"][3 * l + 2]
                         + r * (h @ params["whh"][3 * l + 2] + params["bhh"][3 * l + 2]))
            h = (1.0 - z) * n + z * h
            outs.append(h)
        seq = jnp.stack(outs, axis=1)                                      # (B, T, H)

    cur = jnp.minimum(length, max_len)
    mask = (jnp.arange(T)[None, :] < cur[:, None]).astype(seq.dtype)
    seq = seq * mask[:, :, None]
    flat = seq.reshape(B, T * H)
    h1 = jnp.maximum(flat @ params["mlp_w1"] + params["mlp_b1"], 0.0)
    return h1 @ params["mlp_w2"] + params["mlp_b2"]


# --------------------------------------------------------------------------
if __name__ == "__main__":
    config = dict(embed_dim=16, hid_dim=32, out_dim=8, num_layer=2)
    max_len = 8
    B = 2

    key = jax.random.PRNGKey(0)
    k_param, k_tok = jax.random.split(key)

    params = init_params(
        k_param,
        vocab=250,
        emb_dim=config["embed_dim"],
        hid_dim=config["hid_dim"],
        out_dim=config["out_dim"],
        num_layer=config["num_layer"],
        max_len=max_len,
    )

    x_tokens = jax.random.randint(k_tok, (B, max_len), 0, 250, dtype=jnp.int32)
    length = jnp.array([10, 5], dtype=jnp.int32)   # first exceeds max_len -> clamped

    out = seq_encoder_forward(params, x_tokens, length, max_len=max_len)
    jax.block_until_ready(out)

    ref = reference_forward(params, x_tokens, length, max_len)
    assert out.shape == (B, config["out_dim"])
    assert jnp.all(jnp.isfinite(out))
    assert jnp.allclose(out, ref, atol=1e-3, rtol=1e-3), (out, ref)
    print("KERNEL_OK")
</pallas_src>

<mosaic_0001>
module attributes {stable_mosaic.version = 11 : i64} {
  func.func @_seq_encoder_kernel(%arg0: memref<16x1xi32, #tpu.memory_space<vmem>>, %arg1: memref<2x1xi32, #tpu.memory_space<vmem>>, %arg2: memref<250x16xf32, #tpu.memory_space<vmem>>, %arg3: memref<16x32xf32, #tpu.memory_space<vmem>>, %arg4: memref<1x32xf32, #tpu.memory_space<vmem>>, %arg5: memref<6x32x32xf32, #tpu.memory_space<vmem>>, %arg6: memref<6x32x32xf32, #tpu.memory_space<vmem>>, %arg7: memref<6x1x32xf32, #tpu.memory_space<vmem>>, %arg8: memref<6x1x32xf32, #tpu.memory_space<vmem>>, %arg9: memref<256x32xf32, #tpu.memory_space<vmem>>, %arg10: memref<1x32xf32, #tpu.memory_space<vmem>>, %arg11: memref<32x8xf32, #tpu.memory_space<vmem>>, %arg12: memref<1x8xf32, #tpu.memory_space<vmem>>, %arg13: memref<2x8xf32, #tpu.memory_space<vmem>>) attributes {dimension_semantics = [], scalar_prefetch = 0 : i64, scratch_operands = 0 : i64, tpu.core_type = #tpu.core_type<tc>} {
    %c0 = arith.constant 0 : index
    %c0_0 = arith.constant 0 : index
    %0 = vector.load %arg0[%c0, %c0_0] : memref<16x1xi32, #tpu.memory_space<vmem>>, vector<16x1xi32>
    %1 = tpu.iota {dimensions = array<i32: 1>} : vector<16x250xi32>
    %2 = vector.broadcast %0 : vector<16x1xi32> to vector<16x250xi32>
    %3 = arith.cmpi eq, %1, %2 : vector<16x250xi32>
    %4 = arith.extui %3 : vector<16x250xi1> to vector<16x250xi32>
    %5 = arith.sitofp %4 : vector<16x250xi32> to vector<16x250xf32>
    %c0_1 = arith.constant 0 : index
    %c0_2 = arith.constant 0 : index
    %6 = vector.load %arg2[%c0_1, %c0_2] : memref<250x16xf32, #tpu.memory_space<vmem>>, vector<250x16xf32>
    %cst = arith.constant dense<0.000000e+00> : vector<16x16xf32>
    %7 = tpu.matmul %5, %6, %cst {dimension_numbers = #tpu.dot_dimension_numbers<[1], [0], [0], [1], [0, 0, 1, 1], [], []>} : vector<16x250xf32>, vector<250x16xf32>, vector<16x16xf32> -> vector<16x16xf32>
    %c0_3 = arith.constant 0 : index
    %c0_4 = arith.constant 0 : index
    %8 = vector.load %arg3[%c0_3, %c0_4] : memref<16x32xf32, #tpu.memory_space<vmem>>, vector<16x32xf32>
    %cst_5 = arith.constant dense<0.000000e+00> : vector<16x32xf32>
    %9 = tpu.matmul %7, %8, %cst_5 {dimension_numbers = #tpu.dot_dimension_numbers<[1], [0], [0], [1], [0, 0, 1, 1], [], []>} : vector<16x16xf32>, vector<16x32xf32>, vector<16x32xf32> -> vector<16x32xf32>
    %c0_6 = arith.constant 0 : index
    %c0_7 = arith.constant 0 : index
    %10 = vector.load %arg4[%c0_6, %c0_7] : memref<1x32xf32, #tpu.memory_space<vmem>>, vector<1x32xf32>
    %11 = vector.broadcast %10 : vector<1x32xf32> to vector<16x32xf32>
    %12 = arith.addf %9, %11 : vector<16x32xf32>
    %c0_8 = arith.constant 0 : index
    %c0_9 = arith.constant 0 : index
    %13 = vector.load %arg1[%c0_8, %c0_9] : memref<2x1xi32, #tpu.memory_space<vmem>>, vector<2x1xi32>
    %c8_i32 = arith.constant 8 : i32
    %14 = vector.broadcast %c8_i32 : i32 to vector<2x1xi32>
    %15 = arith.minsi %13, %14 : vector<2x1xi32>
    %c0_10 = arith.constant 0 : index
    %c0_11 = arith.constant 0 : index
    %c0_12 = arith.constant 0 : index
    %16 = vector.load %arg5[%c0_10, %c0_11, %c0_12] : memref<6x32x32xf32, #tpu.memory_space<vmem>>, vector<1x32x32xf32>
    %17 = vector.shape_cast %16 : vector<1x32x32xf32> to vector<32x32xf32>
    %c1 = arith.constant 1 : index
    %c0_13 = arith.constant 0 : index
    %c0_14 = arith.constant 0 : index
    %18 = vector.load %arg5[%c1, %c0_13, %c0_14] : memref<6x32x32xf32, #tpu.memory_space<vmem>>, vector<1x32x32xf32>
    %19 = vector.shape_cast %18 : vector<1x32x32xf32> to vector<32x32xf32>
    %c2 = arith.constant 2 : index
    %c0_15 = arith.constant 0 : index
    %c0_16 = arith.constant 0 : index
    %20 = vector.load %arg5[%c2, %c0_15, %c0_16] : memref<6x32x32xf32, #tpu.memory_space<vmem>>, vector<1x32x32xf32>
    %21 = vector.shape_cast %20 : vector<1x32x32xf32> to vector<32x32xf32>
    %c0_17 = arith.constant 0 : index
    %c0_18 = arith.constant 0 : index
    %c0_19 = arith.constant 0 : index
    %22 = vector.load %arg6[%c0_17, %c0_18, %c0_19] : memref<6x32x32xf32, #tpu.memory_space<vmem>>, vector<1x32x32xf32>
    %23 = vector.shape_cast %22 : vector<1x32x32xf32> to vector<32x32xf32>
    %c1_20 = arith.constant 1 : index
    %c0_21 = arith.constant 0 : index
    %c0_22 = arith.constant 0 : index
    %24 = vector.load %arg6[%c1_20, %c0_21, %c0_22] : memref<6x32x32xf32, #tpu.memory_space<vmem>>, vector<1x32x32xf32>
    %25 = vector.shape_cast %24 : vector<1x32x32xf32> to vector<32x32xf32>
    %c2_23 = arith.constant 2 : index
    %c0_24 = arith.constant 0 : index
    %c0_25 = arith.constant 0 : index
    %26 = vector.load %arg6[%c2_23, %c0_24, %c0_25] : memref<6x32x32xf32, #tpu.memory_space<vmem>>, vector<1x32x32xf32>
    %27 = vector.shape_cast %26 : vector<1x32x32xf32> to vector<32x32xf32>
    %c0_26 = arith.constant 0 : index
    %c0_27 = arith.constant 0 : index
    %c0_28 = arith.constant 0 : index
    %28 = vector.load %arg7[%c0_26, %c0_27, %c0_28] : memref<6x1x32xf32, #tpu.memory_space<vmem>>, vector<1x1x32xf32>
    %29 = vector.shape_cast %28 : vector<1x1x32xf32> to vector<1x32xf32>
    %c0_29 = arith.constant 0 : index
    %c0_30 = arith.constant 0 : index
    %c0_31 = arith.constant 0 : index
    %30 = vector.load %arg8[%c0_29, %c0_30, %c0_31] : memref<6x1x32xf32, #tpu.memory_space<vmem>>, vector<1x1x32xf32>
    %31 = vector.shape_cast %30 : vector<1x1x32xf32> to vector<1x32xf32>
    %32 = arith.addf %29, %31 : vector<1x32xf32>
    %c1_32 = arith.constant 1 : index
    %c0_33 = arith.constant 0 : index
    %c0_34 = arith.constant 0 : index
    %33 = vector.load %arg7[%c1_32, %c0_33, %c0_34] : memref<6x1x32xf32, #tpu.memory_space<vmem>>, vector<1x1x32xf32>
    %34 = vector.shape_cast %33 : vector<1x1x32xf32> to vector<1x32xf32>
    %c1_35 = arith.constant 1 : index
    %c0_36 = arith.constant 0 : index
    %c0_37 = arith.constant 0 : index
    %35 = vector.load %arg8[%c1_35, %c0_36, %c0_37] : memref<6x1x32xf32, #tpu.memory_space<vmem>>, vector<1x1x32xf32>
    %36 = vector.shape_cast %35 : vector<1x1x32xf32> to vector<1x32xf32>
    %37 = arith.addf %34, %36 : vector<1x32xf32>
    %c2_38 = arith.constant 2 : index
    %c0_39 = arith.constant 0 : index
    %c0_40 = arith.constant 0 : index
    %38 = vector.load %arg7[%c2_38, %c0_39, %c0_40] : memref<6x1x32xf32, #tpu.memory_space<vmem>>, vector<1x1x32xf32>
    %39 = vector.shape_cast %38 : vector<1x1x32xf32> to vector<1x32xf32>
    %c2_41 = arith.constant 2 : index
    %c0_42 = arith.constant 0 : index
    %c0_43 = arith.constant 0 : index
    %40 = vector.load %arg8[%c2_41, %c0_42, %c0_43] : memref<6x1x32xf32, #tpu.memory_space<vmem>>, vector<1x1x32xf32>
    %41 = vector.shape_cast %40 : vector<1x1x32xf32> to vector<1x32xf32>
    %cst_44 = arith.constant dense<0.000000e+00> : vector<16x32xf32>
    %42 = tpu.matmul %12, %17, %cst_44 {dimension_numbers = #tpu.dot_dimension_numbers<[1], [0], [0], [1], [0, 0, 1, 1], [], []>} : vector<16x32xf32>, vector<32x32xf32>, vector<16x32xf32> -> vector<16x32xf32>
    %43 = vector.broadcast %32 : vector<1x32xf32> to vector<16x32xf32>
    %44 = arith.addf %42, %43 : vector<16x32xf32>
    %cst_45 = arith.constant dense<0.000000e+00> : vector<16x32xf32>
    %45 = tpu.matmul %12, %19, %cst_45 {dimension_numbers = #tpu.dot_dimension_numbers<[1], [0], [0], [1], [0, 0, 1, 1], [], []>} : vector<16x32xf32>, vector<32x32xf32>, vector<16x32xf32> -> vector<16x32xf32>
    %46 = vector.broadcast %37 : vector<1x32xf32> to vector<16x32xf32>
    %47 = arith.addf %45, %46 : vector<16x32xf32>
    %cst_46 = arith.constant dense<0.000000e+00> : vector<16x32xf32>
    %48 = tpu.matmul %12, %21, %cst_46 {dimension_numbers = #tpu.dot_dimension_numbers<[1], [0], [0], [1], [0, 0, 1, 1], [], []>} : vector<16x32xf32>, vector<32x32xf32>, vector<16x32xf32> -> vector<16x32xf32>
    %49 = vector.broadcast %39 : vector<1x32xf32> to vector<16x32xf32>
    %50 = arith.addf %48, %49 : vector<16x32xf32>
    %cst_47 = arith.constant 0.000000e+00 : f32
    %51 = vector.broadcast %cst_47 : f32 to vector<2x32xf32>
    %52 = vector.extract_strided_slice %44 {offsets = [0, 0], sizes = [2, 32], strides = [1, 1]} : vector<16x32xf32> to vector<2x32xf32>
    %53 = vector.extract_strided_slice %47 {offsets = [0, 0], sizes = [2, 32], strides = [1, 1]} : vector<16x32xf32> to vector<2x32xf32>
    %54 = vector.extract_strided_slice %50 {offsets = [0, 0], sizes = [2, 32], strides = [1, 1]} : vector<16x32xf32> to vector<2x32xf32>
    %cst_48 = arith.constant dense<0.000000e+00> : vector<2x32xf32>
    %55 = tpu.matmul %51, %23, %cst_48 {dimension_numbers = #tpu.dot_dimension_numbers<[1], [0], [0], [1], [0, 0, 1, 1], [], []>} : vector<2x32xf32>, vector<32x32xf32>, vector<2x32xf32> -> vector<2x32xf32>
    %cst_49 = arith.constant dense<0.000000e+00> : vector<2x32xf32>
    %56 = tpu.matmul %51, %25, %cst_49 {dimension_numbers = #tpu.dot_dimension_numbers<[1], [0], [0], [1], [0, 0, 1, 1], [], []>} : vector<2x32xf32>, vector<32x32xf32>, vector<2x32xf32> -> vector<2x32xf32>
    %cst_50 = arith.constant dense<0.000000e+00> : vector<2x32xf32>
    %57 = tpu.matmul %51, %27, %cst_50 {dimension_numbers = #tpu.dot_dimension_numbers<[1], [0], [0], [1], [0, 0, 1, 1], [], []>} : vector<2x32xf32>, vector<32x32xf32>, vector<2x32xf32> -> vector<2x32xf32>
    %58 = vector.broadcast %41 : vector<1x32xf32> to vector<2x32xf32>
    %59 = arith.addf %57, %58 : vector<2x32xf32>
    %60 = arith.addf %52, %55 : vector<2x32xf32>
    %61 = arith.negf %60 : vector<2x32xf32>
    %62 = math.exp %61 : vector<2x32xf32>
    %cst_51 = arith.constant 1.000000e+00 : f32
    %63 = vector.broadcast %cst_51 : f32 to vector<2x32xf32>
    %64 = arith.addf %63, %62 : vector<2x32xf32>
    %65 = arith.divf %63, %64 : vector<2x32xf32>
    %66 = arith.addf %53, %56 : vector<2x32xf32>
    %67 = arith.negf %66 : vector<2x32xf32>
    %68 = math.exp %67 : vector<2x32xf32>
    %cst_52 = arith.constant 1.000000e+00 : f32
    %69 = vector.broadcast %cst_52 : f32 to vector<2x32xf32>
    %70 = arith.addf %69, %68 : vector<2x32xf32>
    %71 = arith.divf %69, %70 : vector<2x32xf32>
    %72 = arith.mulf %65, %59 : vector<2x32xf32>
    %73 = arith.addf %54, %72 : vector<2x32xf32>
    %74 = math.tanh %73 : vector<2x32xf32>
    %cst_53 = arith.constant 1.000000e+00 : f32
    %75 = vector.broadcast %cst_53 : f32 to vector<2x32xf32>
    %76 = arith.subf %75, %71 : vector<2x32xf32>
    %77 = arith.mulf %76, %74 : vector<2x32xf32>
    %78 = arith.mulf %71, %51 : vector<2x32xf32>
    %79 = arith.addf %77, %78 : vector<2x32xf32>
    %80 = vector.extract_strided_slice %44 {offsets = [2, 0], sizes = [2, 32], strides = [1, 1]} : vector<16x32xf32> to vector<2x32xf32>
    %81 = vector.extract_strided_slice %47 {offsets = [2, 0], sizes = [2, 32], strides = [1, 1]} : vector<16x32xf32> to vector<2x32xf32>
    %82 = vector.extract_strided_slice %50 {offsets = [2, 0], sizes = [2, 32], strides = [1, 1]} : vector<16x32xf32> to vector<2x32xf32>
    %cst_54 = arith.constant dense<0.000000e+00> : vector<2x32xf32>
    %83 = tpu.matmul %79, %23, %cst_54 {dimension_numbers = #tpu.dot_dimension_numbers<[1], [0], [0], [1], [0, 0, 1, 1], [], []>} : vector<2x32xf32>, vector<32x32xf32>, vector<2x32xf32> -> vector<2x32xf32>
    %cst_55 = arith.constant dense<0.000000e+00> : vector<2x32xf32>
    %84 = tpu.matmul %79, %25, %cst_55 {dimension_numbers = #tpu.dot_dimension_numbers<[1], [0], [0], [1], [0, 0, 1, 1], [], []>} : vector<2x32xf32>, vector<32x32xf32>, vector<2x32xf32> -> vector<2x32xf32>
    %cst_56 = arith.constant dense<0.000000e+00> : vector<2x32xf32>
    %85 = tpu.matmul %79, %27, %cst_56 {dimension_numbers = #tpu.dot_dimension_numbers<[1], [0], [0], [1], [0, 0, 1, 1], [], []>} : vector<2x32xf32>, vector<32x32xf32>, vector<2x32xf32> -> vector<2x32xf32>
    %86 = vector.broadcast %41 : vector<1x32xf32> to vector<2x32xf32>
    %87 = arith.addf %85, %86 : vector<2x32xf32>
    %88 = arith.addf %80, %83 : vector<2x32xf32>
    %89 = arith.negf %88 : vector<2x32xf32>
    %90 = math.exp %89 : vector<2x32xf32>
    %cst_57 = arith.constant 1.000000e+00 : f32
    %91 = vector.broadcast %cst_57 : f32 to vector<2x32xf32>
    %92 = arith.addf %91, %90 : vector<2x32xf32>
    %93 = arith.divf %91, %92 : vector<2x32xf32>
    %94 = arith.addf %81, %84 : vector<2x32xf32>
    %95 = arith.negf %94 : vector<2x32xf32>
    %96 = math.exp %95 : vector<2x32xf32>
    %cst_58 = arith.constant 1.000000e+00 : f32
    %97 = vector.broadcast %cst_58 : f32 to vector<2x32xf32>
    %98 = arith.addf %97, %96 : vector<2x32xf32>
    %99 = arith.divf %97, %98 : vector<2x32xf32>
    %100 = arith.mulf %93, %87 : vector<2x32xf32>
    %101 = arith.addf %82, %100 : vector<2x32xf32>
    %102 = math.tanh %101 : vector<2x32xf32>
    %cst_59 = arith.constant 1.000000e+00 : f32
    %103 = vector.broadcast %cst_59 : f32 to vector<2x32xf32>
    %104 = arith.subf %103, %99 : vector<2x32xf32>
    %105 = arith.mulf %104, %102 : vector<2x32xf32>
    %106 = arith.mulf %99, %79 : vector<2x32xf32>
    %107 = arith.addf %105, %106 : vector<2x32xf32>
    %108 = vector.extract_strided_slice %44 {offsets = [4, 0], sizes = [2, 32], strides = [1, 1]} : vector<16x32xf32> to vector<2x32xf32>
    %109 = vector.extract_strided_slice %47 {offsets = [4, 0], sizes = [2, 32], strides = [1, 1]} : vector<16x32xf32> to vector<2x32xf32>
    %110 = vector.extract_strided_slice %50 {offsets = [4, 0], sizes = [2, 32], strides = [1, 1]} : vector<16x32xf32> to vector<2x32xf32>
    %cst_60 = arith.constant dense<0.000000e+00> : vector<2x32xf32>
    %111 = tpu.matmul %107, %23, %cst_60 {dimension_numbers = #tpu.dot_dimension_numbers<[1], [0], [0], [1], [0, 0, 1, 1], [], []>} : vector<2x32xf32>, vector<32x32xf32>, vector<2x32xf32> -> vector<2x32xf32>
    %cst_61 = arith.constant dense<0.000000e+00> : vector<2x32xf32>
    %112 = tpu.matmul %107, %25, %cst_61 {dimension_numbers = #tpu.dot_dimension_numbers<[1], [0], [0], [1], [0, 0, 1, 1], [], []>} : vector<2x32xf32>, vector<32x32xf32>, vector<2x32xf32> -> vector<2x32xf32>
    %cst_62 = arith.constant dense<0.000000e+00> : vector<2x32xf32>
    %113 = tpu.matmul %107, %27, %cst_62 {dimension_numbers = #tpu.dot_dimension_numbers<[1], [0], [0], [1], [0, 0, 1, 1], [], []>} : vector<2x32xf32>, vector<32x32xf32>, vector<2x32xf32> -> vector<2x32xf32>
    %114 = vector.broadcast %41 : vector<1x32xf32> to vector<2x32xf32>
    %115 = arith.addf %113, %114 : vector<2x32xf32>
    %116 = arith.addf %108, %111 : vector<2x32xf32>
    %117 = arith.negf %116 : vector<2x32xf32>
    %118 = math.exp %117 : vector<2x32xf32>
    %cst_63 = arith.constant 1.000000e+00 : f32
    %119 = vector.broadcast %cst_63 : f32 to vector<2x32xf32>
    %120 = arith.addf %119, %118 : vector<2x32xf32>
    %121 = arith.divf %119, %120 : vector<2x32xf32>
    %122 = arith.addf %109, %112 : vector<2x32xf32>
    %123 = arith.negf %122 : vector<2x32xf32>
    %124 = math.exp %123 : vector<2x32xf32>
    %cst_64 = arith.constant 1.000000e+00 : f32
    %125 = vector.broadcast %cst_64 : f32 to vector<2x32xf32>
    %126 = arith.addf %125, %124 : vector<2x32xf32>
    %127 = arith.divf %125, %126 : vector<2x32xf32>
    %128 = arith.mulf %121, %115 : vector<2x32xf32>
    %129 = arith.addf %110, %128 : vector<2x32xf32>
    %130 = math.tanh %129 : vector<2x32xf32>
    %cst_65 = arith.constant 1.000000e+00 : f32
    %131 = vector.broadcast %cst_65 : f32 to vector<2x32xf32>
    %132 = arith.subf %131, %127 : vector<2x32xf32>
    %133 = arith.mulf %132, %130 : vector<2x32xf32>
    %134 = arith.mulf %127, %107 : vector<2x32xf32>
    %135 = arith.addf %133, %134 : vector<2x32xf32>
    %136 = vector.extract_strided_slice %44 {offsets = [6, 0], sizes = [2, 32], strides = [1, 1]} : vector<16x32xf32> to vector<2x32xf32>
    %137 = vector.extract_strided_slice %47 {offsets = [6, 0], sizes = [2, 32], strides = [1, 1]} : vector<16x32xf32> to vector<2x32xf32>
    %138 = vector.extract_strided_slice %50 {offsets = [6, 0], sizes = [2, 32], strides = [1, 1]} : vector<16x32xf32> to vector<2x32xf32>
    %cst_66 = arith.constant dense<0.000000e+00> : vector<2x32xf32>
    %139 = tpu.matmul %135, %23, %cst_66 {dimension_numbers = #tpu.dot_dimension_numbers<[1], [0], [0], [1], [0, 0, 1, 1], [], []>} : vector<2x32xf32>, vector<32x32xf32>, vector<2x32xf32> -> vector<2x32xf32>
    %cst_67 = arith.constant dense<0.000000e+00> : vector<2x32xf32>
    %140 = tpu.matmul %135, %25, %cst_67 {dimension_numbers = #tpu.dot_dimension_numbers<[1], [0], [0], [1], [0, 0, 1, 1], [], []>} : vector<2x32xf32>, vector<32x32xf32>, vector<2x32xf32> -> vector<2x32xf32>
    %cst_68 = arith.constant dense<0.000000e+00> : vector<2x32xf32>
    %141 = tpu.matmul %135, %27, %cst_68 {dimension_numbers = #tpu.dot_dimension_numbers<[1], [0], [0], [1], [0, 0, 1, 1], [], []>} : vector<2x32xf32>, vector<32x32xf32>, vector<2x32xf32> -> vector<2x32xf32>
    %142 = vector.broadcast %41 : vector<1x32xf32> to vector<2x32xf32>
    %143 = arith.addf %141, %142 : vector<2x32xf32>
    %144 = arith.addf %136, %139 : vector<2x32xf32>
    %145 = arith.negf %144 : vector<2x32xf32>
    %146 = math.exp %145 : vector<2x32xf32>
    %cst_69 = arith.constant 1.000000e+00 : f32
    %147 = vector.broadcast %cst_69 : f32 to vector<2x32xf32>
    %148 = arith.addf %147, %146 : vector<2x32xf32>
    %149 = arith.divf %147, %148 : vector<2x32xf32>
    %150 = arith.addf %137, %140 : vector<2x32xf32>
    %151 = arith.negf %150 : vector<2x32xf32>
    %152 = math.exp %151 : vector<2x32xf32>
    %cst_70 = arith.constant 1.000000e+00 : f32
    %153 = vector.broadcast %cst_70 : f32 to vector<2x32xf32>
    %154 = arith.addf %153, %152 : vector<2x32xf32>
    %155 = arith.divf %153, %154 : vector<2x32xf32>
    %156 = arith.mulf %149, %143 : vector<2x32xf32>
    %157 = arith.addf %138, %156 : vector<2x32xf32>
    %158 = math.tanh %157 : vector<2x32xf32>
    %cst_71 = arith.constant 1.000000e+00 : f32
    %159 = vector.broadcast %cst_71 : f32 to vector<2x32xf32>
    %160 = arith.subf %159, %155 : vector<2x32xf32>
    %161 = arith.mulf %160, %158 : vector<2x32xf32>
    %162 = arith.mulf %155, %135 : vector<2x32xf32>
    %163 = arith.addf %161, %162 : vector<2x32xf32>
    %164 = vector.extract_strided_slice %44 {offsets = [8, 0], sizes = [2, 32], strides = [1, 1]} : vector<16x32xf32> to vector<2x32xf32>
    %165 = vector.extract_strided_slice %47 {offsets = [8, 0], sizes = [2, 32], strides = [1, 1]} : vector<16x32xf32> to vector<2x32xf32>
    %166 = vector.extract_strided_slice %50 {offsets = [8, 0], sizes = [2, 32], strides = [1, 1]} : vector<16x32xf32> to vector<2x32xf32>
    %cst_72 = arith.constant dense<0.000000e+00> : vector<2x32xf32>
    %167 = tpu.matmul %163, %23, %cst_72 {dimension_numbers = #tpu.dot_dimension_numbers<[1], [0], [0], [1], [0, 0, 1, 1], [], []>} : vector<2x32xf32>, vector<32x32xf32>, vector<2x32xf32> -> vector<2x32xf32>
    %cst_73 = arith.constant dense<0.000000e+00> : vector<2x32xf32>
    %168 = tpu.matmul %163, %25, %cst_73 {dimension_numbers = #tpu.dot_dimension_numbers<[1], [0], [0], [1], [0, 0, 1, 1], [], []>} : vector<2x32xf32>, vector<32x32xf32>, vector<2x32xf32> -> vector<2x32xf32>
    %cst_74 = arith.constant dense<0.000000e+00> : vector<2x32xf32>
    %169 = tpu.matmul %163, %27, %cst_74 {dimension_numbers = #tpu.dot_dimension_numbers<[1], [0], [0], [1], [0, 0, 1, 1], [], []>} : vector<2x32xf32>, vector<32x32xf32>, vector<2x32xf32> -> vector<2x32xf32>
    %170 = vector.broadcast %41 : vector<1x32xf32> to vector<2x32xf32>
    %171 = arith.addf %169, %170 : vector<2x32xf32>
    %172 = arith.addf %164, %167 : vector<2x32xf32>
    %173 = arith.negf %172 : vector<2x32xf32>
    %174 = math.exp %173 : vector<2x32xf32>
    %cst_75 = arith.constant 1.000000e+00 : f32
    %175 = vector.broadcast %cst_75 : f32 to vector<2x32xf32>
    %176 = arith.addf %175, %174 : vector<2x32xf32>
    %177 = arith.divf %175, %176 : vector<2x32xf32>
    %178 = arith.addf %165, %168 : vector<2x32xf32>
    %179 = arith.negf %178 : vector<2x32xf32>
    %180 = math.exp %179 : vector<2x32xf32>
    %cst_76 = arith.constant 1.000000e+00 : f32
    %181 = vector.broadcast %cst_76 : f32 to vector<2x32xf32>
    %182 = arith.addf %181, %180 : vector<2x32xf32>
    %183 = arith.divf %181, %182 : vector<2x32xf32>
    %184 = arith.mulf %177, %171 : vector<2x32xf32>
    %185 = arith.addf %166, %184 : vector<2x32xf32>
    %186 = math.tanh %185 : vector<2x32xf32>
    %cst_77 = arith.constant 1.000000e+00 : f32
    %187 = vector.broadcast %cst_77 : f32 to vector<2x32xf32>
    %188 = arith.subf %187, %183 : vector<2x32xf32>
    %189 = arith.mulf %188, %186 : vector<2x32xf32>
    %190 = arith.mulf %183, %163 : vector<2x32xf32>
    %191 = arith.addf %189, %190 : vector<2x32xf32>
    %192 = vector.extract_strided_slice %44 {offsets = [10, 0], sizes = [2, 32], strides = [1, 1]} : vector<16x32xf32> to vector<2x32xf32>
    %193 = vector.extract_strided_slice %47 {offsets = [10, 0], sizes = [2, 32], strides = [1, 1]} : vector<16x32xf32> to vector<2x32xf32>
    %194 = vector.extract_strided_slice %50 {offsets = [10, 0], sizes = [2, 32], strides = [1, 1]} : vector<16x32xf32> to vector<2x32xf32>
    %cst_78 = arith.constant dense<0.000000e+00> : vector<2x32xf32>
    %195 = tpu.matmul %191, %23, %cst_78 {dimension_numbers = #tpu.dot_dimension_numbers<[1], [0], [0], [1], [0, 0, 1, 1], [], []>} : vector<2x32xf32>, vector<32x32xf32>, vector<2x32xf32> -> vector<2x32xf32>
    %cst_79 = arith.constant dense<0.000000e+00> : vector<2x32xf32>
    %196 = tpu.matmul %191, %25, %cst_79 {dimension_numbers = #tpu.dot_dimension_numbers<[1], [0], [0], [1], [0, 0, 1, 1], [], []>} : vector<2x32xf32>, vector<32x32xf32>, vector<2x32xf32> -> vector<2x32xf32>
    %cst_80 = arith.constant dense<0.000000e+00> : vector<2x32xf32>
    %197 = tpu.matmul %191, %27, %cst_80 {dimension_numbers = #tpu.dot_dimension_numbers<[1], [0], [0], [1], [0, 0, 1, 1], [], []>} : vector<2x32xf32>, vector<32x32xf32>, vector<2x32xf32> -> vector<2x32xf32>
    %198 = vector.broadcast %41 : vector<1x32xf32> to vector<2x32xf32>
    %199 = arith.addf %197, %198 : vector<2x32xf32>
    %200 = arith.addf %192, %195 : vector<2x32xf32>
    %201 = arith.negf %200 : vector<2x32xf32>
    %202 = math.exp %201 : vector<2x32xf32>
    %cst_81 = arith.constant 1.000000e+00 : f32
    %203 = vector.broadcast %cst_81 : f32 to vector<2x32xf32>
    %204 = arith.addf %203, %202 : vector<2x32xf32>
    %205 = arith.divf %203, %204 : vector<2x32xf32>
    %206 = arith.addf %193, %196 : vector<2x32xf32>
    %207 = arith.negf %206 : vector<2x32xf32>
    %208 = math.exp %207 : vector<2x32xf32>
    %cst_82 = arith.constant 1.000000e+00 : f32
    %209 = vector.broadcast %cst_82 : f32 to vector<2x32xf32>
    %210 = arith.addf %209, %208 : vector<2x32xf32>
    %211 = arith.divf %209, %210 : vector<2x32xf32>
    %212 = arith.mulf %205, %199 : vector<2x32xf32>
    %213 = arith.addf %194, %212 : vector<2x32xf32>
    %214 = math.tanh %213 : vector<2x32xf32>
    %cst_83 = arith.constant 1.000000e+00 : f32
    %215 = vector.broadcast %cst_83 : f32 to vector<2x32xf32>
    %216 = arith.subf %215, %211 : vector<2x32xf32>
    %217 = arith.mulf %216, %214 : vector<2x32xf32>
    %218 = arith.mulf %211, %191 : vector<2x32xf32>
    %219 = arith.addf %217, %218 : vector<2x32xf32>
    %220 = vector.extract_strided_slice %44 {offsets = [12, 0], sizes = [2, 32], strides = [1, 1]} : vector<16x32xf32> to vector<2x32xf32>
    %221 = vector.extract_strided_slice %47 {offsets = [12, 0], sizes = [2, 32], strides = [1, 1]} : vector<16x32xf32> to vector<2x32xf32>
    %222 = vector.extract_strided_slice %50 {offsets = [12, 0], sizes = [2, 32], strides = [1, 1]} : vector<16x32xf32> to vector<2x32xf32>
    %cst_84 = arith.constant dense<0.000000e+00> : vector<2x32xf32>
    %223 = tpu.matmul %219, %23, %cst_84 {dimension_numbers = #tpu.dot_dimension_numbers<[1], [0], [0], [1], [0, 0, 1, 1], [], []>} : vector<2x32xf32>, vector<32x32xf32>, vector<2x32xf32> -> vector<2x32xf32>
    %cst_85 = arith.constant dense<0.000000e+00> : vector<2x32xf32>
    %224 = tpu.matmul %219, %25, %cst_85 {dimension_numbers = #tpu.dot_dimension_numbers<[1], [0], [0], [1], [0, 0, 1, 1], [], []>} : vector<2x32xf32>, vector<32x32xf32>, vector<2x32xf32> -> vector<2x32xf32>
    %cst_86 = arith.constant dense<0.000000e+00> : vector<2x32xf32>
    %225 = tpu.matmul %219, %27, %cst_86 {dimension_numbers = #tpu.dot_dimension_numbers<[1], [0], [0], [1], [0, 0, 1, 1], [], []>} : vector<2x32xf32>, vector<32x32xf32>, vector<2x32xf32> -> vector<2x32xf32>
    %226 = vector.broadcast %41 : vector<1x32xf32> to vector<2x32xf32>
    %227 = arith.addf %225, %226 : vector<2x32xf32>
    %228 = arith.addf %220, %223 : vector<2x32xf32>
    %229 = arith.negf %228 : vector<2x32xf32>
    %230 = math.exp %229 : vector<2x32xf32>
    %cst_87 = arith.constant 1.000000e+00 : f32
    %231 = vector.broadcast %cst_87 : f32 to vector<2x32xf32>
    %232 = arith.addf %231, %230 : vector<2x32xf32>
    %233 = arith.divf %231, %232 : vector<2x32xf32>
    %234 = arith.addf %221, %224 : vector<2x32xf32>
    %235 = arith.negf %234 : vector<2x32xf32>
    %236 = math.exp %235 : vector<2x32xf32>
    %cst_88 = arith.constant 1.000000e+00 : f32
    %237 = vector.broadcast %cst_88 : f32 to vector<2x32xf32>
    %238 = arith.addf %237, %236 : vector<2x32xf32>
    %239 = arith.divf %237, %238 : vector<2x32xf32>
    %240 = arith.mulf %233, %227 : vector<2x32xf32>
    %241 = arith.addf %222, %240 : vector<2x32xf32>
    %242 = math.tanh %241 : vector<2x32xf32>
    %cst_89 = arith.constant 1.000000e+00 : f32
    %243 = vector.broadcast %cst_89 : f32 to vector<2x32xf32>
    %244 = arith.subf %243, %239 : vector<2x32xf32>
    %245 = arith.mulf %244, %242 : vector<2x32xf32>
    %246 = arith.mulf %239, %219 : vector<2x32xf32>
    %247 = arith.addf %245, %246 : vector<2x32xf32>
    %248 = vector.extract_strided_slice %44 {offsets = [14, 0], sizes = [2, 32], strides = [1, 1]} : vector<16x32xf32> to vector<2x32xf32>
    %249 = vector.extract_strided_slice %47 {offsets = [14, 0], sizes = [2, 32], strides = [1, 1]} : vector<16x32xf32> to vector<2x32xf32>
    %250 = vector.extract_strided_slice %50 {offsets = [14, 0], sizes = [2, 32], strides = [1, 1]} : vector<16x32xf32> to vector<2x32xf32>
    %cst_90 = arith.constant dense<0.000000e+00> : vector<2x32xf32>
    %251 = tpu.matmul %247, %23, %cst_90 {dimension_numbers = #tpu.dot_dimension_numbers<[1], [0], [0], [1], [0, 0, 1, 1], [], []>} : vector<2x32xf32>, vector<32x32xf32>, vector<2x32xf32> -> vector<2x32xf32>
    %cst_91 = arith.constant dense<0.000000e+00> : vector<2x32xf32>
    %252 = tpu.matmul %247, %25, %cst_91 {dimension_numbers = #tpu.dot_dimension_numbers<[1], [0], [0], [1], [0, 0, 1, 1], [], []>} : vector<2x32xf32>, vector<32x32xf32>, vector<2x32xf32> -> vector<2x32xf32>
    %cst_92 = arith.constant dense<0.000000e+00> : vector<2x32xf32>
    %253 = tpu.matmul %247, %27, %cst_92 {dimension_numbers = #tpu.dot_dimension_numbers<[1], [0], [0], [1], [0, 0, 1, 1], [], []>} : vector<2x32xf32>, vector<32x32xf32>, vector<2x32xf32> -> vector<2x32xf32>
    %254 = vector.broadcast %41 : vector<1x32xf32> to vector<2x32xf32>
    %255 = arith.addf %253, %254 : vector<2x32xf32>
    %256 = arith.addf %248, %251 : vector<2x32xf32>
    %257 = arith.negf %256 : vector<2x32xf32>
    %258 = math.exp %257 : vector<2x32xf32>
    %cst_93 = arith.constant 1.000000e+00 : f32
    %259 = vector.broadcast %cst_93 : f32 to vector<2x32xf32>
    %260 = arith.addf %259, %258 : vector<2x32xf32>
    %261 = arith.divf %259, %260 : vector<2x32xf32>
    %262 = arith.addf %249, %252 : vector<2x32xf32>
    %263 = arith.negf %262 : vector<2x32xf32>
    %264 = math.exp %263 : vector<2x32xf32>
    %cst_94 = arith.constant 1.000000e+00 : f32
    %265 = vector.broadcast %cst_94 : f32 to vector<2x32xf32>
    %266 = arith.addf %265, %264 : vector<2x32xf32>
    %267 = arith.divf %265, %266 : vector<2x32xf32>
    %268 = arith.mulf %261, %255 : vector<2x32xf32>
    %269 = arith.addf %250, %268 : vector<2x32xf32>
    %270 = math.tanh %269 : vector<2x32xf32>
    %cst_95 = arith.constant 1.000000e+00 : f32
    %271 = vector.broadcast %cst_95 : f32 to vector<2x32xf32>
    %272 = arith.subf %271, %267 : vector<2x32xf32>
    %273 = arith.mulf %272, %270 : vector<2x32xf32>
    %274 = arith.mulf %267, %247 : vector<2x32xf32>
    %275 = arith.addf %273, %274 : vector<2x32xf32>
    %c3 = arith.constant 3 : index
    %c0_96 = arith.constant 0 : index
    %c0_97 = arith.constant 0 : index
    %276 = vector.load %arg5[%c3, %c0_96, %c0_97] : memref<6x32x32xf32, #tpu.memory_space<vmem>>, vector<1x32x32xf32>
    %277 = vector.shape_cast %276 : vector<1x32x32xf32> to vector<32x32xf32>
    %c4 = arith.constant 4 : index
    %c0_98 = arith.constant 0 : index
    %c0_99 = arith.constant 0 : index
    %278 = vector.load %arg5[%c4, %c0_98, %c0_99] : memref<6x32x32xf32, #tpu.memory_space<vmem>>, vector<1x32x32xf32>
    %279 = vector.shape_cast %278 : vector<1x32x32xf32> to vector<32x32xf32>
    %c5 = arith.constant 5 : index
    %c0_100 = arith.constant 0 : index
    %c0_101 = arith.constant 0 : index
    %280 = vector.load %arg5[%c5, %c0_100, %c0_101] : memref<6x32x32xf32, #tpu.memory_space<vmem>>, vector<1x32x32xf32>
    %281 = vector.shape_cast %280 : vector<1x32x32xf32> to vector<32x32xf32>
    %c3_102 = arith.constant 3 : index
    %c0_103 = arith.constant 0 : index
    %c0_104 = arith.constant 0 : index
    %282 = vector.load %arg6[%c3_102, %c0_103, %c0_104] : memref<6x32x32xf32, #tpu.memory_space<vmem>>, vector<1x32x32xf32>
    %283 = vector.shape_cast %282 : vector<1x32x32xf32> to vector<32x32xf32>
    %c4_105 = arith.constant 4 : index
    %c0_106 = arith.constant 0 : index
    %c0_107 = arith.constant 0 : index
    %284 = vector.load %arg6[%c4_105, %c0_106, %c0_107] : memref<6x32x32xf32, #tpu.memory_space<vmem>>, vector<1x32x32xf32>
    %285 = vector.shape_cast %284 : vector<1x32x32xf32> to vector<32x32xf32>
    %c5_108 = arith.constant 5 : index
    %c0_109 = arith.constant 0 : index
    %c0_110 = arith.constant 0 : index
    %286 = vector.load %arg6[%c5_108, %c0_109, %c0_110] : memref<6x32x32xf32, #tpu.memory_space<vmem>>, vector<1x32x32xf32>
    %287 = vector.shape_cast %286 : vector<1x32x32xf32> to vector<32x32xf32>
    %c3_111 = arith.constant 3 : index
    %c0_112 = arith.constant 0 : index
    %c0_113 = arith.constant 0 : index
    %288 = vector.load %arg7[%c3_111, %c0_112, %c0_113] : memref<6x1x32xf32, #tpu.memory_space<vmem>>, vector<1x1x32xf32>
    %289 = vector.shape_cast %288 : vector<1x1x32xf32> to vector<1x32xf32>
    %c3_114 = arith.constant 3 : index
    %c0_115 = arith.constant 0 : index
    %c0_116 = arith.constant 0 : index
    %290 = vector.load %arg8[%c3_114, %c0_115, %c0_116] : memref<6x1x32xf32, #tpu.memory_space<vmem>>, vector<1x1x32xf32>
    %291 = vector.shape_cast %290 : vector<1x1x32xf32> to vector<1x32xf32>
    %292 = arith.addf %289, %291 : vector<1x32xf32>
    %c4_117 = arith.constant 4 : index
    %c0_118 = arith.constant 0 : index
    %c0_119 = arith.constant 0 : index
    %293 = vector.load %arg7[%c4_117, %c0_118, %c0_119] : memref<6x1x32xf32, #tpu.memory_space<vmem>>, vector<1x1x32xf32>
    %294 = vector.shape_cast %293 : vector<1x1x32xf32> to vector<1x32xf32>
    %c4_120 = arith.constant 4 : index
    %c0_121 = arith.constant 0 : index
    %c0_122 = arith.constant 0 : index
    %295 = vector.load %arg8[%c4_120, %c0_121, %c0_122] : memref<6x1x32xf32, #tpu.memory_space<vmem>>, vector<1x1x32xf32>
    %296 = vector.shape_cast %295 : vector<1x1x32xf32> to vector<1x32xf32>
    %297 = arith.addf %294, %296 : vector<1x32xf32>
    %c5_123 = arith.constant 5 : index
    %c0_124 = arith.constant 0 : index
    %c0_125 = arith.constant 0 : index
    %298 = vector.load %arg7[%c5_123, %c0_124, %c0_125] : memref<6x1x32xf32, #tpu.memory_space<vmem>>, vector<1x1x32xf32>
    %299 = vector.shape_cast %298 : vector<1x1x32xf32> to vector<1x32xf32>
    %c5_126 = arith.constant 5 : index
    %c0_127 = arith.constant 0 : index
    %c0_128 = arith.constant 0 : index
    %300 = vector.load %arg8[%c5_126, %c0_127, %c0_128] : memref<6x1x32xf32, #tpu.memory_space<vmem>>, vector<1x1x32xf32>
    %301 = vector.shape_cast %300 : vector<1x1x32xf32> to vector<1x32xf32>
    %cst_129 = arith.constant 0.000000e+00 : f32
    %302 = vector.broadcast %cst_129 : f32 to vector<2x32xf32>
    %cst_130 = arith.constant dense<0.000000e+00> : vector<2x32xf32>
    %303 = tpu.matmul %79, %277, %cst_130 {dimension_numbers = #tpu.dot_dimension_numbers<[1], [0], [0], [1], [0, 0, 1, 1], [], []>} : vector<2x32xf32>, vector<32x32xf32>, vector<2x32xf32> -> vector<2x32xf32>
    %304 = vector.broadcast %292 : vector<1x32xf32> to vector<2x32xf32>
    %305 = arith.addf %303, %304 : vector<2x32xf32>
    %cst_131 = arith.constant dense<0.000000e+00> : vector<2x32xf32>
    %306 = tpu.matmul %79, %279, %cst_131 {dimension_numbers = #tpu.dot_dimension_numbers<[1], [0], [0], [1], [0, 0, 1, 1], [], []>} : vector<2x32xf32>, vector<32x32xf32>, vector<2x32xf32> -> vector<2x32xf32>
    %307 = vector.broadcast %297 : vector<1x32xf32> to vector<2x32xf32>
    %308 = arith.addf %306, %307 : vector<2x32xf32>
    %cst_132 = arith.constant dense<0.000000e+00> : vector<2x32xf32>
    %309 = tpu.matmul %79, %281, %cst_132 {dimension_numbers = #tpu.dot_dimension_numbers<[1], [0], [0], [1], [0, 0, 1, 1], [], []>} : vector<2x32xf32>, vector<32x32xf32>, vector<2x32xf32> -> vector<2x32xf32>
    %310 = vector.broadcast %299 : vector<1x32xf32> to vector<2x32xf32>
    %311 = arith.addf %309, %310 : vector<2x32xf32>
    %cst_133 = arith.constant dense<0.000000e+00> : vector<2x32xf32>
    %312 = tpu.matmul %302, %283, %cst_133 {dimension_numbers = #tpu.dot_dimension_numbers<[1], [0], [0], [1], [0, 0, 1, 1], [], []>} : vector<2x32xf32>, vector<32x32xf32>, vector<2x32xf32> -> vector<2x32xf32>
    %cst_134 = arith.constant dense<0.000000e+00> : vector<2x32xf32>
    %313 = tpu.matmul %302, %285, %cst_134 {dimension_numbers = #tpu.dot_dimension_numbers<[1], [0], [0], [1], [0, 0, 1, 1], [], []>} : vector<2x32xf32>, vector<32x32xf32>, vector<2x32xf32> -> vector<2x32xf32>
    %cst_135 = arith.constant dense<0.000000e+00> : vector<2x32xf32>
    %314 = tpu.matmul %302, %287, %cst_135 {dimension_numbers = #tpu.dot_dimension_numbers<[1], [0], [0], [1], [0, 0, 1, 1], [], []>} : vector<2x32xf32>, vector<32x32xf32>, vector<2x32xf32> -> vector<2x32xf32>
    %315 = vector.broadcast %301 : vector<1x32xf32> to vector<2x32xf32>
    %316 = arith.addf %314, %315 : vector<2x32xf32>
    %317 = arith.addf %305, %312 : vector<2x32xf32>
    %318 = arith.negf %317 : vector<2x32xf32>
    %319 = math.exp %318 : vector<2x32xf32>
    %cst_136 = arith.constant 1.000000e+00 : f32
    %320 = vector.broadcast %cst_136 : f32 to vector<2x32xf32>
    %321 = arith.addf %320, %319 : vector<2x32xf32>
    %322 = arith.divf %320, %321 : vector<2x32xf32>
    %323 = arith.addf %308, %313 : vector<2x32xf32>
    %324 = arith.negf %323 : vector<2x32xf32>
    %325 = math.exp %324 : vector<2x32xf32>
    %cst_137 = arith.constant 1.000000e+00 : f32
    %326 = vector.broadcast %cst_137 : f32 to vector<2x32xf32>
    %327 = arith.addf %326, %325 : vector<2x32xf32>
    %328 = arith.divf %326, %327 : vector<2x32xf32>
    %329 = arith.mulf %322, %316 : vector<2x32xf32>
    %330 = arith.addf %311, %329 : vector<2x32xf32>
    %331 = math.tanh %330 : vector<2x32xf32>
    %cst_138 = arith.constant 1.000000e+00 : f32
    %332 = vector.broadcast %cst_138 : f32 to vector<2x32xf32>
    %333 = arith.subf %332, %328 : vector<2x32xf32>
    %334 = arith.mulf %333, %331 : vector<2x32xf32>
    %335 = arith.mulf %328, %302 : vector<2x32xf32>
    %336 = arith.addf %334, %335 : vector<2x32xf32>
    %cst_139 = arith.constant dense<0.000000e+00> : vector<2x32xf32>
    %337 = tpu.matmul %107, %277, %cst_139 {dimension_numbers = #tpu.dot_dimension_numbers<[1], [0], [0], [1], [0, 0, 1, 1], [], []>} : vector<2x32xf32>, vector<32x32xf32>, vector<2x32xf32> -> vector<2x32xf32>
    %338 = vector.broadcast %292 : vector<1x32xf32> to vector<2x32xf32>
    %339 = arith.addf %337, %338 : vector<2x32xf32>
    %cst_140 = arith.constant dense<0.000000e+00> : vector<2x32xf32>
    %340 = tpu.matmul %107, %279, %cst_140 {dimension_numbers = #tpu.dot_dimension_numbers<[1], [0], [0], [1], [0, 0, 1, 1], [], []>} : vector<2x32xf32>, vector<32x32xf32>, vector<2x32xf32> -> vector<2x32xf32>
    %341 = vector.broadcast %297 : vector<1x32xf32> to vector<2x32xf32>
    %342 = arith.addf %340, %341 : vector<2x32xf32>
    %cst_141 = arith.constant dense<0.000000e+00> : vector<2x32xf32>
    %343 = tpu.matmul %107, %281, %cst_141 {dimension_numbers = #tpu.dot_dimension_numbers<[1], [0], [0], [1], [0, 0, 1, 1], [], []>} : vector<2x32xf32>, vector<32x32xf32>, vector<2x32xf32> -> vector<2x32xf32>
    %344 = vector.broadcast %299 : vector<1x32xf32> to vector<2x32xf32>
    %345 = arith.addf %343, %344 : vector<2x32xf32>
    %cst_142 = arith.constant dense<0.000000e+00> : vector<2x32xf32>
    %346 = tpu.matmul %336, %283, %cst_142 {dimension_numbers = #tpu.dot_dimension_numbers<[1], [0], [0], [1], [0, 0, 1, 1], [], []>} : vector<2x32xf32>, vector<32x32xf32>, vector<2x32xf32> -> vector<2x32xf32>
    %cst_143 = arith.constant dense<0.000000e+00> : vector<2x32xf32>
    %347 = tpu.matmul %336, %285, %cst_143 {dimension_numbers = #tpu.dot_dimension_numbers<[1], [0], [0], [1], [0, 0, 1, 1], [], []>} : vector<2x32xf32>, vector<32x32xf32>, vector<2x32xf32> -> vector<2x32xf32>
    %cst_144 = arith.constant dense<0.000000e+00> : vector<2x32xf32>
    %348 = tpu.matmul %336, %287, %cst_144 {dimension_numbers = #tpu.dot_dimension_numbers<[1], [0], [0], [1], [0, 0, 1, 1], [], []>} : vector<2x32xf32>, vector<32x32xf32>, vector<2x32xf32> -> vector<2x32xf32>
    %349 = vector.broadcast %301 : vector<1x32xf32> to vector<2x32xf32>
    %350 = arith.addf %348, %349 : vector<2x32xf32>
    %351 = arith.addf %339, %346 : vector<2x32xf32>
    %352 = arith.negf %351 : vector<2x32xf32>
    %353 = math.exp %352 : vector<2x32xf32>
    %cst_145 = arith.constant 1.000000e+00 : f32
    %354 = vector.broadcast %cst_145 : f32 to vector<2x32xf32>
    %355 = arith.addf %354, %353 : vector<2x32xf32>
    %356 = arith.divf %354, %355 : vector<2x32xf32>
    %357 = arith.addf %342, %347 : vector<2x32xf32>
    %358 = arith.negf %357 : vector<2x32xf32>
    %359 = math.exp %358 : vector<2x32xf32>
    %cst_146 = arith.constant 1.000000e+00 : f32
    %360 = vector.broadcast %cst_146 : f32 to vector<2x32xf32>
    %361 = arith.addf %360, %359 : vector<2x32xf32>
    %362 = arith.divf %360, %361 : vector<2x32xf32>
    %363 = arith.mulf %356, %350 : vector<2x32xf32>
    %364 = arith.addf %345, %363 : vector<2x32xf32>
    %365 = math.tanh %364 : vector<2x32xf32>
    %cst_147 = arith.constant 1.000000e+00 : f32
    %366 = vector.broadcast %cst_147 : f32 to vector<2x32xf32>
    %367 = arith.subf %366, %362 : vector<2x32xf32>
    %368 = arith.mulf %367, %365 : vector<2x32xf32>
    %369 = arith.mulf %362, %336 : vector<2x32xf32>
    %370 = arith.addf %368, %369 : vector<2x32xf32>
    %cst_148 = arith.constant dense<0.000000e+00> : vector<2x32xf32>
    %371 = tpu.matmul %135, %277, %cst_148 {dimension_numbers = #tpu.dot_dimension_numbers<[1], [0], [0], [1], [0, 0, 1, 1], [], []>} : vector<2x32xf32>, vector<32x32xf32>, vector<2x32xf32> -> vector<2x32xf32>
    %372 = vector.broadcast %292 : vector<1x32xf32> to vector<2x32xf32>
    %373 = arith.addf %371, %372 : vector<2x32xf32>
    %cst_149 = arith.constant dense<0.000000e+00> : vector<2x32xf32>
    %374 = tpu.matmul %135, %279, %cst_149 {dimension_numbers = #tpu.dot_dimension_numbers<[1], [0], [0], [1], [0, 0, 1, 1], [], []>} : vector<2x32xf32>, vector<32x32xf32>, vector<2x32xf32> -> vector<2x32xf32>
    %375 = vector.broadcast %297 : vector<1x32xf32> to vector<2x32xf32>
    %376 = arith.addf %374, %375 : vector<2x32xf32>
    %cst_150 = arith.constant dense<0.000000e+00> : vector<2x32xf32>
    %377 = tpu.matmul %135, %281, %cst_150 {dimension_numbers = #tpu.dot_dimension_numbers<[1], [0], [0], [1], [0, 0, 1, 1], [], []>} : vector<2x32xf32>, vector<32x32xf32>, vector<2x32xf32> -> vector<2x32xf32>
    %378 = vector.broadcast %299 : vector<1x32xf32> to vector<2x32xf32>
    %379 = arith.addf %377, %378 : vector<2x32xf32>
    %cst_151 = arith.constant dense<0.000000e+00> : vector<2x32xf32>
    %380 = tpu.matmul %370, %283, %cst_151 {dimension_numbers = #tpu.dot_dimension_numbers<[1], [0], [0], [1], [0, 0, 1, 1], [], []>} : vector<2x32xf32>, vector<32x32xf32>, vector<2x32xf32> -> vector<2x32xf32>
    %cst_152 = arith.constant dense<0.000000e+00> : vector<2x32xf32>
    %381 = tpu.matmul %370, %285, %cst_152 {dimension_numbers = #tpu.dot_dimension_numbers<[1], [0], [0], [1], [0, 0, 1, 1], [], []>} : vector<2x32xf32>, vector<32x32xf32>, vector<2x32xf32> -> vector<2x32xf32>
    %cst_153 = arith.constant dense<0.000000e+00> : vector<2x32xf32>
    %382 = tpu.matmul %370, %287, %cst_153 {dimension_numbers = #tpu.dot_dimension_numbers<[1], [0], [0], [1], [0, 0, 1, 1], [], []>} : vector<2x32xf32>, vector<32x32xf32>, vector<2x32xf32> -> vector<2x32xf32>
    %383 = vector.broadcast %301 : vector<1x32xf32> to vector<2x32xf32>
    %384 = arith.addf %382, %383 : vector<2x32xf32>
    %385 = arith.addf %373, %380 : vector<2x32xf32>
    %386 = arith.negf %385 : vector<2x32xf32>
    %387 = math.exp %386 : vector<2x32xf32>
    %cst_154 = arith.constant 1.000000e+00 : f32
    %388 = vector.broadcast %cst_154 : f32 to vector<2x32xf32>
    %389 = arith.addf %388, %387 : vector<2x32xf32>
    %390 = arith.divf %388, %389 : vector<2x32xf32>
    %391 = arith.addf %376, %381 : vector<2x32xf32>
    %392 = arith.negf %391 : vector<2x32xf32>
    %393 = math.exp %392 : vector<2x32xf32>
    %cst_155 = arith.constant 1.000000e+00 : f32
    %394 = vector.broadcast %cst_155 : f32 to vector<2x32xf32>
    %395 = arith.addf %394, %393 : vector<2x32xf32>
    %396 = arith.divf %394, %395 : vector<2x32xf32>
    %397 = arith.mulf %390, %384 : vector<2x32xf32>
    %398 = arith.addf %379, %397 : vector<2x32xf32>
    %399 = math.tanh %398 : vector<2x32xf32>
    %cst_156 = arith.constant 1.000000e+00 : f32
    %400 = vector.broadcast %cst_156 : f32 to vector<2x32xf32>
    %401 = arith.subf %400, %396 : vector<2x32xf32>
    %402 = arith.mulf %401, %399 : vector<2x32xf32>
    %403 = arith.mulf %396, %370 : vector<2x32xf32>
    %404 = arith.addf %402, %403 : vector<2x32xf32>
    %cst_157 = arith.constant dense<0.000000e+00> : vector<2x32xf32>
    %405 = tpu.matmul %163, %277, %cst_157 {dimension_numbers = #tpu.dot_dimension_numbers<[1], [0], [0], [1], [0, 0, 1, 1], [], []>} : vector<2x32xf32>, vector<32x32xf32>, vector<2x32xf32> -> vector<2x32xf32>
    %406 = vector.broadcast %292 : vector<1x32xf32> to vector<2x32xf32>
    %407 = arith.addf %405, %406 : vector<2x32xf32>
    %cst_158 = arith.constant dense<0.000000e+00> : vector<2x32xf32>
    %408 = tpu.matmul %163, %279, %cst_158 {dimension_numbers = #tpu.dot_dimension_numbers<[1], [0], [0], [1], [0, 0, 1, 1], [], []>} : vector<2x32xf32>, vector<32x32xf32>, vector<2x32xf32> -> vector<2x32xf32>
    %409 = vector.broadcast %297 : vector<1x32xf32> to vector<2x32xf32>
    %410 = arith.addf %408, %409 : vector<2x32xf32>
    %cst_159 = arith.constant dense<0.000000e+00> : vector<2x32xf32>
    %411 = tpu.matmul %163, %281, %cst_159 {dimension_numbers = #tpu.dot_dimension_numbers<[1], [0], [0], [1], [0, 0, 1, 1], [], []>} : vector<2x32xf32>, vector<32x32xf32>, vector<2x32xf32> -> vector<2x32xf32>
    %412 = vector.broadcast %299 : vector<1x32xf32> to vector<2x32xf32>
    %413 = arith.addf %411, %412 : vector<2x32xf32>
    %cst_160 = arith.constant dense<0.000000e+00> : vector<2x32xf32>
    %414 = tpu.matmul %404, %283, %cst_160 {dimension_numbers = #tpu.dot_dimension_numbers<[1], [0], [0], [1], [0, 0, 1, 1], [], []>} : vector<2x32xf32>, vector<32x32xf32>, vector<2x32xf32> -> vector<2x32xf32>
    %cst_161 = arith.constant dense<0.000000e+00> : vector<2x32xf32>
    %415 = tpu.matmul %404, %285, %cst_161 {dimension_numbers = #tpu.dot_dimension_numbers<[1], [0], [0], [1], [0, 0, 1, 1], [], []>} : vector<2x32xf32>, vector<32x32xf32>, vector<2x32xf32> -> vector<2x32xf32>
    %cst_162 = arith.constant dense<0.000000e+00> : vector<2x32xf32>
    %416 = tpu.matmul %404, %287, %cst_162 {dimension_numbers = #tpu.dot_dimension_numbers<[1], [0], [0], [1], [0, 0, 1, 1], [], []>} : vector<2x32xf32>, vector<32x32xf32>, vector<2x32xf32> -> vector<2x32xf32>
    %417 = vector.broadcast %301 : vector<1x32xf32> to vector<2x32xf32>
    %418 = arith.addf %416, %417 : vector<2x32xf32>
    %419 = arith.addf %407, %414 : vector<2x32xf32>
    %420 = arith.negf %419 : vector<2x32xf32>
    %421 = math.exp %420 : vector<2x32xf32>
    %cst_163 = arith.constant 1.000000e+00 : f32
    %422 = vector.broadcast %cst_163 : f32 to vector<2x32xf32>
    %423 = arith.addf %422, %421 : vector<2x32xf32>
    %424 = arith.divf %422, %423 : vector<2x32xf32>
    %425 = arith.addf %410, %415 : vector<2x32xf32>
    %426 = arith.negf %425 : vector<2x32xf32>
    %427 = math.exp %426 : vector<2x32xf32>
    %cst_164 = arith.constant 1.000000e+00 : f32
    %428 = vector.broadcast %cst_164 : f32 to vector<2x32xf32>
    %429 = arith.addf %428, %427 : vector<2x32xf32>
    %430 = arith.divf %428, %429 : vector<2x32xf32>
    %431 = arith.mulf %424, %418 : vector<2x32xf32>
    %432 = arith.addf %413, %431 : vector<2x32xf32>
    %433 = math.tanh %432 : vector<2x32xf32>
    %cst_165 = arith.constant 1.000000e+00 : f32
    %434 = vector.broadcast %cst_165 : f32 to vector<2x32xf32>
    %435 = arith.subf %434, %430 : vector<2x32xf32>
    %436 = arith.mulf %435, %433 : vector<2x32xf32>
    %437 = arith.mulf %430, %404 : vector<2x32xf32>
    %438 = arith.addf %436, %437 : vector<2x32xf32>
    %cst_166 = arith.constant dense<0.000000e+00> : vector<2x32xf32>
    %439 = tpu.matmul %191, %277, %cst_166 {dimension_numbers = #tpu.dot_dimension_numbers<[1], [0], [0], [1], [0, 0, 1, 1], [], []>} : vector<2x32xf32>, vector<32x32xf32>, vector<2x32xf32> -> vector<2x32xf32>
    %440 = vector.broadcast %292 : vector<1x32xf32> to vector<2x32xf32>
    %441 = arith.addf %439, %440 : vector<2x32xf32>
    %cst_167 = arith.constant dense<0.000000e+00> : vector<2x32xf32>
    %442 = tpu.matmul %191, %279, %cst_167 {dimension_numbers = #tpu.dot_dimension_numbers<[1], [0], [0], [1], [0, 0, 1, 1], [], []>} : vector<2x32xf32>, vector<32x32xf32>, vector<2x32xf32> -> vector<2x32xf32>
    %443 = vector.broadcast %297 : vector<1x32xf32> to vector<2x32xf32>
    %444 = arith.addf %442, %443 : vector<2x32xf32>
    %cst_168 = arith.constant dense<0.000000e+00> : vector<2x32xf32>
    %445 = tpu.matmul %191, %281, %cst_168 {dimension_numbers = #tpu.dot_dimension_numbers<[1], [0], [0], [1], [0, 0, 1, 1], [], []>} : vector<2x32xf32>, vector<32x32xf32>, vector<2x32xf32> -> vector<2x32xf32>
    %446 = vector.broadcast %299 : vector<1x32xf32> to vector<2x32xf32>
    %447 = arith.addf %445, %446 : vector<2x32xf32>
    %cst_169 = arith.constant dense<0.000000e+00> : vector<2x32xf32>
    %448 = tpu.matmul %438, %283, %cst_169 {dimension_numbers = #tpu.dot_dimension_numbers<[1], [0], [0], [1], [0, 0, 1, 1], [], []>} : vector<2x32xf32>, vector<32x32xf32>, vector<2x32xf32> -> vector<2x32xf32>
    %cst_170 = arith.constant dense<0.000000e+00> : vector<2x32xf32>
    %449 = tpu.matmul %438, %285, %cst_170 {dimension_numbers = #tpu.dot_dimension_numbers<[1], [0], [0], [1], [0, 0, 1, 1], [], []>} : vector<2x32xf32>, vector<32x32xf32>, vector<2x32xf32> -> vector<2x32xf32>
    %cst_171 = arith.constant dense<0.000000e+00> : vector<2x32xf32>
    %450 = tpu.matmul %438, %287, %cst_171 {dimension_numbers = #tpu.dot_dimension_numbers<[1], [0], [0], [1], [0, 0, 1, 1], [], []>} : vector<2x32xf32>, vector<32x32xf32>, vector<2x32xf32> -> vector<2x32xf32>
    %451 = vector.broadcast %301 : vector<1x32xf32> to vector<2x32xf32>
    %452 = arith.addf %450, %451 : vector<2x32xf32>
    %453 = arith.addf %441, %448 : vector<2x32xf32>
    %454 = arith.negf %453 : vector<2x32xf32>
    %455 = math.exp %454 : vector<2x32xf32>
    %cst_172 = arith.constant 1.000000e+00 : f32
    %456 = vector.broadcast %cst_172 : f32 to vector<2x32xf32>
    %457 = arith.addf %456, %455 : vector<2x32xf32>
    %458 = arith.divf %456, %457 : vector<2x32xf32>
    %459 = arith.addf %444, %449 : vector<2x32xf32>
    %460 = arith.negf %459 : vector<2x32xf32>
    %461 = math.exp %460 : vector<2x32xf32>
    %cst_173 = arith.constant 1.000000e+00 : f32
    %462 = vector.broadcast %cst_173 : f32 to vector<2x32xf32>
    %463 = arith.addf %462, %461 : vector<2x32xf32>
    %464 = arith.divf %462, %463 : vector<2x32xf32>
    %465 = arith.mulf %458, %452 : vector<2x32xf32>
    %466 = arith.addf %447, %465 : vector<2x32xf32>
    %467 = math.tanh %466 : vector<2x32xf32>
    %cst_174 = arith.constant 1.000000e+00 : f32
    %468 = vector.broadcast %cst_174 : f32 to vector<2x32xf32>
    %469 = arith.subf %468, %464 : vector<2x32xf32>
    %470 = arith.mulf %469, %467 : vector<2x32xf32>
    %471 = arith.mulf %464, %438 : vector<2x32xf32>
    %472 = arith.addf %470, %471 : vector<2x32xf32>
    %cst_175 = arith.constant dense<0.000000e+00> : vector<2x32xf32>
    %473 = tpu.matmul %219, %277, %cst_175 {dimension_numbers = #tpu.dot_dimension_numbers<[1], [0], [0], [1], [0, 0, 1, 1], [], []>} : vector<2x32xf32>, vector<32x32xf32>, vector<2x32xf32> -> vector<2x32xf32>
    %474 = vector.broadcast %292 : vector<1x32xf32> to vector<2x32xf32>
    %475 = arith.addf %473, %474 : vector<2x32xf32>
    %cst_176 = arith.constant dense<0.000000e+00> : vector<2x32xf32>
    %476 = tpu.matmul %219, %279, %cst_176 {dimension_numbers = #tpu.dot_dimension_numbers<[1], [0], [0], [1], [0, 0, 1, 1], [], []>} : vector<2x32xf32>, vector<32x32xf32>, vector<2x32xf32> -> vector<2x32xf32>
    %477 = vector.broadcast %297 : vector<1x32xf32> to vector<2x32xf32>
    %478 = arith.addf %476, %477 : vector<2x32xf32>
    %cst_177 = arith.constant dense<0.000000e+00> : vector<2x32xf32>
    %479 = tpu.matmul %219, %281, %cst_177 {dimension_numbers = #tpu.dot_dimension_numbers<[1], [0], [0], [1], [0, 0, 1, 1], [], []>} : vector<2x32xf32>, vector<32x32xf32>, vector<2x32xf32> -> vector<2x32xf32>
    %480 = vector.broadcast %299 : vector<1x32xf32> to vector<2x32xf32>
    %481 = arith.addf %479, %480 : vector<2x32xf32>
    %cst_178 = arith.constant dense<0.000000e+00> : vector<2x32xf32>
    %482 = tpu.matmul %472, %283, %cst_178 {dimension_numbers = #tpu.dot_dimension_numbers<[1], [0], [0], [1], [0, 0, 1, 1], [], []>} : vector<2x32xf32>, vector<32x32xf32>, vector<2x32xf32> -> vector<2x32xf32>
    %cst_179 = arith.constant dense<0.000000e+00> : vector<2x32xf32>
    %483 = tpu.matmul %472, %285, %cst_179 {dimension_numbers = #tpu.dot_dimension_numbers<[1], [0], [0], [1], [0, 0, 1, 1], [], []>} : vector<2x32xf32>, vector<32x32xf32>, vector<2x32xf32> -> vector<2x32xf32>
    %cst_180 = arith.constant dense<0.000000e+00> : vector<2x32xf32>
    %484 = tpu.matmul %472, %287, %cst_180 {dimension_numbers = #tpu.dot_dimension_numbers<[1], [0], [0], [1], [0, 0, 1, 1], [], []>} : vector<2x32xf32>, vector<32x32xf32>, vector<2x32xf32> -> vector<2x32xf32>
    %485 = vector.broadcast %301 : vector<1x32xf32> to vector<2x32xf32>
    %486 = arith.addf %484, %485 : vector<2x32xf32>
    %487 = arith.addf %475, %482 : vector<2x32xf32>
    %488 = arith.negf %487 : vector<2x32xf32>
    %489 = math.exp %488 : vector<2x32xf32>
    %cst_181 = arith.constant 1.000000e+00 : f32
    %490 = vector.broadcast %cst_181 : f32 to vector<2x32xf32>
    %491 = arith.addf %490, %489 : vector<2x32xf32>
    %492 = arith.divf %490, %491 : vector<2x32xf32>
    %493 = arith.addf %478, %483 : vector<2x32xf32>
    %494 = arith.negf %493 : vector<2x32xf32>
    %495 = math.exp %494 : vector<2x32xf32>
    %cst_182 = arith.constant 1.000000e+00 : f32
    %496 = vector.broadcast %cst_182 : f32 to vector<2x32xf32>
    %497 = arith.addf %496, %495 : vector<2x32xf32>
    %498 = arith.divf %496, %497 : vector<2x32xf32>
    %499 = arith.mulf %492, %486 : vector<2x32xf32>
    %500 = arith.addf %481, %499 : vector<2x32xf32>
    %501 = math.tanh %500 : vector<2x32xf32>
    %cst_183 = arith.constant 1.000000e+00 : f32
    %502 = vector.broadcast %cst_183 : f32 to vector<2x32xf32>
    %503 = arith.subf %502, %498 : vector<2x32xf32>
    %504 = arith.mulf %503, %501 : vector<2x32xf32>
    %505 = arith.mulf %498, %472 : vector<2x32xf32>
    %506 = arith.addf %504, %505 : vector<2x32xf32>
    %cst_184 = arith.constant dense<0.000000e+00> : vector<2x32xf32>
    %507 = tpu.matmul %247, %277, %cst_184 {dimension_numbers = #tpu.dot_dimension_numbers<[1], [0], [0], [1], [0, 0, 1, 1], [], []>} : vector<2x32xf32>, vector<32x32xf32>, vector<2x32xf32> -> vector<2x32xf32>
    %508 = vector.broadcast %292 : vector<1x32xf32> to vector<2x32xf32>
    %509 = arith.addf %507, %508 : vector<2x32xf32>
    %cst_185 = arith.constant dense<0.000000e+00> : vector<2x32xf32>
    %510 = tpu.matmul %247, %279, %cst_185 {dimension_numbers = #tpu.dot_dimension_numbers<[1], [0], [0], [1], [0, 0, 1, 1], [], []>} : vector<2x32xf32>, vector<32x32xf32>, vector<2x32xf32> -> vector<2x32xf32>
    %511 = vector.broadcast %297 : vector<1x32xf32> to vector<2x32xf32>
    %512 = arith.addf %510, %511 : vector<2x32xf32>
    %cst_186 = arith.constant dense<0.000000e+00> : vector<2x32xf32>
    %513 = tpu.matmul %247, %281, %cst_186 {dimension_numbers = #tpu.dot_dimension_numbers<[1], [0], [0], [1], [0, 0, 1, 1], [], []>} : vector<2x32xf32>, vector<32x32xf32>, vector<2x32xf32> -> vector<2x32xf32>
    %514 = vector.broadcast %299 : vector<1x32xf32> to vector<2x32xf32>
    %515 = arith.addf %513, %514 : vector<2x32xf32>
    %cst_187 = arith.constant dense<0.000000e+00> : vector<2x32xf32>
    %516 = tpu.matmul %506, %283, %cst_187 {dimension_numbers = #tpu.dot_dimension_numbers<[1], [0], [0], [1], [0, 0, 1, 1], [], []>} : vector<2x32xf32>, vector<32x32xf32>, vector<2x32xf32> -> vector<2x32xf32>
    %cst_188 = arith.constant dense<0.000000e+00> : vector<2x32xf32>
    %517 = tpu.matmul %506, %285, %cst_188 {dimension_numbers = #tpu.dot_dimension_numbers<[1], [0], [0], [1], [0, 0, 1, 1], [], []>} : vector<2x32xf32>, vector<32x32xf32>, vector<2x32xf32> -> vector<2x32xf32>
    %cst_189 = arith.constant dense<0.000000e+00> : vector<2x32xf32>
    %518 = tpu.matmul %506, %287, %cst_189 {dimension_numbers = #tpu.dot_dimension_numbers<[1], [0], [0], [1], [0, 0, 1, 1], [], []>} : vector<2x32xf32>, vector<32x32xf32>, vector<2x32xf32> -> vector<2x32xf32>
    %519 = vector.broadcast %301 : vector<1x32xf32> to vector<2x32xf32>
    %520 = arith.addf %518, %519 : vector<2x32xf32>
    %521 = arith.addf %509, %516 : vector<2x32xf32>
    %522 = arith.negf %521 : vector<2x32xf32>
    %523 = math.exp %522 : vector<2x32xf32>
    %cst_190 = arith.constant 1.000000e+00 : f32
    %524 = vector.broadcast %cst_190 : f32 to vector<2x32xf32>
    %525 = arith.addf %524, %523 : vector<2x32xf32>
    %526 = arith.divf %524, %525 : vector<2x32xf32>
    %527 = arith.addf %512, %517 : vector<2x32xf32>
    %528 = arith.negf %527 : vector<2x32xf32>
    %529 = math.exp %528 : vector<2x32xf32>
    %cst_191 = arith.constant 1.000000e+00 : f32
    %530 = vector.broadcast %cst_191 : f32 to vector<2x32xf32>
    %531 = arith.addf %530, %529 : vector<2x32xf32>
    %532 = arith.divf %530, %531 : vector<2x32xf32>
    %533 = arith.mulf %526, %520 : vector<2x32xf32>
    %534 = arith.addf %515, %533 : vector<2x32xf32>
    %535 = math.tanh %534 : vector<2x32xf32>
    %cst_192 = arith.constant 1.000000e+00 : f32
    %536 = vector.broadcast %cst_192 : f32 to vector<2x32xf32>
    %537 = arith.subf %536, %532 : vector<2x32xf32>
    %538 = arith.mulf %537, %535 : vector<2x32xf32>
    %539 = arith.mulf %532, %506 : vector<2x32xf32>
    %540 = arith.addf %538, %539 : vector<2x32xf32>
    %cst_193 = arith.constant dense<0.000000e+00> : vector<2x32xf32>
    %541 = tpu.matmul %275, %277, %cst_193 {dimension_numbers = #tpu.dot_dimension_numbers<[1], [0], [0], [1], [0, 0, 1, 1], [], []>} : vector<2x32xf32>, vector<32x32xf32>, vector<2x32xf32> -> vector<2x32xf32>
    %542 = vector.broadcast %292 : vector<1x32xf32> to vector<2x32xf32>
    %543 = arith.addf %541, %542 : vector<2x32xf32>
    %cst_194 = arith.constant dense<0.000000e+00> : vector<2x32xf32>
    %544 = tpu.matmul %275, %279, %cst_194 {dimension_numbers = #tpu.dot_dimension_numbers<[1], [0], [0], [1], [0, 0, 1, 1], [], []>} : vector<2x32xf32>, vector<32x32xf32>, vector<2x32xf32> -> vector<2x32xf32>
    %545 = vector.broadcast %297 : vector<1x32xf32> to vector<2x32xf32>
    %546 = arith.addf %544, %545 : vector<2x32xf32>
    %cst_195 = arith.constant dense<0.000000e+00> : vector<2x32xf32>
    %547 = tpu.matmul %275, %281, %cst_195 {dimension_numbers = #tpu.dot_dimension_numbers<[1], [0], [0], [1], [0, 0, 1, 1], [], []>} : vector<2x32xf32>, vector<32x32xf32>, vector<2x32xf32> -> vector<2x32xf32>
    %548 = vector.broadcast %299 : vector<1x32xf32> to vector<2x32xf32>
    %549 = arith.addf %547, %548 : vector<2x32xf32>
    %cst_196 = arith.constant dense<0.000000e+00> : vector<2x32xf32>
    %550 = tpu.matmul %540, %283, %cst_196 {dimension_numbers = #tpu.dot_dimension_numbers<[1], [0], [0], [1], [0, 0, 1, 1], [], []>} : vector<2x32xf32>, vector<32x32xf32>, vector<2x32xf32> -> vector<2x32xf32>
    %cst_197 = arith.constant dense<0.000000e+00> : vector<2x32xf32>
    %551 = tpu.matmul %540, %285, %cst_197 {dimension_numbers = #tpu.dot_dimension_numbers<[1], [0], [0], [1], [0, 0, 1, 1], [], []>} : vector<2x32xf32>, vector<32x32xf32>, vector<2x32xf32> -> vector<2x32xf32>
    %cst_198 = arith.constant dense<0.000000e+00> : vector<2x32xf32>
    %552 = tpu.matmul %540, %287, %cst_198 {dimension_numbers = #tpu.dot_dimension_numbers<[1], [0], [0], [1], [0, 0, 1, 1], [], []>} : vector<2x32xf32>, vector<32x32xf32>, vector<2x32xf32> -> vector<2x32xf32>
    %553 = vector.broadcast %301 : vector<1x32xf32> to vector<2x32xf32>
    %554 = arith.addf %552, %553 : vector<2x32xf32>
    %555 = arith.addf %543, %550 : vector<2x32xf32>
    %556 = arith.negf %555 : vector<2x32xf32>
    %557 = math.exp %556 : vector<2x32xf32>
    %cst_199 = arith.constant 1.000000e+00 : f32
    %558 = vector.broadcast %cst_199 : f32 to vector<2x32xf32>
    %559 = arith.addf %558, %557 : vector<2x32xf32>
    %560 = arith.divf %558, %559 : vector<2x32xf32>
    %561 = arith.addf %546, %551 : vector<2x32xf32>
    %562 = arith.negf %561 : vector<2x32xf32>
    %563 = math.exp %562 : vector<2x32xf32>
    %cst_200 = arith.constant 1.000000e+00 : f32
    %564 = vector.broadcast %cst_200 : f32 to vector<2x32xf32>
    %565 = arith.addf %564, %563 : vector<2x32xf32>
    %566 = arith.divf %564, %565 : vector<2x32xf32>
    %567 = arith.mulf %560, %554 : vector<2x32xf32>
    %568 = arith.addf %549, %567 : vector<2x32xf32>
    %569 = math.tanh %568 : vector<2x32xf32>
    %cst_201 = arith.constant 1.000000e+00 : f32
    %570 = vector.broadcast %cst_201 : f32 to vector<2x32xf32>
    %571 = arith.subf %570, %566 : vector<2x32xf32>
    %572 = arith.mulf %571, %569 : vector<2x32xf32>
    %573 = arith.mulf %566, %540 : vector<2x32xf32>
    %574 = arith.addf %572, %573 : vector<2x32xf32>
    %c0_202 = arith.constant 0 : index
    %c0_203 = arith.constant 0 : index
    %575 = vector.load %arg9[%c0_202, %c0_203] : memref<256x32xf32, #tpu.memory_space<vmem>>, vector<256x32xf32>
    %cst_204 = arith.constant 0.000000e+00 : f32
    %576 = vector.broadcast %cst_204 : f32 to vector<2x32xf32>
    %c0_i32 = arith.constant 0 : i32
    %577 = vector.broadcast %c0_i32 : i32 to vector<2x1xi32>
    %578 = arith.cmpi sgt, %15, %577 : vector<2x1xi32>
    %579 = arith.extui %578 : vector<2x1xi1> to vector<2x1xi32>
    %580 = arith.sitofp %579 : vector<2x1xi32> to vector<2x1xf32>
    %581 = vector.broadcast %580 : vector<2x1xf32> to vector<2x32xf32>
    %582 = arith.mulf %336, %581 : vector<2x32xf32>
    %583 = vector.extract_strided_slice %575 {offsets = [0, 0], sizes = [32, 32], strides = [1, 1]} : vector<256x32xf32> to vector<32x32xf32>
    %cst_205 = arith.constant dense<0.000000e+00> : vector<2x32xf32>
    %584 = tpu.matmul %582, %583, %cst_205 {dimension_numbers = #tpu.dot_dimension_numbers<[1], [0], [0], [1], [0, 0, 1, 1], [], []>} : vector<2x32xf32>, vector<32x32xf32>, vector<2x32xf32> -> vector<2x32xf32>
    %585 = arith.addf %576, %584 : vector<2x32xf32>
    %c1_i32 = arith.constant 1 : i32
    %586 = vector.broadcast %c1_i32 : i32 to vector<2x1xi32>
    %587 = arith.cmpi sgt, %15, %586 : vector<2x1xi32>
    %588 = arith.extui %587 : vector<2x1xi1> to vector<2x1xi32>
    %589 = arith.sitofp %588 : vector<2x1xi32> to vector<2x1xf32>
    %590 = vector.broadcast %589 : vector<2x1xf32> to vector<2x32xf32>
    %591 = arith.mulf %370, %590 : vector<2x32xf32>
    %592 = vector.extract_strided_slice %575 {offsets = [32, 0], sizes = [32, 32], strides = [1, 1]} : vector<256x32xf32> to vector<32x32xf32>
    %cst_206 = arith.constant dense<0.000000e+00> : vector<2x32xf32>
    %593 = tpu.matmul %591, %592, %cst_206 {dimension_numbers = #tpu.dot_dimension_numbers<[1], [0], [0], [1], [0, 0, 1, 1], [], []>} : vector<2x32xf32>, vector<32x32xf32>, vector<2x32xf32> -> vector<2x32xf32>
    %594 = arith.addf %585, %593 : vector<2x32xf32>
    %c2_i32 = arith.constant 2 : i32
    %595 = vector.broadcast %c2_i32 : i32 to vector<2x1xi32>
    %596 = arith.cmpi sgt, %15, %595 : vector<2x1xi32>
    %597 = arith.extui %596 : vector<2x1xi1> to vector<2x1xi32>
    %598 = arith.sitofp %597 : vector<2x1xi32> to vector<2x1xf32>
    %599 = vector.broadcast %598 : vector<2x1xf32> to vector<2x32xf32>
    %600 = arith.mulf %404, %599 : vector<2x32xf32>
    %601 = vector.extract_strided_slice %575 {offsets = [64, 0], sizes = [32, 32], strides = [1, 1]} : vector<256x32xf32> to vector<32x32xf32>
    %cst_207 = arith.constant dense<0.000000e+00> : vector<2x32xf32>
    %602 = tpu.matmul %600, %601, %cst_207 {dimension_numbers = #tpu.dot_dimension_numbers<[1], [0], [0], [1], [0, 0, 1, 1], [], []>} : vector<2x32xf32>, vector<32x32xf32>, vector<2x32xf32> -> vector<2x32xf32>
    %603 = arith.addf %594, %602 : vector<2x32xf32>
    %c3_i32 = arith.constant 3 : i32
    %604 = vector.broadcast %c3_i32 : i32 to vector<2x1xi32>
    %605 = arith.cmpi sgt, %15, %604 : vector<2x1xi32>
    %606 = arith.extui %605 : vector<2x1xi1> to vector<2x1xi32>
    %607 = arith.sitofp %606 : vector<2x1xi32> to vector<2x1xf32>
    %608 = vector.broadcast %607 : vector<2x1xf32> to vector<2x32xf32>
    %609 = arith.mulf %438, %608 : vector<2x32xf32>
    %610 = vector.extract_strided_slice %575 {offsets = [96, 0], sizes = [32, 32], strides = [1, 1]} : vector<256x32xf32> to vector<32x32xf32>
    %cst_208 = arith.constant dense<0.000000e+00> : vector<2x32xf32>
    %611 = tpu.matmul %609, %610, %cst_208 {dimension_numbers = #tpu.dot_dimension_numbers<[1], [0], [0], [1], [0, 0, 1, 1], [], []>} : vector<2x32xf32>, vector<32x32xf32>, vector<2x32xf32> -> vector<2x32xf32>
    %612 = arith.addf %603, %611 : vector<2x32xf32>
    %c4_i32 = arith.constant 4 : i32
    %613 = vector.broadcast %c4_i32 : i32 to vector<2x1xi32>
    %614 = arith.cmpi sgt, %15, %613 : vector<2x1xi32>
    %615 = arith.extui %614 : vector<2x1xi1> to vector<2x1xi32>
    %616 = arith.sitofp %615 : vector<2x1xi32> to vector<2x1xf32>
    %617 = vector.broadcast %616 : vector<2x1xf32> to vector<2x32xf32>
    %618 = arith.mulf %472, %617 : vector<2x32xf32>
    %619 = vector.extract_strided_slice %575 {offsets = [128, 0], sizes = [32, 32], strides = [1, 1]} : vector<256x32xf32> to vector<32x32xf32>
    %cst_209 = arith.constant dense<0.000000e+00> : vector<2x32xf32>
    %620 = tpu.matmul %618, %619, %cst_209 {dimension_numbers = #tpu.dot_dimension_numbers<[1], [0], [0], [1], [0, 0, 1, 1], [], []>} : vector<2x32xf32>, vector<32x32xf32>, vector<2x32xf32> -> vector<2x32xf32>
    %621 = arith.addf %612, %620 : vector<2x32xf32>
    %c5_i32 = arith.constant 5 : i32
    %622 = vector.broadcast %c5_i32 : i32 to vector<2x1xi32>
    %623 = arith.cmpi sgt, %15, %622 : vector<2x1xi32>
    %624 = arith.extui %623 : vector<2x1xi1> to vector<2x1xi32>
    %625 = arith.sitofp %624 : vector<2x1xi32> to vector<2x1xf32>
    %626 = vector.broadcast %625 : vector<2x1xf32> to vector<2x32xf32>
    %627 = arith.mulf %506, %626 : vector<2x32xf32>
    %628 = vector.extract_strided_slice %575 {offsets = [160, 0], sizes = [32, 32], strides = [1, 1]} : vector<256x32xf32> to vector<32x32xf32>
    %cst_210 = arith.constant dense<0.000000e+00> : vector<2x32xf32>
    %629 = tpu.matmul %627, %628, %cst_210 {dimension_numbers = #tpu.dot_dimension_numbers<[1], [0], [0], [1], [0, 0, 1, 1], [], []>} : vector<2x32xf32>, vector<32x32xf32>, vector<2x32xf32> -> vector<2x32xf32>
    %630 = arith.addf %621, %629 : vector<2x32xf32>
    %c6_i32 = arith.constant 6 : i32
    %631 = vector.broadcast %c6_i32 : i32 to vector<2x1xi32>
    %632 = arith.cmpi sgt, %15, %631 : vector<2x1xi32>
    %633 = arith.extui %632 : vector<2x1xi1> to vector<2x1xi32>
    %634 = arith.sitofp %633 : vector<2x1xi32> to vector<2x1xf32>
    %635 = vector.broadcast %634 : vector<2x1xf32> to vector<2x32xf32>
    %636 = arith.mulf %540, %635 : vector<2x32xf32>
    %637 = vector.extract_strided_slice %575 {offsets = [192, 0], sizes = [32, 32], strides = [1, 1]} : vector<256x32xf32> to vector<32x32xf32>
    %cst_211 = arith.constant dense<0.000000e+00> : vector<2x32xf32>
    %638 = tpu.matmul %636, %637, %cst_211 {dimension_numbers = #tpu.dot_dimension_numbers<[1], [0], [0], [1], [0, 0, 1, 1], [], []>} : vector<2x32xf32>, vector<32x32xf32>, vector<2x32xf32> -> vector<2x32xf32>
    %639 = arith.addf %630, %638 : vector<2x32xf32>
    %c7_i32 = arith.constant 7 : i32
    %640 = vector.broadcast %c7_i32 : i32 to vector<2x1xi32>
    %641 = arith.cmpi sgt, %15, %640 : vector<2x1xi32>
    %642 = arith.extui %641 : vector<2x1xi1> to vector<2x1xi32>
    %643 = arith.sitofp %642 : vector<2x1xi32> to vector<2x1xf32>
    %644 = vector.broadcast %643 : vector<2x1xf32> to vector<2x32xf32>
    %645 = arith.mulf %574, %644 : vector<2x32xf32>
    %646 = vector.extract_strided_slice %575 {offsets = [224, 0], sizes = [32, 32], strides = [1, 1]} : vector<256x32xf32> to vector<32x32xf32>
    %cst_212 = arith.constant dense<0.000000e+00> : vector<2x32xf32>
    %647 = tpu.matmul %645, %646, %cst_212 {dimension_numbers = #tpu.dot_dimension_numbers<[1], [0], [0], [1], [0, 0, 1, 1], [], []>} : vector<2x32xf32>, vector<32x32xf32>, vector<2x32xf32> -> vector<2x32xf32>
    %648 = arith.addf %639, %647 : vector<2x32xf32>
    %c0_213 = arith.constant 0 : index
    %c0_214 = arith.constant 0 : index
    %649 = vector.load %arg10[%c0_213, %c0_214] : memref<1x32xf32, #tpu.memory_space<vmem>>, vector<1x32xf32>
    %650 = vector.broadcast %649 : vector<1x32xf32> to vector<2x32xf32>
    %651 = arith.addf %648, %650 : vector<2x32xf32>
    %cst_215 = arith.constant 0.000000e+00 : f32
    %652 = vector.broadcast %cst_215 : f32 to vector<2x32xf32>
    %653 = arith.maximumf %651, %652 : vector<2x32xf32>
    %c0_216 = arith.constant 0 : index
    %c0_217 = arith.constant 0 : index
    %654 = vector.load %arg11[%c0_216, %c0_217] : memref<32x8xf32, #tpu.memory_space<vmem>>, vector<32x8xf32>
    %cst_218 = arith.constant dense<0.000000e+00> : vector<2x8xf32>
    %655 = tpu.matmul %653, %654, %cst_218 {dimension_numbers = #tpu.dot_dimension_numbers<[1], [0], [0], [1], [0, 0, 1, 1], [], []>} : vector<2x32xf32>, vector<32x8xf32>, vector<2x8xf32> -> vector<2x8xf32>
    %c0_219 = arith.constant 0 : index
    %c0_220 = arith.constant 0 : index
    %656 = vector.load %arg12[%c0_219, %c0_220] : memref<1x8xf32, #tpu.memory_space<vmem>>, vector<1x8xf32>
    %657 = vector.broadcast %656 : vector<1x8xf32> to vector<2x8xf32>
    %658 = arith.addf %655, %657 : vector<2x8xf32>
    %c0_221 = arith.constant 0 : index
    %c0_222 = arith.constant 0 : index
    %659 = vector.load %arg13[%c0_221, %c0_222] : memref<2x8xf32, #tpu.memory_space<vmem>>, vector<2x8xf32>
    tpu.vector_store %arg13[%c0_221, %c0_222], %658 {strides = array<i32>} : memref<2x8xf32, #tpu.memory_space<vmem>>, vector<2x8xf32>,
    return
  }
}

</mosaic_0001>

<bundles_post_ra>
// kernel: seq_encoder_forward.1
= control target key start
LH: loop header
LB: loop body
LE: loop exit
PB: predicated region body
PF: predicated region fallthrough
CT: control target
= control target key end

     0   :  { %v3466_v2 = vmov 0   ;;  %vm107_vm0 = vcmask 1041408   ;;  %s4793_s0 = inlined_call_operand.vmem [shape: s32[16,1], index: 0, kind: input, shape index: {}]   ;;  %s4794_s1 = inlined_call_operand.vmem [shape: s32[2,1], index: 1, kind: input, shape index: {}]   ;;  %s4795_s2 = inlined_call_operand.vmem [shape: f32[250,16], index: 2, kind: input, shape index: {}]   ;;  %s4796_s3 = inlined_call_operand.vmem [shape: f32[16,32], index: 3, kind: input, shape index: {}]   ;;  %s4797_s4 = inlined_call_operand.vmem [shape: f32[1,32], index: 4, kind: input, shape index: {}]   ;;  %s4798_s5 = inlined_call_operand.vmem [shape: f32[6,32,32], index: 5, kind: input, shape index: {}]   ;;  %s4799_s6 = inlined_call_operand.vmem [shape: f32[6,32,32], index: 6, kind: input, shape index: {}]   ;;  %s4800_s7 = inlined_call_operand.vmem [shape: f32[6,1,32], index: 7, kind: input, shape index: {}]   ;;  %s4801_s8 = inlined_call_operand.vmem [shape: f32[6,1,32], index: 8, kind: input, shape index: {}]   ;;  %s4802_s9 = inlined_call_operand.vmem [shape: f32[256,32], index: 9, kind: input, shape index: {}]   ;;  %s4803_s10 = inlined_call_operand.vmem [shape: f32[1,32], index: 10, kind: input, shape index: {}]   ;;  %s4804_s11 = inlined_call_operand.vmem [shape: f32[32,8], index: 11, kind: input, shape index: {}]   ;;  %s4805_s12 = inlined_call_operand.vmem [shape: f32[1,8], index: 12, kind: input, shape index: {}]   ;;  %s4806_s13 = inlined_call_operand.hbm [shape: f32[2,8], index: 13, kind: output, shape index: {}]  }
   0x1   :  { %v45_v0 = vld [vmem:[%s4793_s0] sm:$0xff]  ;;  %3228 = vset.pattern.permute.xlu0 %v3466_v2  ;;  %v83_v3 = vld [vmem:[%s4795_s2 + $0x78] sm:$0xff]  ;;  %v82_v5 = vld [vmem:[%s4795_s2 + $0x70] sm:$0xff]  ;;  %3229 = vset.pattern.permute.xlu1 %v3466_v2 }
   0x2   :  { %v193_v1 = vld [vmem:[%s4794_s1] sm:$0x3]  ;;  %v99_v4 = vld [vmem:[%s4795_s2 + $0xf8] sm:$0x3]  ;;  %51 = vperm.xlu0 %3228, %v45_v0   ;;  %111 = vmatpush.msra.mxu0 %v83_v3  ;;  %v98_v6 = vld [vmem:[%s4795_s2 + $0xf0] sm:$0xff] }
   0x3   :  { %3048 = vmatpush.msk.msra.mxu1 %vm107_vm0, %v99_v4  ;;  %v81_v7 = vld [vmem:[%s4795_s2 + $0x68] sm:$0xff]  ;;  %3240 = vset.pattern.permute.xlu2 %v3466_v2  ;;  %vm194_vm1 = vcmp.lt.s32.totalorder %v193_v1, 8  ;;  %v80_v9 = vld [vmem:[%s4795_s2 + $0x60] sm:$0xff]  ;;  %v79_v13 = vld [vmem:[%s4795_s2 + $0x58] sm:$0xff] }
   0x4   :  { %112 = vmatpush.msra.mxu0 %v82_v5  ;;  %v97_v8 = vld [vmem:[%s4795_s2 + $0xe8] sm:$0xff]  ;;  %v96_v10 = vld [vmem:[%s4795_s2 + $0xe0] sm:$0xff]  ;;  %v3573_v12 = vsel %vm194_vm1, %v193_v1, 8  ;;  %v95_v14 = vld [vmem:[%s4795_s2 + $0xd8] sm:$0xff] }
   0x5   :  { %135 = vmatpush.msra.mxu1 %v98_v6  ;;  %v46_v11 = vld [vmem:[%s4793_s0 + $0x8] sm:$0xff]  ;;  %v78_v15 = vld [vmem:[%s4795_s2 + $0x50] sm:$0xff]  ;;  %vm2954_vm2 = vcmp.gt.s32.totalorder %v3573_v12, 7  ;;  %v76_v19 = vld [vmem:[%s4795_s2 + $0x40] sm:$0xff] }
   0x6   :  { %113 = vmatpush.msra.mxu0 %v81_v7  ;;  %v94_v16 = vld [vmem:[%s4795_s2 + $0xd0] sm:$0xff]  ;;  %v77_v17 = vld [vmem:[%s4795_s2 + $0x48] sm:$0xff] }
   0x7   :  { %136 = vmatpush.msra.mxu1 %v97_v8  ;;  %v93_v18 = vld [vmem:[%s4795_s2 + $0xc8] sm:$0xff] }
   0x8   :  { %114 = vmatpush.msra.mxu0 %v80_v9 }
   0x9   :  { %137 = vmatpush.msra.mxu1 %v96_v10 }
   0xa   :  { %54 = vperm.xlu0 %3228, %v46_v11   ;;  %115 = vmatpush.msra.mxu0 %v79_v13 }
   0xb   :  { %138 = vmatpush.msra.mxu1 %v95_v14 }
   0xc   :  { %116 = vmatpush.msra.mxu0 %v78_v15 }
   0xd   :  { %139 = vmatpush.msra.mxu1 %v94_v16 }
   0xe   :  { %18 = vsyncpa [#allocation3], 0  ;;  %117 = vmatpush.msra.mxu0 %v77_v17  ;;  %v92_v20 = vld [vmem:[%s4795_s2 + $0xc0] sm:$0xff]  ;;  %v4807_v21 = vmov 0.0   ;;  %v75_v23 = vld [vmem:[%s4795_s2 + $0x38] sm:$0xff]  ;;  %v47_v39 = vlaneseq  ;;  %vm100_vm3 = vcmask 998400  }
   0xf   :  { %v3221_v22 = vsel %vm2954_vm2, 1.0, %v4807_v21  ;;  %140 = vmatpush.msra.mxu1 %v93_v18  ;;  %v91_v24 = vld [vmem:[%s4795_s2 + $0xb8] sm:$0xff]  ;;  %v74_v25 = vld [vmem:[%s4795_s2 + $0x30] sm:$0xff]  ;;  %v73_v27 = vld [vmem:[%s4795_s2 + $0x28] sm:$0xff]  ;;  %v3468_v43 = vmov 1.0   ;;  %vm163_vm8 = vcmask 130048  }
  0x10   :  { %118 = vmatpush.msra.mxu0 %v76_v19  ;;  %v90_v26 = vld [vmem:[%s4795_s2 + $0xb0] sm:$0xff]  ;;  %v89_v28 = vld [vmem:[%s4795_s2 + $0xa8] sm:$0xff]  ;;  %v72_v29 = vld [vmem:[%s4795_s2 + $0x20] sm:$0xff]  ;;  %v48_v40 = vand.u32 127, %v47_v39  ;;  %vm239_vm9 = vcmask 261120   ;;  %s3469_s20 = smov [#allocation2]  }
  0x11   :  { %141 = vmatpush.msra.mxu1 %v92_v20  ;;  %v88_v30 = vld [vmem:[%s4795_s2 + $0xa0] sm:$0xff]  ;;  %v71_v31 = vld [vmem:[%s4795_s2 + $0x18] sm:$0xff]  ;;  %v70_v33 = vld [vmem:[%s4795_s2 + $0x10] sm:$0xff]  ;;  %s3033_s23 = sshll.u32 %s4806_s13, 4  ;;  %s3034_s23 = int_to_ptr.hbm [resolvable:$true] %s3033_s23 }
  0x12   :  { %2959 = vperm.xlu0 %3228, %v3221_v22   ;;  %119 = vmatpush.msra.mxu0 %v75_v23  ;;  %v87_v32 = vld [vmem:[%s4795_s2 + $0x98] sm:$0xff]  ;;  %v86_v34 = vld [vmem:[%s4795_s2 + $0x90] sm:$0xff]  ;;  %v69_v35 = vld [vmem:[%s4795_s2 + $0x8] sm:$0xff]  ;;  %v49_v41 = vadd.s32 128, %v48_v40 }
  0x13   :  { %142 = vmatpush.msra.mxu1 %v91_v24  ;;  %v85_v36 = vld [vmem:[%s4795_s2 + $0x88] sm:$0xff]  ;;  %v68_v37 = vld [vmem:[%s4795_s2] sm:$0xff]  ;;  %v3056_v49 = vld [vmem:[%s4798_s5 + $0x38] sm:$0xff] }
  0x14   :  { %120 = vmatpush.msra.mxu0 %v74_v25  ;;  %v84_v38 = vld [vmem:[%s4795_s2 + $0x80] sm:$0xff]  ;;  %v158_v47 = vld [vmem:[%s4796_s3 + $0x8] sm:$0xff]  ;;  %v199_v50 = vld [vmem:[%s4798_s5 + $0x18] sm:$0xff] }
  0x15   :  { %143 = vmatpush.msra.mxu1 %v90_v26  ;;  %184 = vmatpush.msra.mxu2 %v158_v47  ;;  %v157_v48 = vld [vmem:[%s4796_s3] sm:$0xff]  ;;  %v198_v51 = vld [vmem:[%s4798_s5 + $0x10] sm:$0xff]  ;;  %v197_v59 = vld [vmem:[%s4798_s5 + $0x8] sm:$0xff] }
  0x16   :  { %121 = vmatpush.msra.mxu0 %v73_v27  ;;  %258 = vmatpush.msra.mxu3 %v199_v50  ;;  %v3055_v52 = vld [vmem:[%s4798_s5 + $0x30] sm:$0xff]  ;;  %v3054_v60 = vld [vmem:[%s4798_s5 + $0x28] sm:$0xff]  ;;  %v196_v61 = vld [vmem:[%s4798_s5] sm:$0xff] }
  0x17   :  { %144 = vmatpush.msra.mxu1 %v89_v28  ;;  %185 = vmatpush.msra.mxu2 %v157_v48  ;;  %v3053_v62 = vld [vmem:[%s4798_s5 + $0x20] sm:$0xff]  ;;  %v3060_v63 = vld [vmem:[%s4798_s5 + $0x58] sm:$0xff]  ;;  %v3059_v0 = vld [vmem:[%s4798_s5 + $0x50] sm:$0xff] }
  0x18   :  { %122 = vmatpush.msra.mxu0 %v72_v29  ;;  %259 = vmatpush.msra.mxu3 %v198_v51  ;;  %v3690_v1 = vld [vmem:[%s4799_s6 + $0x18] sm:$0xff]  ;;  %v3058_v2 = vld [vmem:[%s4798_s5 + $0x48] sm:$0xff]  ;;  %v3700_v3 = vld [vmem:[%s4799_s6 + $0x10] sm:$0xff] }
  0x19   :  { %145 = vmatpush.msra.mxu1 %v88_v30  ;;  %284 = vmatpush.msrb.mxu2 %v3056_v49  ;;  %v3057_v4 = vld [vmem:[%s4798_s5 + $0x40] sm:$0xff]  ;;  %v3709_v5 = vld [vmem:[%s4799_s6 + $0x8] sm:$0xff]  ;;  %v3724_v7 = vld [vmem:[%s4799_s6 + $0x38] sm:$0xff] }
  0x1a   :  { %123 = vmatpush.msra.mxu0 %v71_v31  ;;  %260 = vmatpush.msra.mxu3 %v197_v59  ;;  %v3714_v6 = vld [vmem:[%s4799_s6] sm:$0xff]  ;;  %v3731_v8 = vld [vmem:[%s4799_s6 + $0x30] sm:$0xff]  ;;  %v3738_v9 = vld [vmem:[%s4799_s6 + $0x28] sm:$0xff] }
  0x1b   :  { %146 = vmatpush.msra.mxu1 %v87_v32  ;;  %285 = vmatpush.msrb.mxu2 %v3055_v52  ;;  %v3246_v10 = vld [vmem:[%s4797_s4] ss:$0 sm:$0xff]  ;;  %v3757_v15 = vld [vmem:[%s4799_s6 + $0x58] sm:$0xff]  ;;  %v3762_v16 = vld [vmem:[%s4799_s6 + $0x50] sm:$0xff] }
  0x1c   :  { %124 = vmatpush.msra.mxu0 %v70_v33  ;;  %261 = vmatpush.msra.mxu3 %v196_v61  ;;  %v3748_v11 = vld [vmem:[%s4799_s6 + $0x20] sm:$0xff]  ;;  %v3769_v17 = vld [vmem:[%s4799_s6 + $0x48] sm:$0xff] }
  0x1d   :  { %147 = vmatpush.msra.mxu1 %v86_v34  ;;  %286 = vmatpush.msrb.mxu2 %v3054_v60  ;;  %v3777_v18 = vld [vmem:[%s4799_s6 + $0x40] sm:$0xff] }
  0x1e   :  { %125 = vmatpush.msra.mxu0 %v69_v35  ;;  %310 = vmatpush.msrb.mxu3 %v3060_v63  ;;  %v224_v22 = vld [vmem:[%s4800_s7] sm:$0x1]  ;;  %v3069_v25 = vld [vmem:[%s4800_s7 + $0x1] sm:$0x1] }
  0x1f   :  { %148 = vmatpush.msra.mxu1 %v85_v36  ;;  %287 = vmatpush.msrb.mxu2 %v3053_v62  ;;  %v225_v23 = vld [vmem:[%s4801_s8] sm:$0x1]  ;;  %v3070_v26 = vld [vmem:[%s4801_s8 + $0x1] sm:$0x1] }
  0x20   :  { %126 = vmatpush.msra.mxu0 %v68_v37  ;;  %311 = vmatpush.msrb.mxu3 %v3059_v0  ;;  %v226_v28 = vadd.f32 %v225_v23, %v224_v22  ;;  %v231_v29 = vadd.f32 %v3070_v26, %v3069_v25 }
  0x21   :  { %149 = vmatpush.msra.mxu1 %v84_v38 }
  0x22   :  { %449 = vmatpush.msrb.mxu0 %v3690_v1  ;;  %312 = vmatpush.msrb.mxu3 %v3058_v2  ;;  %v237_v30 = vperm.slane %v226_v28, 0  ;;  %v270_v31 = vperm.slane %v231_v29, 0 }
  0x23   :  { %469 = vmatpush.msrb.mxu1 %v3724_v7 }
  0x24   :  { %450 = vmatpush.msrb.mxu0 %v3700_v3  ;;  %313 = vmatpush.msrb.mxu3 %v3057_v4 }
  0x25   :  { %470 = vmatpush.msrb.mxu1 %v3731_v8 }
  0x26   :  { %451 = vmatpush.msrb.mxu0 %v3709_v5 }
  0x27   :  { %471 = vmatpush.msrb.mxu1 %v3738_v9 }
  0x28   :  { %452 = vmatpush.msrb.mxu0 %v3714_v6 }
  0x29   :  { %472 = vmatpush.msrb.mxu1 %v3748_v11 }
  0x74   :  { %v52_v42 = vpop.permute.xlu0 %51 }
  0x75   :  { %vm57_vm4 = vcmp.eq.s32.totalorder %v49_v41, %v52_v42  ;;  %vm56_vm5 = vcmp.eq.s32.totalorder %v48_v40, %v52_v42 }
  0x76   :  { %3046 = vmatmul.msk.f32.vlgmr.msra.gmra.mxu0 %vm56_vm5, %v3468_v43  ;;  %v3043_v44 = vsel %vm57_vm4, 1.0, %v4807_v21 }
  0x77   :  { %3049 = vmatmul.msk.f32.vlgmr.msra.gmra.mxu1 %vm100_vm3, %v3043_v44  ;;  %591 = vmatpush.msra.mxu0 %v3724_v7 }
  0x78   :  { %611 = vmatpush.msra.mxu1 %v3757_v15 }
  0x79   :  { %592 = vmatpush.msra.mxu0 %v3731_v8 }
  0x7a   :  { %612 = vmatpush.msra.mxu1 %v3762_v16 }
  0x7b   :  { %593 = vmatpush.msra.mxu0 %v3738_v9 }
  0x7c   :  { %v55_v45 = vpop.permute.xlu0 %54  ;;  %613 = vmatpush.msra.mxu1 %v3769_v17 }
  0x7d   :  { %vm59_vm6 = vcmp.eq.s32.totalorder %v49_v41, %v55_v45  ;;  %vm58_vm7 = vcmp.eq.s32.totalorder %v48_v40, %v55_v45  ;;  %594 = vmatpush.msra.mxu0 %v3748_v11  ;;  %v3247_v41 = vld [vmem:[%s4800_s7 + $0x2] ss:$0 sm:$0xff] }
  0x7e   :  { %3047 = vmatmul.msk.f32.gmra.mxu0 %vm58_vm7, %v3468_v43  ;;  %v3045_v46 = vsel %vm59_vm6, 1.0, %v4807_v21  ;;  %614 = vmatpush.msra.mxu1 %v3777_v18 }
  0x7f   :  { %3050 = vmatmul.msk.f32.gmra.mxu1 %vm100_vm3, %v3045_v46 }
  0xf3   :  { %v128_v53 = vpop.f32.mrf.mxu0 }
  0xf4   :  { %v151_v54 = vpop.f32.mrf.mxu1 }
  0xf5   :  { %v152_v55 = vadd.f32 %v151_v54, %v128_v53 }
  0xf7   :  { %3051 = vmatmul.msk.f32.vlgmr.msra.gmra.mxu2 %vm163_vm8, %v152_v55  ;;  %v3839_v55 = vld [vmem:[%s4801_s8 + $0x2] ss:$0 sm:$0xff] }
  0xf8   :  { %336 = vmatpush.msra.mxu2 %v3690_v1 }
  0xfa   :  { %337 = vmatpush.msra.mxu2 %v3700_v3 }
  0xfb   :  { %v131_v56 = vpop.f32.mrf.mxu0 }
  0xfc   :  { %v154_v57 = vpop.f32.mrf.mxu1  ;;  %338 = vmatpush.msra.mxu2 %v3709_v5 }
  0xfd   :  { %v155_v58 = vadd.f32 %v154_v57, %v131_v56 }
  0xfe   :  { %339 = vmatpush.msra.mxu2 %v3714_v6 }
  0xff   :  { %3052 = vmatmul.msk.f32.gmra.mxu2 %vm163_vm8, %v155_v58 }
 0x17a   :  { %v187_v13 = vpop.f32.mrf.mxu2 }
 0x17b   :  { %v188_v14 = vadd.f32 %v3246_v10, %v187_v13 }
 0x17d   :  { %3073 = vmatmul.msk.f32.vlgmr.msra.gmra.mxu3 %vm239_vm9, %v188_v14  ;;  %3075 = vmatmul.msk.f32.vlgmr.msrb.gmra.mxu2 %vm239_vm9, %v188_v14 }
 0x17e   :  { %356 = vmatpush.msra.mxu3 %v3724_v7  ;;  %379 = vmatpush.msrb.mxu2 %v3757_v15 }
 0x180   :  { %357 = vmatpush.msra.mxu3 %v3731_v8  ;;  %380 = vmatpush.msrb.mxu2 %v3762_v16 }
 0x182   :  { %v190_v19 = vpop.f32.mrf.mxu2  ;;  %358 = vmatpush.msra.mxu3 %v3738_v9  ;;  %381 = vmatpush.msrb.mxu2 %v3769_v17 }
 0x183   :  { %v191_v20 = vadd.f32 %v3246_v10, %v190_v19 }
 0x184   :  { %359 = vmatpush.msra.mxu3 %v3748_v11  ;;  %382 = vmatpush.msrb.mxu2 %v3777_v18 }
 0x185   :  { %3074 = vmatmul.msk.f32.gmra.mxu3 %vm239_vm9, %v191_v20  ;;  %3076 = vmatmul.msk.f32.gmra.mxu2 %vm239_vm9, %v191_v20 }
 0x18d   :  { %3077 = vmatmul.msk.f32.vlgmr.msrb.gmra.mxu3 %vm239_vm9, %v188_v14  ;;  %340 = vmatmul.f32.vlgmr.msra.gmra.mxu2 %v4807_v21 }
 0x18e   :  { %489 = vmatpush.msrb.mxu3 %v3757_v15  ;;  %571 = vmatpush.msra.mxu2 %v3690_v1 }
 0x190   :  { %490 = vmatpush.msrb.mxu3 %v3762_v16  ;;  %572 = vmatpush.msra.mxu2 %v3700_v3 }
 0x192   :  { %491 = vmatpush.msrb.mxu3 %v3769_v17  ;;  %573 = vmatpush.msra.mxu2 %v3709_v5 }
 0x194   :  { %492 = vmatpush.msrb.mxu3 %v3777_v18  ;;  %574 = vmatpush.msra.mxu2 %v3714_v6 }
 0x195   :  { %3078 = vmatmul.msk.f32.gmra.mxu3 %vm239_vm9, %v191_v20  ;;  %383 = vmatmul.f32.vlgmr.msrb.gmra.mxu2 %v4807_v21 }
 0x196   :  { %713 = vmatpush.msrb.mxu2 %v3724_v7 }
 0x198   :  { %714 = vmatpush.msrb.mxu2 %v3731_v8 }
 0x19a   :  { %715 = vmatpush.msrb.mxu2 %v3738_v9 }
 0x19c   :  { %716 = vmatpush.msrb.mxu2 %v3748_v11 }
 0x19d   :  { %360 = vmatmul.f32.vlgmr.msra.gmra.mxu3 %v4807_v21 }
 0x19e   :  { %693 = vmatpush.msra.mxu3 %v3690_v1 }
 0x1a0   :  { %694 = vmatpush.msra.mxu3 %v3700_v3 }
 0x1a2   :  { %695 = vmatpush.msra.mxu3 %v3709_v5 }
 0x1a4   :  { %696 = vmatpush.msra.mxu3 %v3714_v6 }
 0x200   :  { %v263_v24 = vpop.f32.mrf.mxu3  ;;  %v289_v27 = vpop.f32.mrf.mxu2 }
 0x201   :  { %v3825_v36 = vadd.f32 %v263_v24, %v237_v30  ;;  %v3833_v46 = vadd.f32 %v289_v27, %v270_v31 }
 0x208   :  { %v266_v32 = vpop.f32.mrf.mxu3  ;;  %v292_v33 = vpop.f32.mrf.mxu2 }
 0x209   :  { %v3821_v34 = vadd.f32 %v266_v32, %v237_v30  ;;  %v3823_v35 = vadd.f32 %v292_v33, %v270_v31 }
 0x210   :  { %v315_v37 = vpop.f32.mrf.mxu3  ;;  %v341_v38 = vpop.f32.mrf.mxu2 }
 0x211   :  { %v387_v39 = vadd.f32 %v341_v38, %v3825_v36  ;;  %v3842_v10 = vadd.f32 %v3247_v41, %v315_v37 }
 0x213   :  { %v3079_v40 = vmul.f32 -1.442695, %v387_v39 }
 0x215   :  { %3253 = vpow2.f32 %v3079_v40 }
 0x218   :  { %v318_v42 = vpop.f32.mrf.mxu3  ;;  %v384_v58 = vpop.f32.mrf.mxu2 }
 0x219   :  { %v3831_v43 = vadd.f32 %v3247_v41, %v318_v42  ;;  %v385_v63 = vadd.f32 %v3839_v55, %v384_v58 }
 0x21b   :  { %v3254_v44 = vpop.eup %3253 }
 0x21c   :  { %v391_v45 = vadd.f32 1.0, %v3254_v44 }
 0x21e   :  { %3255 = vrcp.f32 %v391_v45  ;;  %v403_v54 = vand.u32 2147483648, %v391_v45  ;;  %v401_v56 = vand.u32 2147483647, %v391_v45  ;;  %vm397_vm11 = vweird.f32 %v391_v45 }
 0x220   :  { %v361_v47 = vpop.f32.mrf.mxu3  ;;  %v404_v62 = vor.u32 1.1754944e-38, %v403_v54  ;;  %vm402_vm13 = vcmp.eq.f32.partialorder %v401_v56, 8.507059e+37 }
 0x221   :  { %v407_v48 = vadd.f32 %v361_v47, %v3833_v46 }
 0x223   :  { %v3080_v49 = vmul.f32 -1.442695, %v407_v48 }
 0x224   :  { %v3256_v50 = vpop.eup %3255 }
 0x225   :  { %3257 = vpow2.f32 %v3080_v49  ;;  %v393_v51 = vmul.f32 %v3256_v50, %v391_v45  ;;  %vm398_vm10 = vweird.f32 %v3256_v50 }
 0x226   :  { %vm399_vm12 = vmor %vm397_vm11, %vm398_vm10 }
 0x227   :  { %v394_v52 = vsub.f32 1.0, %v393_v51 }
 0x229   :  { %v395_v53 = vmul.f32 %v3256_v50, %v394_v52 }
 0x22b   :  { %v3258_v57 = vpop.eup %3257  ;;  %v396_v59 = vadd.f32 %v3256_v50, %v395_v53 }
 0x22c   :  { %v411_v60 = vadd.f32 1.0, %v3258_v57 }
 0x22d   :  { %v400_v61 = vsel %vm399_vm12, %v3256_v50, %v396_v59 }
 0x22e   :  { %3259 = vrcp.f32 %v411_v60  ;;  %v405_v0 = vsel %vm402_vm13, %v404_v62, %v400_v61  ;;  %v423_v20 = vand.u32 2147483648, %v411_v60  ;;  %v421_v23 = vand.u32 2147483647, %v411_v60 }
 0x22f   :  { %v427_v2 = vmul.f32 %v405_v0, %v385_v63  ;;  %vm417_vm15 = vweird.f32 %v411_v60 }
 0x230   :  { %v424_v25 = vor.u32 1.1754944e-38, %v423_v20  ;;  %vm422_vm1 = vcmp.eq.f32.partialorder %v421_v23, 8.507059e+37 }
 0x231   :  { %v428_v14 = vadd.f32 %v427_v2, %v3842_v10 }
 0x233   :  { %3261 = vtanh.f32 %v428_v14 }
 0x234   :  { %v3260_v4 = vpop.eup %3259 }
 0x235   :  { %v413_v13 = vmul.f32 %v3260_v4, %v411_v60  ;;  %vm418_vm14 = vweird.f32 %v3260_v4 }
 0x236   :  { %vm419_vm0 = vmor %vm417_vm15, %vm418_vm14 }
 0x237   :  { %v414_v19 = vsub.f32 1.0, %v413_v13 }
 0x239   :  { %v415_v22 = vmul.f32 %v3260_v4, %v414_v19  ;;  %v3262_v29 = vpop.eup %3261 }
 0x23b   :  { %v416_v24 = vadd.f32 %v3260_v4, %v415_v22 }
 0x23d   :  { %v420_v26 = vsel %vm419_vm0, %v3260_v4, %v416_v24 }
 0x23e   :  { %v425_v27 = vsel %vm422_vm1, %v424_v25, %v420_v26 }
 0x23f   :  { %v430_v28 = vsub.f32 1.0, %v425_v27  ;;  %v432_v31 = vmul.f32 0.0, %v425_v27 }
 0x241   :  { %v431_v30 = vmul.f32 %v3262_v29, %v430_v28 }
 0x243   :  { %v3845_v32 = vadd.f32 %v432_v31, %v431_v30 }
 0x245   :  { %3081 = vmatmul.msk.f32.vlgmr.msrb.gmra.mxu0 %vm239_vm9, %v3845_v32  ;;  %3082 = vmatmul.msk.f32.vlgmr.msrb.gmra.mxu1 %vm239_vm9, %v3845_v32  ;;  %v551_v28 = vrot.slane %v3845_v32, 6 }
 0x246   :  { %3083 = vmatmul.msk.f32.vlgmr.msrb.gmra.mxu3 %vm239_vm9, %v3845_v32  ;;  %733 = vmatpush.msrb.mxu0 %v3757_v15 }
 0x247   :  { %815 = vmatpush.msrb.mxu1 %v3690_v1  ;;  %835 = vmatpush.msrb.mxu3 %v3724_v7 }
 0x248   :  { %734 = vmatpush.msrb.mxu0 %v3762_v16 }
 0x249   :  { %816 = vmatpush.msrb.mxu1 %v3700_v3  ;;  %836 = vmatpush.msrb.mxu3 %v3731_v8 }
 0x24a   :  { %735 = vmatpush.msrb.mxu0 %v3769_v17 }
 0x24b   :  { %817 = vmatpush.msrb.mxu1 %v3709_v5  ;;  %837 = vmatpush.msrb.mxu3 %v3738_v9 }
 0x24c   :  { %736 = vmatpush.msrb.mxu0 %v3777_v18 }
 0x24d   :  { %818 = vmatpush.msrb.mxu1 %v3714_v6  ;;  %838 = vmatpush.msrb.mxu3 %v3748_v11 }
 0x2c2   :  { %v454_v33 = vpop.f32.mrf.mxu0  ;;  %v474_v37 = vpop.f32.mrf.mxu1 }
 0x2c3   :  { %v498_v38 = vrot.slane %v454_v33, 6  ;;  %v521_v39 = vrot.slane %v474_v37, 6 }
 0x2c5   :  { %v500_v40 = vadd.f32 %v498_v38, %v3825_v36  ;;  %v523_v41 = vadd.f32 %v521_v39, %v3833_v46 }
 0x2c7   :  { %v3084_v42 = vmul.f32 -1.442695, %v500_v40  ;;  %v3085_v44 = vmul.f32 -1.442695, %v523_v41 }
 0x2c9   :  { %3263 = vpow2.f32 %v3084_v42  ;;  %v494_v54 = vpop.f32.mrf.mxu3 }
 0x2ca   :  { %3265 = vpow2.f32 %v3085_v44  ;;  %v495_v59 = vadd.f32 %v3839_v55, %v494_v54 }
 0x2cc   :  { %v544_v4 = vrot.slane %v495_v59, 6 }
 0x2cf   :  { %v3264_v45 = vpop.eup %3263 }
 0x2d0   :  { %v3266_v47 = vpop.eup %3265  ;;  %v504_v48 = vadd.f32 1.0, %v3264_v45 }
 0x2d1   :  { %v527_v49 = vadd.f32 1.0, %v3266_v47 }
 0x2d2   :  { %3267 = vrcp.f32 %v504_v48  ;;  %v516_v58 = vand.u32 2147483648, %v504_v48  ;;  %v514_v61 = vand.u32 2147483647, %v504_v48  ;;  %vm510_vm3 = vweird.f32 %v504_v48 }
 0x2d3   :  { %3269 = vrcp.f32 %v527_v49  ;;  %v539_v19 = vand.u32 2147483648, %v527_v49  ;;  %vm533_vm7 = vweird.f32 %v527_v49  ;;  %v537_v22 = vand.u32 2147483647, %v527_v49 }
 0x2d4   :  { %v517_v0 = vor.u32 1.1754944e-38, %v516_v58  ;;  %vm515_vm5 = vcmp.eq.f32.partialorder %v514_v61, 8.507059e+37 }
 0x2d5   :  { %v540_v25 = vor.u32 1.1754944e-38, %v539_v19  ;;  %vm538_vm10 = vcmp.eq.f32.partialorder %v537_v22, 8.507059e+37 }
 0x2d8   :  { %v3268_v50 = vpop.eup %3267 }
 0x2d9   :  { %v3270_v51 = vpop.eup %3269  ;;  %v506_v52 = vmul.f32 %v3268_v50, %v504_v48  ;;  %vm511_vm2 = vweird.f32 %v3268_v50 }
 0x2da   :  { %v529_v53 = vmul.f32 %v3270_v51, %v527_v49  ;;  %vm512_vm4 = vmor %vm510_vm3, %vm511_vm2  ;;  %vm534_vm6 = vweird.f32 %v3270_v51 }
 0x2db   :  { %v507_v56 = vsub.f32 1.0, %v506_v52  ;;  %vm535_vm8 = vmor %vm533_vm7, %vm534_vm6 }
 0x2dc   :  { %v530_v57 = vsub.f32 1.0, %v529_v53 }
 0x2dd   :  { %v508_v60 = vmul.f32 %v3268_v50, %v507_v56 }
 0x2de   :  { %v531_v62 = vmul.f32 %v3270_v51, %v530_v57 }
 0x2df   :  { %v509_v63 = vadd.f32 %v3268_v50, %v508_v60 }
 0x2e0   :  { %v532_v14 = vadd.f32 %v3270_v51, %v531_v62 }
 0x2e1   :  { %v513_v2 = vsel %vm512_vm4, %v3268_v50, %v509_v63 }
 0x2e2   :  { %v518_v13 = vsel %vm515_vm5, %v517_v0, %v513_v2  ;;  %v536_v24 = vsel %vm535_vm8, %v3270_v51, %v532_v14 }
 0x2e3   :  { %v546_v20 = vmul.f32 %v544_v4, %v518_v13  ;;  %v541_v26 = vsel %vm538_vm10, %v540_v25, %v536_v24 }
 0x2e4   :  { %v549_v27 = vsub.f32 1.0, %v541_v26  ;;  %v553_v31 = vmul.f32 %v551_v28, %v541_v26 }
 0x2e5   :  { %v547_v23 = vadd.f32 %v546_v20, %v3842_v10 }
 0x2e7   :  { %3271 = vtanh.f32 %v547_v23 }
 0x2ed   :  { %v3272_v29 = vpop.eup %3271 }
 0x2ee   :  { %v550_v30 = vmul.f32 %v3272_v29, %v549_v27 }
 0x2f0   :  { %v3870_v33 = vadd.f32 %v553_v31, %v550_v30 }
 0x2f2   :  { %v3873_v37 = vrot.slane %v3870_v33, 2  ;;  %v673_v29 = vrot.slane %v3870_v33, 6 }
 0x2f4   :  { %3086 = vmatmul.msk.f32.vlgmr.msra.gmra.mxu2 %vm239_vm9, %v3873_v37  ;;  %3087 = vmatmul.msk.f32.vlgmr.msra.gmra.mxu0 %vm239_vm9, %v3873_v37 }
 0x2f5   :  { %3088 = vmatmul.msk.f32.vlgmr.msra.gmra.mxu1 %vm239_vm9, %v3873_v37  ;;  %855 = vmatpush.msra.mxu2 %v3757_v15 }
 0x2f6   :  { %926 = vmatpush.msra.mxu0 %v3690_v1  ;;  %946 = vmatpush.msra.mxu1 %v3724_v7 }
 0x2f7   :  { %856 = vmatpush.msra.mxu2 %v3762_v16 }
 0x2f8   :  { %927 = vmatpush.msra.mxu0 %v3700_v3  ;;  %947 = vmatpush.msra.mxu1 %v3731_v8 }
 0x2f9   :  { %857 = vmatpush.msra.mxu2 %v3769_v17 }
 0x2fa   :  { %928 = vmatpush.msra.mxu0 %v3709_v5  ;;  %948 = vmatpush.msra.mxu1 %v3738_v9 }
 0x2fb   :  { %858 = vmatpush.msra.mxu2 %v3777_v18 }
 0x2fc   :  { %929 = vmatpush.msra.mxu0 %v3714_v6  ;;  %949 = vmatpush.msra.mxu1 %v3748_v11 }
 0x371   :  { %v596_v38 = vpop.f32.mrf.mxu0 }
 0x372   :  { %v643_v39 = vrot.slane %v596_v38, 4  ;;  %v616_v58 = vpop.f32.mrf.mxu1 }
 0x373   :  { %v617_v61 = vadd.f32 %v3839_v55, %v616_v58 }
 0x374   :  { %v645_v40 = vadd.f32 %v643_v39, %v3833_v46 }
 0x375   :  { %v666_v13 = vrot.slane %v617_v61, 4 }
 0x376   :  { %v3090_v41 = vmul.f32 -1.442695, %v645_v40 }
 0x377   :  { %v576_v42 = vpop.f32.mrf.mxu2 }
 0x378   :  { %3273 = vpow2.f32 %v3090_v41  ;;  %v620_v44 = vrot.slane %v576_v42, 4 }
 0x37a   :  { %v622_v45 = vadd.f32 %v620_v44, %v3825_v36 }
 0x37c   :  { %v3089_v47 = vmul.f32 -1.442695, %v622_v45 }
 0x37e   :  { %v3274_v48 = vpop.eup %3273  ;;  %3275 = vpow2.f32 %v3089_v47 }
 0x37f   :  { %v649_v49 = vadd.f32 1.0, %v3274_v48 }
 0x381   :  { %3277 = vrcp.f32 %v649_v49  ;;  %v661_v22 = vand.u32 2147483648, %v649_v49  ;;  %vm655_vm0 = vweird.f32 %v649_v49  ;;  %v659_v24 = vand.u32 2147483647, %v649_v49 }
 0x383   :  { %v662_v27 = vor.u32 1.1754944e-38, %v661_v22  ;;  %vm660_vm2 = vcmp.eq.f32.partialorder %v659_v24, 8.507059e+37 }
 0x384   :  { %v3276_v50 = vpop.eup %3275 }
 0x385   :  { %v626_v51 = vadd.f32 1.0, %v3276_v50 }
 0x387   :  { %3279 = vrcp.f32 %v626_v51  ;;  %v3278_v52 = vpop.eup %3277  ;;  %v638_v60 = vand.u32 2147483648, %v626_v51  ;;  %v636_v63 = vand.u32 2147483647, %v626_v51  ;;  %vm632_vm12 = vweird.f32 %v626_v51 }
 0x388   :  { %v651_v53 = vmul.f32 %v3278_v52, %v649_v49  ;;  %vm656_vm15 = vweird.f32 %v3278_v52 }
 0x389   :  { %v639_v4 = vor.u32 1.1754944e-38, %v638_v60  ;;  %vm637_vm14 = vcmp.eq.f32.partialorder %v636_v63, 8.507059e+37  ;;  %vm657_vm1 = vmor %vm655_vm0, %vm656_vm15 }
 0x38a   :  { %v652_v57 = vsub.f32 1.0, %v651_v53 }
 0x38c   :  { %v653_v0 = vmul.f32 %v3278_v52, %v652_v57 }
 0x38d   :  { %v3280_v54 = vpop.eup %3279 }
 0x38e   :  { %v628_v56 = vmul.f32 %v3280_v54, %v626_v51  ;;  %vm633_vm11 = vweird.f32 %v3280_v54  ;;  %v654_v19 = vadd.f32 %v3278_v52, %v653_v0 }
 0x38f   :  { %vm634_vm13 = vmor %vm632_vm12, %vm633_vm11 }
 0x390   :  { %v629_v59 = vsub.f32 1.0, %v628_v56  ;;  %v658_v26 = vsel %vm657_vm1, %v3278_v52, %v654_v19 }
 0x391   :  { %v663_v28 = vsel %vm660_vm2, %v662_v27, %v658_v26 }
 0x392   :  { %v630_v62 = vmul.f32 %v3280_v54, %v629_v59  ;;  %v671_v30 = vsub.f32 1.0, %v663_v28  ;;  %v675_v39 = vmul.f32 %v673_v29, %v663_v28 }
 0x394   :  { %v631_v2 = vadd.f32 %v3280_v54, %v630_v62 }
 0x396   :  { %v635_v14 = vsel %vm634_vm13, %v3280_v54, %v631_v2 }
 0x397   :  { %v640_v20 = vsel %vm637_vm14, %v639_v4, %v635_v14 }
 0x398   :  { %v668_v23 = vmul.f32 %v666_v13, %v640_v20 }
 0x39a   :  { %v669_v25 = vadd.f32 %v668_v23, %v3842_v10 }
 0x39c   :  { %3281 = vtanh.f32 %v669_v25 }
 0x3a2   :  { %v3282_v31 = vpop.eup %3281 }
 0x3a3   :  { %v672_v38 = vmul.f32 %v3282_v31, %v671_v30 }
 0x3a5   :  { %v3898_v40 = vadd.f32 %v675_v39, %v672_v38 }
 0x3a7   :  { %v3901_v41 = vrot.slane %v3898_v40, 4  ;;  %v795_v30 = vrot.slane %v3898_v40, 6 }
 0x3a9   :  { %3091 = vmatmul.msk.f32.vlgmr.msra.gmra.mxu3 %vm239_vm9, %v3901_v41  ;;  %3092 = vmatmul.msk.f32.vlgmr.msrb.gmra.mxu2 %vm239_vm9, %v3901_v41 }
 0x3aa   :  { %3093 = vmatmul.msk.f32.vlgmr.msrb.gmra.mxu0 %vm239_vm9, %v3901_v41  ;;  %966 = vmatpush.msra.mxu3 %v3757_v15 }
 0x3ab   :  { %1048 = vmatpush.msrb.mxu2 %v3690_v1  ;;  %1068 = vmatpush.msrb.mxu0 %v3724_v7 }
 0x3ac   :  { %967 = vmatpush.msra.mxu3 %v3762_v16 }
 0x3ad   :  { %1049 = vmatpush.msrb.mxu2 %v3700_v3  ;;  %1069 = vmatpush.msrb.mxu0 %v3731_v8 }
 0x3ae   :  { %968 = vmatpush.msra.mxu3 %v3769_v17 }
 0x3af   :  { %1050 = vmatpush.msrb.mxu2 %v3709_v5  ;;  %1070 = vmatpush.msrb.mxu0 %v3738_v9 }
 0x3b0   :  { %969 = vmatpush.msra.mxu3 %v3777_v18 }
 0x3b1   :  { %1051 = vmatpush.msrb.mxu2 %v3714_v6  ;;  %1071 = vmatpush.msrb.mxu0 %v3748_v11 }
 0x427   :  { %v738_v59 = vpop.f32.mrf.mxu0 }
 0x42c   :  { %v698_v33 = vpop.f32.mrf.mxu3  ;;  %v718_v42 = vpop.f32.mrf.mxu2 }
 0x42d   :  { %v742_v44 = vrot.slane %v698_v33, 2  ;;  %v765_v45 = vrot.slane %v718_v42, 2 }
 0x42f   :  { %v744_v47 = vadd.f32 %v742_v44, %v3825_v36  ;;  %v767_v48 = vadd.f32 %v765_v45, %v3833_v46  ;;  %v739_v46 = vadd.f32 %v3839_v55, %v738_v59 }
 0x431   :  { %v3094_v49 = vmul.f32 -1.442695, %v744_v47  ;;  %v3095_v50 = vmul.f32 -1.442695, %v767_v48  ;;  %v788_v14 = vrot.slane %v739_v46, 2 }
 0x433   :  { %3283 = vpow2.f32 %v3094_v49 }
 0x434   :  { %3285 = vpow2.f32 %v3095_v50 }
 0x439   :  { %v3284_v51 = vpop.eup %3283 }
 0x43a   :  { %v3286_v52 = vpop.eup %3285  ;;  %v748_v53 = vadd.f32 1.0, %v3284_v51 }
 0x43b   :  { %v771_v54 = vadd.f32 1.0, %v3286_v52 }
 0x43c   :  { %3287 = vrcp.f32 %v748_v53  ;;  %v760_v62 = vand.u32 2147483648, %v748_v53  ;;  %v758_v0 = vand.u32 2147483647, %v748_v53  ;;  %vm754_vm4 = vweird.f32 %v748_v53 }
 0x43d   :  { %3289 = vrcp.f32 %v771_v54  ;;  %v783_v24 = vand.u32 2147483648, %v771_v54  ;;  %vm777_vm8 = vweird.f32 %v771_v54  ;;  %v781_v25 = vand.u32 2147483647, %v771_v54 }
 0x43e   :  { %v761_v13 = vor.u32 1.1754944e-38, %v760_v62  ;;  %vm759_vm6 = vcmp.eq.f32.partialorder %v758_v0, 8.507059e+37 }
 0x43f   :  { %v784_v28 = vor.u32 1.1754944e-38, %v783_v24  ;;  %vm782_vm11 = vcmp.eq.f32.partialorder %v781_v25, 8.507059e+37 }
 0x442   :  { %v3288_v56 = vpop.eup %3287 }
 0x443   :  { %v3290_v57 = vpop.eup %3289  ;;  %v750_v58 = vmul.f32 %v3288_v56, %v748_v53  ;;  %vm755_vm3 = vweird.f32 %v3288_v56 }
 0x444   :  { %v773_v60 = vmul.f32 %v3290_v57, %v771_v54  ;;  %vm756_vm5 = vmor %vm754_vm4, %vm755_vm3  ;;  %vm778_vm7 = vweird.f32 %v3290_v57 }
 0x445   :  { %v751_v61 = vsub.f32 1.0, %v750_v58  ;;  %vm779_vm10 = vmor %vm777_vm8, %vm778_vm7 }
 0x446   :  { %v774_v36 = vsub.f32 1.0, %v773_v60 }
 0x447   :  { %v752_v63 = vmul.f32 %v3288_v56, %v751_v61 }
 0x448   :  { %v775_v2 = vmul.f32 %v3290_v57, %v774_v36 }
 0x449   :  { %v753_v4 = vadd.f32 %v3288_v56, %v752_v63 }
 0x44a   :  { %v776_v22 = vadd.f32 %v3290_v57, %v775_v2 }
 0x44b   :  { %v757_v19 = vsel %vm756_vm5, %v3288_v56, %v753_v4 }
 0x44c   :  { %v762_v20 = vsel %vm759_vm6, %v761_v13, %v757_v19  ;;  %v780_v27 = vsel %vm779_vm10, %v3290_v57, %v776_v22 }
 0x44d   :  { %v790_v23 = vmul.f32 %v788_v14, %v762_v20  ;;  %v785_v29 = vsel %vm782_vm11, %v784_v28, %v780_v27 }
 0x44e   :  { %v793_v31 = vsub.f32 1.0, %v785_v29  ;;  %v797_v33 = vmul.f32 %v795_v30, %v785_v29 }
 0x44f   :  { %v791_v26 = vadd.f32 %v790_v23, %v3842_v10 }
 0x451   :  { %3291 = vtanh.f32 %v791_v26 }
 0x457   :  { %v3292_v38 = vpop.eup %3291 }
 0x458   :  { %v794_v39 = vmul.f32 %v3292_v38, %v793_v31 }
 0x45a   :  { %v798_v42 = vadd.f32 %v797_v33, %v794_v39 }
 0x45c   :  { %v3926_v44 = vrot.slane %v798_v42, 6  ;;  %v3979_v42 = vld [vmem:[%s4798_s5 + $0x68] sm:$0xff] }
 0x45e   :  { %3096 = vmatmul.msk.f32.vlgmr.msrb.gmra.mxu1 %vm239_vm9, %v3926_v44  ;;  %3097 = vmatmul.msk.f32.vlgmr.msrb.gmra.mxu3 %vm239_vm9, %v3926_v44 }
 0x45f   :  { %3098 = vmatmul.msk.f32.vlgmr.msra.gmra.mxu2 %vm239_vm9, %v3926_v44  ;;  %1088 = vmatpush.msrb.mxu1 %v3757_v15 }
 0x460   :  { %1170 = vmatpush.msrb.mxu3 %v3690_v1  ;;  %1190 = vmatpush.msra.mxu2 %v3724_v7 }
 0x461   :  { %1089 = vmatpush.msrb.mxu1 %v3762_v16 }
 0x462   :  { %1171 = vmatpush.msrb.mxu3 %v3700_v3  ;;  %1191 = vmatpush.msra.mxu2 %v3731_v8 }
 0x463   :  { %1090 = vmatpush.msrb.mxu1 %v3769_v17 }
 0x464   :  { %1172 = vmatpush.msrb.mxu3 %v3709_v5  ;;  %1192 = vmatpush.msra.mxu2 %v3738_v9 }
 0x465   :  { %1091 = vmatpush.msrb.mxu1 %v3777_v18 }
 0x466   :  { %1173 = vmatpush.msrb.mxu3 %v3714_v6  ;;  %1193 = vmatpush.msra.mxu2 %v3748_v11 }
 0x4db   :  { %v820_v1 = vpop.f32.mrf.mxu1 }
 0x4dc   :  { %v863_v7 = vadd.f32 %v820_v1, %v3821_v34 }
 0x4de   :  { %v3099_v10 = vmul.f32 -1.442695, %v863_v7 }
 0x4e0   :  { %3293 = vpow2.f32 %v3099_v10 }
 0x4e1   :  { %v840_v3 = vpop.f32.mrf.mxu3 }
 0x4e2   :  { %v883_v8 = vadd.f32 %v840_v3, %v3823_v35  ;;  %v860_v53 = vpop.f32.mrf.mxu2  ;;  %v3985_v3 = vld [vmem:[%s4798_s5 + $0x60] sm:$0xff] }
 0x4e3   :  { %v861_v59 = vadd.f32 %v3839_v55, %v860_v53 }
 0x4e4   :  { %v3100_v40 = vmul.f32 -1.442695, %v883_v8 }
 0x4e6   :  { %v3294_v45 = vpop.eup %3293  ;;  %3295 = vpow2.f32 %v3100_v40 }
 0x4e7   :  { %v867_v5 = vadd.f32 1.0, %v3294_v45 }
 0x4e9   :  { %3297 = vrcp.f32 %v867_v5  ;;  %v879_v11 = vand.u32 2147483648, %v867_v5  ;;  %v877_v51 = vand.u32 2147483647, %v867_v5  ;;  %vm873_vm13 = vweird.f32 %v867_v5 }
 0x4eb   :  { %v880_v57 = vor.u32 1.1754944e-38, %v879_v11  ;;  %vm878_vm15 = vcmp.eq.f32.partialorder %v877_v51, 8.507059e+37 }
 0x4ec   :  { %v3296_v9 = vpop.eup %3295 }
 0x4ed   :  { %v887_v47 = vadd.f32 1.0, %v3296_v9 }
 0x4ef   :  { %v3298_v48 = vpop.eup %3297  ;;  %3299 = vrcp.f32 %v887_v47  ;;  %v899_v36 = vand.u32 2147483648, %v887_v47  ;;  %v897_v63 = vand.u32 2147483647, %v887_v47  ;;  %vm893_vm1 = vweird.f32 %v887_v47 }
 0x4f0   :  { %v869_v6 = vmul.f32 %v3298_v48, %v867_v5  ;;  %vm874_vm12 = vweird.f32 %v3298_v48 }
 0x4f1   :  { %vm875_vm14 = vmor %vm873_vm13, %vm874_vm12  ;;  %v900_v4 = vor.u32 1.1754944e-38, %v899_v36  ;;  %vm898_vm3 = vcmp.eq.f32.partialorder %v897_v63, 8.507059e+37 }
 0x4f2   :  { %v870_v49 = vsub.f32 1.0, %v869_v6 }
 0x4f4   :  { %v871_v50 = vmul.f32 %v3298_v48, %v870_v49 }
 0x4f5   :  { %v3300_v52 = vpop.eup %3299 }
 0x4f6   :  { %v889_v54 = vmul.f32 %v3300_v52, %v887_v47  ;;  %v872_v56 = vadd.f32 %v3298_v48, %v871_v50  ;;  %vm894_vm0 = vweird.f32 %v3300_v52 }
 0x4f7   :  { %vm895_vm2 = vmor %vm893_vm1, %vm894_vm0 }
 0x4f8   :  { %v890_v58 = vsub.f32 1.0, %v889_v54  ;;  %v876_v60 = vsel %vm875_vm14, %v3298_v48, %v872_v56 }
 0x4f9   :  { %v881_v61 = vsel %vm878_vm15, %v880_v57, %v876_v60 }
 0x4fa   :  { %v891_v62 = vmul.f32 %v3300_v52, %v890_v58  ;;  %v903_v46 = vmul.f32 %v881_v61, %v861_v59 }
 0x4fc   :  { %v892_v0 = vadd.f32 %v3300_v52, %v891_v62  ;;  %v904_v2 = vadd.f32 %v903_v46, %v3831_v43 }
 0x4fe   :  { %v896_v13 = vsel %vm895_vm2, %v3300_v52, %v892_v0  ;;  %3301 = vtanh.f32 %v904_v2 }
 0x4ff   :  { %v901_v14 = vsel %vm898_vm3, %v900_v4, %v896_v13 }
 0x500   :  { %v906_v19 = vsub.f32 1.0, %v901_v14  ;;  %v909_v23 = vmul.f32 %v901_v14, %v3926_v44  ;;  %v4000_v14 = vld [vmem:[%s4799_s6 + $0x98] sm:$0xff] }
 0x504   :  { %v3302_v20 = vpop.eup %3301 }
 0x505   :  { %v907_v22 = vmul.f32 %v3302_v20, %v906_v19  ;;  %v4009_v19 = vld [vmem:[%s4798_s5 + $0xb8] sm:$0xff]  ;;  %v4016_v20 = vld [vmem:[%s4799_s6 + $0x90] sm:$0xff] }
 0x507   :  { %v3951_v24 = vadd.f32 %v909_v23, %v907_v22  ;;  %v4023_v22 = vld [vmem:[%s4798_s5 + $0xb0] sm:$0xff]  ;;  %v4028_v23 = vld [vmem:[%s4799_s6 + $0x88] sm:$0xff] }
 0x509   :  { %3101 = vmatmul.msk.f32.vlgmr.msra.gmra.mxu0 %vm239_vm9, %v3951_v24  ;;  %3102 = vmatmul.msk.f32.vlgmr.msra.gmra.mxu1 %vm239_vm9, %v3951_v24  ;;  %v1028_v46 = vrot.slane %v3951_v24, 6 }
 0x50a   :  { %3103 = vmatmul.msk.f32.vlgmr.msra.gmra.mxu3 %vm239_vm9, %v3951_v24  ;;  %1210 = vmatpush.msra.mxu0 %v3757_v15 }
 0x50c   :  { %1211 = vmatpush.msra.mxu0 %v3762_v16 }
 0x50e   :  { %1212 = vmatpush.msra.mxu0 %v3769_v17  ;;  %v3968_v17 = vld [vmem:[%s4798_s5 + $0x78] sm:$0xff] }
 0x50f   :  { %1335 = vmatpush.msra.mxu1 %v3968_v17 }
 0x510   :  { %1213 = vmatpush.msra.mxu0 %v3777_v18  ;;  %v3973_v18 = vld [vmem:[%s4798_s5 + $0x70] sm:$0xff] }
 0x511   :  { %1336 = vmatpush.msra.mxu1 %v3973_v18 }
 0x513   :  { %1337 = vmatpush.msra.mxu1 %v3979_v42 }
 0x515   :  { %1338 = vmatpush.msra.mxu1 %v3985_v3 }
 0x586   :  { %v931_v25 = vpop.f32.mrf.mxu0  ;;  %v951_v26 = vpop.f32.mrf.mxu1 }
 0x587   :  { %v975_v27 = vrot.slane %v931_v25, 6  ;;  %v998_v28 = vrot.slane %v951_v26, 6  ;;  %v4035_v25 = vld [vmem:[%s4798_s5 + $0xa8] sm:$0xff]  ;;  %v4040_v26 = vld [vmem:[%s4799_s6 + $0x80] sm:$0xff] }
 0x589   :  { %v977_v29 = vadd.f32 %v975_v27, %v3821_v34  ;;  %v1000_v30 = vadd.f32 %v998_v28, %v3823_v35  ;;  %v4047_v27 = vld [vmem:[%s4798_s5 + $0xa0] sm:$0xff] }
 0x58b   :  { %v3104_v31 = vmul.f32 -1.442695, %v977_v29  ;;  %v3105_v38 = vmul.f32 -1.442695, %v1000_v30 }
 0x58d   :  { %3303 = vpow2.f32 %v3104_v31  ;;  %v971_v40 = vpop.f32.mrf.mxu3 }
 0x58e   :  { %3305 = vpow2.f32 %v3105_v38  ;;  %v972_v47 = vadd.f32 %v3839_v55, %v971_v40  ;;  %v4079_v40 = vld [vmem:[%s4799_s6 + $0x78] sm:$0xff] }
 0x590   :  { %v1021_v52 = vrot.slane %v972_v47, 6  ;;  %v4096_v47 = vld [vmem:[%s4798_s5 + $0x90] sm:$0xff] }
 0x593   :  { %v3304_v39 = vpop.eup %3303 }
 0x594   :  { %v3306_v15 = vpop.eup %3305  ;;  %v981_v33 = vadd.f32 1.0, %v3304_v39 }
 0x595   :  { %v1004_v16 = vadd.f32 1.0, %v3306_v15 }
 0x596   :  { %3307 = vrcp.f32 %v981_v33  ;;  %v993_v9 = vand.u32 2147483648, %v981_v33  ;;  %v991_v6 = vand.u32 2147483647, %v981_v33  ;;  %vm987_vm5 = vweird.f32 %v981_v33 }
 0x597   :  { %3309 = vrcp.f32 %v1004_v16  ;;  %v1016_v56 = vand.u32 2147483648, %v1004_v16  ;;  %vm1010_vm10 = vweird.f32 %v1004_v16  ;;  %v1014_v58 = vand.u32 2147483647, %v1004_v16 }
 0x598   :  { %v994_v50 = vor.u32 1.1754944e-38, %v993_v9  ;;  %vm992_vm7 = vcmp.eq.f32.partialorder %v991_v6, 8.507059e+37  ;;  %v4106_v6 = vld [vmem:[%s4798_s5 + $0x88] sm:$0xff] }
 0x599   :  { %v1017_v61 = vor.u32 1.1754944e-38, %v1016_v56  ;;  %vm1015_vm12 = vcmp.eq.f32.partialorder %v1014_v58, 8.507059e+37 }
 0x59c   :  { %v3308_v1 = vpop.eup %3307 }
 0x59d   :  { %v3310_v7 = vpop.eup %3309  ;;  %v983_v10 = vmul.f32 %v3308_v1, %v981_v33  ;;  %vm988_vm4 = vweird.f32 %v3308_v1 }
 0x59e   :  { %v1006_v8 = vmul.f32 %v3310_v7, %v1004_v16  ;;  %vm989_vm6 = vmor %vm987_vm5, %vm988_vm4  ;;  %vm1011_vm8 = vweird.f32 %v3310_v7  ;;  %vm2725_vm4 = vcmp.gt.s32.totalorder %v3573_v12, 0  ;;  %vm2789_vm5 = vcmp.gt.s32.totalorder %v3573_v12, 2 }
 0x59f   :  { %v984_v45 = vsub.f32 1.0, %v983_v10  ;;  %vm1012_vm11 = vmor %vm1010_vm10, %vm1011_vm8 }
 0x5a0   :  { %v1007_v5 = vsub.f32 1.0, %v1006_v8 }
 0x5a1   :  { %v985_v48 = vmul.f32 %v3308_v1, %v984_v45  ;;  %v4084_v45 = vld [vmem:[%s4798_s5 + $0x98] sm:$0xff] }
 0x5a2   :  { %v1008_v49 = vmul.f32 %v3310_v7, %v1007_v5  ;;  %v4089_v5 = vld [vmem:[%s4799_s6 + $0x70] sm:$0xff]  ;;  %1358 = vmatpush.msra.mxu3 %v4084_v45 }
 0x5a3   :  { %v986_v11 = vadd.f32 %v3308_v1, %v985_v48  ;;  %v4101_v48 = vld [vmem:[%s4799_s6 + $0x68] sm:$0xff] }
 0x5a4   :  { %v1009_v54 = vadd.f32 %v3310_v7, %v1008_v49  ;;  %1359 = vmatpush.msra.mxu3 %v4096_v47 }
 0x5a5   :  { %v990_v51 = vsel %vm989_vm6, %v3308_v1, %v986_v11 }
 0x5a6   :  { %v995_v53 = vsel %vm992_vm7, %v994_v50, %v990_v51  ;;  %v1013_v60 = vsel %vm1012_vm11, %v3310_v7, %v1009_v54  ;;  %v4113_v50 = vld [vmem:[%s4799_s6 + $0x60] sm:$0xff]  ;;  %1360 = vmatpush.msra.mxu3 %v4106_v6 }
 0x5a7   :  { %v1023_v57 = vmul.f32 %v1021_v52, %v995_v53  ;;  %v1018_v62 = vsel %vm1015_vm12, %v1017_v61, %v1013_v60  ;;  %v4118_v51 = vld [vmem:[%s4798_s5 + $0x80] sm:$0xff] }
 0x5a8   :  { %v1026_v36 = vsub.f32 1.0, %v1018_v62  ;;  %v1030_v2 = vmul.f32 %v1028_v46, %v1018_v62  ;;  %1361 = vmatpush.msra.mxu3 %v4118_v51 }
 0x5a9   :  { %v1024_v59 = vadd.f32 %v1023_v57, %v3831_v43 }
 0x5ab   :  { %3311 = vtanh.f32 %v1024_v59 }
 0x5b1   :  { %v3312_v63 = vpop.eup %3311 }
 0x5b2   :  { %v1027_v0 = vmul.f32 %v3312_v63, %v1026_v36 }
 0x5b4   :  { %v3992_v4 = vadd.f32 %v1030_v2, %v1027_v0 }
 0x5b6   :  { %v3995_v13 = vrot.slane %v3992_v4, 2 }
 0x5b8   :  { %3106 = vmatmul.msk.f32.vlgmr.msrb.gmra.mxu2 %vm239_vm9, %v3995_v13  ;;  %3107 = vmatmul.msk.f32.vlgmr.msrb.gmra.mxu0 %vm239_vm9, %v3995_v13 }
 0x5b9   :  { %3108 = vmatmul.msk.f32.vlgmr.msrb.gmra.mxu1 %vm239_vm9, %v3995_v13  ;;  %1381 = vmatpush.msrb.mxu2 %v4009_v19 }
 0x5ba   :  { %1421 = vmatpush.msrb.mxu1 %v4000_v14  ;;  %1401 = vmatpush.msrb.mxu0 %v4079_v40 }
 0x5bb   :  { %1382 = vmatpush.msrb.mxu2 %v4023_v22 }
 0x5bc   :  { %1422 = vmatpush.msrb.mxu1 %v4016_v20  ;;  %1402 = vmatpush.msrb.mxu0 %v4089_v5 }
 0x5bd   :  { %1383 = vmatpush.msrb.mxu2 %v4035_v25 }
 0x5be   :  { %1423 = vmatpush.msrb.mxu1 %v4028_v23  ;;  %1403 = vmatpush.msrb.mxu0 %v4101_v48 }
 0x5bf   :  { %1384 = vmatpush.msrb.mxu2 %v4047_v27 }
 0x5c0   :  { %1424 = vmatpush.msrb.mxu1 %v4040_v26  ;;  %1404 = vmatpush.msrb.mxu0 %v4113_v50 }
 0x5c1   :  { %3146 = vmatmul.msk.f32.vlgmr.msra.gmra.mxu1 %vm239_vm9, %v3845_v32 }
 0x5c2   :  { %1551 = vmatpush.msra.mxu1 %v4009_v19 }
 0x5c4   :  { %1552 = vmatpush.msra.mxu1 %v4023_v22 }
 0x5c6   :  { %1553 = vmatpush.msra.mxu1 %v4035_v25 }
 0x5c8   :  { %1554 = vmatpush.msra.mxu1 %v4047_v27 }
 0x5c9   :  { %1425 = vmatmul.f32.vlgmr.msrb.gmra.mxu1 %v4807_v21 }
 0x5ca   :  { %1681 = vmatpush.msrb.mxu1 %v3968_v17 }
 0x5cc   :  { %1682 = vmatpush.msrb.mxu1 %v3973_v18 }
 0x5ce   :  { %1683 = vmatpush.msrb.mxu1 %v3979_v42 }
 0x5d0   :  { %1684 = vmatpush.msrb.mxu1 %v3985_v3 }
 0x5d1   :  { %3153 = vmatmul.msk.f32.vlgmr.msra.gmra.mxu1 %vm239_vm9, %v3873_v37 }
 0x5d2   :  { %1764 = vmatpush.msra.mxu1 %v4000_v14 }
 0x5d4   :  { %1765 = vmatpush.msra.mxu1 %v4016_v20 }
 0x5d6   :  { %1766 = vmatpush.msra.mxu1 %v4028_v23 }
 0x5d8   :  { %1767 = vmatpush.msra.mxu1 %v4040_v26 }
 0x5d9   :  { %3159 = vmatmul.msk.f32.vlgmr.msrb.gmra.mxu1 %vm239_vm9, %v3901_v41 }
 0x5da   :  { %1891 = vmatpush.msrb.mxu1 %v4009_v19 }
 0x5dc   :  { %1892 = vmatpush.msrb.mxu1 %v4023_v22 }
 0x5de   :  { %1893 = vmatpush.msrb.mxu1 %v4035_v25 }
 0x5e0   :  { %1894 = vmatpush.msrb.mxu1 %v4047_v27 }
 0x635   :  { %v1073_v28 = vpop.f32.mrf.mxu0 }
 0x636   :  { %v1120_v29 = vrot.slane %v1073_v28, 4  ;;  %v1093_v53 = vpop.f32.mrf.mxu1 }
 0x637   :  { %v1094_v57 = vadd.f32 %v3839_v55, %v1093_v53  ;;  %v4169_v53 = vld [vmem:[%s4799_s6 + $0xa0] sm:$0xff] }
 0x638   :  { %v1122_v30 = vadd.f32 %v1120_v29, %v3823_v35 }
 0x639   :  { %v1143_v36 = vrot.slane %v1094_v57, 4 }
 0x63a   :  { %v3110_v31 = vmul.f32 -1.442695, %v1122_v30 }
 0x63b   :  { %v1053_v38 = vpop.f32.mrf.mxu2 }
 0x63c   :  { %3313 = vpow2.f32 %v3110_v31  ;;  %v1097_v39 = vrot.slane %v1053_v38, 4  ;;  %v3207_v31 = vsel %vm2725_vm4, 1.0, %v4807_v21  ;;  %v3211_v38 = vsel %vm2789_vm5, 1.0, %v4807_v21 }
 0x63e   :  { %v1099_v15 = vadd.f32 %v1097_v39, %v3821_v34 }
 0x640   :  { %v3109_v33 = vmul.f32 -1.442695, %v1099_v15  ;;  %v3230_v15 = vpack.i.bf16 %v3211_v38, %v3207_v31 }
 0x642   :  { %v3314_v16 = vpop.eup %3313  ;;  %3315 = vpow2.f32 %v3109_v33  ;;  %3231 = vperm.xlu1 %3229, %v3230_v15  }
 0x643   :  { %v1126_v1 = vadd.f32 1.0, %v3314_v16  ;;  %v1150_v16 = vrot.slane %v3992_v4, 6  ;;  %v4151_v4 = vld [vmem:[%s4799_s6 + $0xb0] sm:$0xff] }
 0x645   :  { %3317 = vrcp.f32 %v1126_v1  ;;  %v1138_v2 = vand.u32 2147483648, %v1126_v1  ;;  %vm1132_vm2 = vweird.f32 %v1126_v1  ;;  %v1136_v29 = vand.u32 2147483647, %v1126_v1 }
 0x647   :  { %v1139_v39 = vor.u32 1.1754944e-38, %v1138_v2  ;;  %vm1137_vm6 = vcmp.eq.f32.partialorder %v1136_v29, 8.507059e+37 }
 0x648   :  { %v3316_v7 = vpop.eup %3315 }
 0x649   :  { %v1103_v10 = vadd.f32 1.0, %v3316_v7 }
 0x64b   :  { %3319 = vrcp.f32 %v1103_v10  ;;  %v3318_v8 = vpop.eup %3317  ;;  %v1115_v56 = vand.u32 2147483648, %v1103_v10  ;;  %v1113_v59 = vand.u32 2147483647, %v1103_v10  ;;  %vm1109_vm14 = vweird.f32 %v1103_v10 }
 0x64c   :  { %v1128_v9 = vmul.f32 %v3318_v8, %v1126_v1  ;;  %vm1133_vm1 = vweird.f32 %v3318_v8 }
 0x64d   :  { %v1116_v62 = vor.u32 1.1754944e-38, %v1115_v56  ;;  %vm1114_vm0 = vcmp.eq.f32.partialorder %v1113_v59, 8.507059e+37  ;;  %vm1134_vm3 = vmor %vm1132_vm2, %vm1133_vm1  ;;  %v3143_v59 = vld [vmem:[%s4801_s8 + $0x4] sm:$0x1] }
 0x64e   :  { %v1129_v52 = vsub.f32 1.0, %v1128_v9 }
 0x650   :  { %v1130_v60 = vmul.f32 %v3318_v8, %v1129_v52  ;;  %v4159_v52 = vld [vmem:[%s4799_s6 + $0xa8] sm:$0xff] }
 0x651   :  { %v3320_v49 = vpop.eup %3319 }
 0x652   :  { %v1105_v11 = vmul.f32 %v3320_v49, %v1103_v10  ;;  %vm1110_vm13 = vweird.f32 %v3320_v49  ;;  %v1131_v63 = vadd.f32 %v3318_v8, %v1130_v60  ;;  %v1340_v60 = vpop.f32.mrf.mxu1 }
 0x653   :  { %vm1111_vm15 = vmor %vm1109_vm14, %vm1110_vm13 }
 0x654   :  { %v1106_v54 = vsub.f32 1.0, %v1105_v11  ;;  %v1135_v30 = vsel %vm1134_vm3, %v3318_v8, %v1131_v63  ;;  %v4139_v11 = vld [vmem:[%s4799_s6 + $0xb8] sm:$0xff] }
 0x655   :  { %v1140_v33 = vsel %vm1137_vm6, %v1139_v39, %v1135_v30  ;;  %vm2734_vm6 = vcmp.gt.s32.totalorder %v3573_v12, 1 }
 0x656   :  { %v1107_v58 = vmul.f32 %v3320_v49, %v1106_v54  ;;  %v1148_v1 = vsub.f32 1.0, %v1140_v33  ;;  %v1152_v9 = vmul.f32 %v1150_v16, %v1140_v33 }
 0x658   :  { %v1108_v61 = vadd.f32 %v3320_v49, %v1107_v58  ;;  %v3142_v58 = vld [vmem:[%s4800_s7 + $0x4] sm:$0x1] }
 0x659   :  { %v1315_v63 = vadd.f32 %v3143_v59, %v3142_v58  ;;  %v3413_v58 = vld [vmem:[%s4801_s8 + $0x2] ss:$0 sm:$0xff] }
 0x65a   :  { %v1112_v46 = vsel %vm1111_vm15, %v3320_v49, %v1108_v61  ;;  %v1426_v16 = vpop.f32.mrf.mxu1 }
 0x65b   :  { %v1117_v0 = vsel %vm1114_vm0, %v1116_v62, %v1112_v46  ;;  %v4225_v38 = vperm.slane %v1315_v63, 0  ;;  %v4236_v63 = vld [vmem:[%s4800_s7 + $0x5] ss:$0 sm:$0xff] }
 0x65c   :  { %v1145_v28 = vmul.f32 %v1143_v36, %v1117_v0 }
 0x65e   :  { %v1146_v55 = vadd.f32 %v1145_v28, %v3831_v43 }
 0x660   :  { %3321 = vtanh.f32 %v1146_v55 }
 0x666   :  { %v3322_v7 = vpop.eup %3321 }
 0x667   :  { %v1149_v10 = vmul.f32 %v3322_v7, %v1148_v1 }
 0x669   :  { %v4131_v49 = vadd.f32 %v1152_v9, %v1149_v10 }
 0x66b   :  { %v4134_v8 = vrot.slane %v4131_v49, 4 }
 0x66d   :  { %4811 = vst [vmem:[#allocation5_spill] sm:$0xff] %v4134_v8  ;;  %3111 = vmatmul.msk.f32.vlgmr.msrb.gmra.mxu3 %vm239_vm9, %v4134_v8  ;;  %3112 = vmatmul.msk.f32.vlgmr.msra.gmra.mxu2 %vm239_vm9, %v4134_v8 }
 0x66e   :  { %3113 = vmatmul.msk.f32.vlgmr.msra.gmra.mxu0 %vm239_vm9, %v4134_v8  ;;  %1511 = vmatpush.msra.mxu2 %v3968_v17 }
 0x66f   :  { %1531 = vmatpush.msra.mxu0 %v4084_v45  ;;  %1444 = vmatpush.msrb.mxu3 %v4139_v11 }
 0x670   :  { %1512 = vmatpush.msra.mxu2 %v3973_v18 }
 0x671   :  { %1532 = vmatpush.msra.mxu0 %v4096_v47  ;;  %1445 = vmatpush.msrb.mxu3 %v4151_v4 }
 0x672   :  { %1513 = vmatpush.msra.mxu2 %v3979_v42 }
 0x673   :  { %1533 = vmatpush.msra.mxu0 %v4106_v6  ;;  %1446 = vmatpush.msrb.mxu3 %v4159_v52 }
 0x674   :  { %1514 = vmatpush.msra.mxu2 %v3985_v3 }
 0x675   :  { %3147 = vmatmul.msk.f32.vlgmr.msra.gmra.mxu3 %vm239_vm9, %v3845_v32  ;;  %3148 = vmatmul.msk.f32.vlgmr.msrb.gmra.mxu2 %vm239_vm9, %v3845_v32  ;;  %v3140_v32 = vld [vmem:[%s4800_s7 + $0x3] sm:$0x1] }
 0x676   :  { %1405 = vmatmul.f32.vlgmr.msrb.gmra.mxu0 %v4807_v21  ;;  %1447 = vmatpush.msrb.mxu3 %v4169_v53 }
 0x677   :  { %1534 = vmatpush.msra.mxu0 %v4118_v51  ;;  %1594 = vmatpush.msrb.mxu2 %v4000_v14 }
 0x678   :  { %1574 = vmatpush.msra.mxu3 %v4079_v40 }
 0x679   :  { %1614 = vmatpush.msrb.mxu0 %v4139_v11  ;;  %1595 = vmatpush.msrb.mxu2 %v4016_v20 }
 0x67a   :  { %1575 = vmatpush.msra.mxu3 %v4089_v5 }
 0x67b   :  { %1615 = vmatpush.msrb.mxu0 %v4151_v4  ;;  %1596 = vmatpush.msrb.mxu2 %v4028_v23 }
 0x67c   :  { %1576 = vmatpush.msra.mxu3 %v4101_v48 }
 0x67d   :  { %1616 = vmatpush.msrb.mxu0 %v4159_v52  ;;  %3151 = vmatmul.msk.f32.vlgmr.msra.gmra.mxu2 %vm239_vm9, %v3873_v37 }
 0x67e   :  { %1448 = vmatmul.f32.vlgmr.msrb.gmra.mxu3 %v4807_v21  ;;  %3152 = vmatmul.msk.f32.vlgmr.msra.gmra.mxu0 %vm239_vm9, %v3873_v37  ;;  %v3141_v37 = vld [vmem:[%s4801_s8 + $0x3] sm:$0x1] }
 0x67f   :  { %1577 = vmatpush.msra.mxu3 %v4113_v50  ;;  %1597 = vmatpush.msrb.mxu2 %v4040_v26  ;;  %v1310_v54 = vadd.f32 %v3141_v37, %v3140_v32 }
 0x680   :  { %1617 = vmatpush.msrb.mxu0 %v4169_v53 }
 0x681   :  { %1701 = vmatpush.msrb.mxu3 %v4084_v45  ;;  %1721 = vmatpush.msra.mxu2 %v4009_v19  ;;  %v4214_v57 = vperm.slane %v1310_v54, 0 }
 0x682   :  { %1744 = vmatpush.msra.mxu0 %v4079_v40 }
 0x683   :  { %1702 = vmatpush.msrb.mxu3 %v4096_v47  ;;  %1722 = vmatpush.msra.mxu2 %v4023_v22  ;;  %v1341_v0 = vadd.f32 %v1340_v60, %v4214_v57 }
 0x684   :  { %1745 = vmatpush.msra.mxu0 %v4089_v5 }
 0x685   :  { %1703 = vmatpush.msrb.mxu3 %v4106_v6  ;;  %1723 = vmatpush.msra.mxu2 %v4035_v25 }
 0x686   :  { %1746 = vmatpush.msra.mxu0 %v4101_v48 }
 0x687   :  { %1704 = vmatpush.msrb.mxu3 %v4118_v51  ;;  %1724 = vmatpush.msra.mxu2 %v4047_v27 }
 0x688   :  { %1747 = vmatpush.msra.mxu0 %v4113_v50 }
 0x6eb   :  { %v1215_v56 = vpop.f32.mrf.mxu0 }
 0x6ec   :  { %v1216_v59 = vadd.f32 %v3413_v58, %v1215_v56 }
 0x6f0   :  { %v1175_v61 = vpop.f32.mrf.mxu3  ;;  %v1195_v62 = vpop.f32.mrf.mxu2 }
 0x6f1   :  { %v1219_v36 = vrot.slane %v1175_v61, 2  ;;  %v1242_v46 = vrot.slane %v1195_v62, 2 }
 0x6f3   :  { %v1221_v2 = vadd.f32 %v1219_v36, %v3821_v34  ;;  %v1244_v28 = vadd.f32 %v1242_v46, %v3823_v35  ;;  %v1406_v29 = vpop.f32.mrf.mxu0 }
 0x6f4   :  { %v1452_v55 = vadd.f32 %v1406_v29, %v1341_v0  ;;  %v1265_v29 = vrot.slane %v1216_v59, 2 }
 0x6f5   :  { %v3114_v30 = vmul.f32 -1.442695, %v1221_v2  ;;  %v3115_v31 = vmul.f32 -1.442695, %v1244_v28  ;;  %v1272_v28 = vrot.slane %v4131_v49, 6 }
 0x6f6   :  { %v3149_v39 = vmul.f32 -1.442695, %v1452_v55 }
 0x6f7   :  { %3323 = vpow2.f32 %v3114_v30 }
 0x6f8   :  { %3325 = vpow2.f32 %v3115_v31  ;;  %v1363_v15 = vpop.f32.mrf.mxu3  ;;  %v1386_v46 = vpop.f32.mrf.mxu2 }
 0x6f9   :  { %3327 = vpow2.f32 %v3149_v39  ;;  %v1364_v33 = vadd.f32 %v1363_v15, %v4225_v38  ;;  %v1387_v15 = vadd.f32 %v4236_v63, %v1386_v46 }
 0x6fb   :  { %v1472_v1 = vadd.f32 %v1426_v16, %v1364_v33  ;;  %v4244_v33 = vld [vmem:[%s4801_s8 + $0x5] ss:$0 sm:$0xff] }
 0x6fd   :  { %v3324_v7 = vpop.eup %3323  ;;  %v3150_v10 = vmul.f32 -1.442695, %v1472_v1 }
 0x6fe   :  { %v3326_v34 = vpop.eup %3325  ;;  %v1225_v9 = vadd.f32 1.0, %v3324_v7 }
 0x6ff   :  { %v3328_v35 = vpop.eup %3327  ;;  %v1248_v32 = vadd.f32 1.0, %v3326_v34  ;;  %3329 = vpow2.f32 %v3150_v10 }
 0x700   :  { %3331 = vrcp.f32 %v1225_v9  ;;  %v1456_v37 = vadd.f32 1.0, %v3328_v35  ;;  %v1235_v0 = vand.u32 2147483647, %v1225_v9  ;;  %v1237_v56 = vand.u32 2147483648, %v1225_v9 }
 0x701   :  { %3333 = vrcp.f32 %v1248_v32  ;;  %v1260_v30 = vand.u32 2147483648, %v1248_v32  ;;  %vm1231_vm7 = vweird.f32 %v1225_v9  ;;  %vm1254_vm8 = vweird.f32 %v1248_v32  ;;  %v1449_v7 = vpop.f32.mrf.mxu3 }
 0x702   :  { %3335 = vrcp.f32 %v1456_v37  ;;  %v1258_v1 = vand.u32 2147483647, %v1248_v32  ;;  %vm4246_vm11 = vcmp.eq.f32.partialorder %v1235_v0, 8.507059e+37  ;;  %v1466_v35 = vand.u32 2147483647, %v1456_v37 }
 0x703   :  { %v1238_v58 = vor.u32 1.1754944e-38, %v1237_v56  ;;  %v1261_v59 = vor.u32 1.1754944e-38, %v1260_v30  ;;  %vm1462_vm14 = vweird.f32 %v1456_v37 }
 0x704   :  { %vm4256_vm1 = vcmp.eq.f32.partialorder %v1466_v35, 8.507059e+37  ;;  %vm1259_vm2 = vcmp.eq.f32.partialorder %v1258_v1, 8.507059e+37 }
 0x705   :  { %v3330_v54 = vpop.eup %3329 }
 0x706   :  { %v3332_v60 = vpop.eup %3331  ;;  %v4231_v61 = vadd.f32 1.0, %v3330_v54 }
 0x707   :  { %v3334_v62 = vpop.eup %3333  ;;  %v1227_v36 = vmul.f32 %v3332_v60, %v1225_v9  ;;  %vm1232_vm10 = vweird.f32 %v3332_v60 }
 0x708   :  { %v1250_v2 = vmul.f32 %v3334_v62, %v1248_v32  ;;  %3337 = vrcp.f32 %v4231_v61  ;;  %v3336_v31 = vpop.eup %3335  ;;  %vm1255_vm12 = vweird.f32 %v3334_v62  ;;  %vm1233_vm13 = vmor %vm1231_vm7, %vm1232_vm10  ;;  %vm1482_vm3 = vweird.f32 %v4231_v61 }
 0x709   :  { %v1228_v55 = vsub.f32 1.0, %v1227_v36  ;;  %v1458_v49 = vmul.f32 %v3336_v31, %v1456_v37  ;;  %vm1256_vm15 = vmor %vm1254_vm8, %vm1255_vm12  ;;  %vm1463_vm0 = vweird.f32 %v3336_v31  ;;  %v1488_v32 = vand.u32 2147483648, %v4231_v61 }
 0x70a   :  { %v1251_v39 = vsub.f32 1.0, %v1250_v2  ;;  %v1450_v2 = vadd.f32 %v4244_v33, %v1449_v7  ;;  %vm1464_vm4 = vmor %vm1462_vm14, %vm1463_vm0  ;;  %vm2888_vm7 = vcmp.gt.s32.totalorder %v3573_v12, 5 }
 0x70b   :  { %v1229_v16 = vmul.f32 %v3332_v60, %v1228_v55  ;;  %v1459_v36 = vsub.f32 1.0, %v1458_v49  ;;  %v1468_v55 = vand.u32 2147483648, %v1456_v37  ;;  %v4816_v37 = vmov 0.0  }
 0x70c   :  { %v1252_v34 = vmul.f32 %v3334_v62, %v1251_v39 }
 0x70d   :  { %v1230_v54 = vadd.f32 %v3332_v60, %v1229_v16  ;;  %v1460_v39 = vmul.f32 %v3336_v31, %v1459_v36 }
 0x70e   :  { %v3338_v46 = vpop.eup %3337  ;;  %v1253_v21 = vadd.f32 %v3334_v62, %v1252_v34 }
 0x70f   :  { %v1234_v8 = vsel %vm1233_vm13, %v3332_v60, %v1230_v54  ;;  %v1478_v0 = vmul.f32 %v3338_v46, %v4231_v61  ;;  %v1461_v49 = vadd.f32 %v3336_v31, %v1460_v39  ;;  %v1469_v60 = vor.u32 1.1754944e-38, %v1468_v55 }
 0x710   :  { %v1239_v56 = vsel %vm4246_vm11, %v1238_v58, %v1234_v8  ;;  %v1257_v9 = vsel %vm1256_vm15, %v3334_v62, %v1253_v21  ;;  %vm1483_vm5 = vweird.f32 %v3338_v46  ;;  %v1486_v62 = vand.u32 2147483647, %v4231_v61 }
 0x711   :  { %v1267_v16 = vmul.f32 %v1265_v29, %v1239_v56  ;;  %v1479_v7 = vsub.f32 1.0, %v1478_v0  ;;  %v1262_v34 = vsel %vm1259_vm2, %v1261_v59, %v1257_v9  ;;  %v1465_v8 = vsel %vm1464_vm4, %v3336_v31, %v1461_v49  ;;  %vm1484_vm8 = vmor %vm1482_vm3, %vm1483_vm5 }
 0x712   :  { %v1274_v54 = vmul.f32 %v1272_v28, %v1262_v34  ;;  %v1470_v21 = vsel %vm4256_vm1, %v1469_v60, %v1465_v8  ;;  %v3208_v58 = vsel %vm2734_vm6, 1.0, %v4816_v37  ;;  %v3217_v28 = vsel %vm2888_vm7, 1.0, %v4816_v37 }
 0x713   :  { %v1480_v10 = vmul.f32 %v3338_v46, %v1479_v7  ;;  %v1268_v35 = vadd.f32 %v1267_v16, %v3831_v43  ;;  %v1492_v1 = vmul.f32 %v1470_v21, %v1450_v2  ;;  %v3235_v31 = vpack.i.bf16 %v3217_v28, %v3208_v58 }
 0x714   :  { %v1489_v43 = vor.u32 1.1754944e-38, %v1488_v32  ;;  %vm1487_vm10 = vcmp.eq.f32.partialorder %v1486_v62, 8.507059e+37  ;;  %v1270_v0 = vsub.f32 1.0, %v1262_v34 }
 0x715   :  { %v1481_v29 = vadd.f32 %v3338_v46, %v1480_v10  ;;  %3339 = vtanh.f32 %v1268_v35  ;;  %v1493_v36 = vadd.f32 %v1492_v1, %v1387_v15  ;;  %3236 = vperm.xlu1 %3229, %v3235_v31   ;;  %v1536_v15 = vpop.f32.mrf.mxu0 }
 0x717   :  { %v1485_v59 = vsel %vm1484_vm8, %v3338_v46, %v1481_v29  ;;  %3341 = vtanh.f32 %v1493_v36  ;;  %v1537_v46 = vadd.f32 %v1536_v15, %v4225_v38  ;;  %vm2822_vm8 = vcmp.gt.s32.totalorder %v3573_v12, 3 }
 0x718   :  { %v1490_v55 = vsel %vm1487_vm10, %v1489_v43, %v1485_v59  ;;  %vm2921_vm10 = vcmp.gt.s32.totalorder %v3573_v12, 6 }
 0x719   :  { %v1495_v56 = vsub.f32 1.0, %v1490_v55  ;;  %v1497_v7 = vmul.f32 0.0, %v1490_v55 }
 0x71b   :  { %v3340_v39 = vpop.eup %3339 }
 0x71c   :  { %v1271_v2 = vmul.f32 %v3340_v39, %v1270_v0 }
 0x71d   :  { %v3342_v30 = vpop.eup %3341 }
 0x71e   :  { %v4273_v9 = vadd.f32 %v1274_v54, %v1271_v2  ;;  %v1496_v16 = vmul.f32 %v3342_v30, %v1495_v56  ;;  %v1556_v30 = vpop.f32.mrf.mxu1 }
 0x720   :  { %v4275_v61 = vadd.f32 %v1497_v7, %v1496_v16 }
 0x722   :  { %3154 = vmatmul.msk.f32.vlgmr.msra.gmra.mxu3 %vm239_vm9, %v4275_v61  ;;  %3155 = vmatmul.msk.f32.vlgmr.msrb.gmra.mxu2 %vm239_vm9, %v4275_v61 }
 0x723   :  { %3156 = vmatmul.msk.f32.vlgmr.msrb.gmra.mxu0 %vm239_vm9, %v4275_v61  ;;  %1851 = vmatpush.msrb.mxu2 %v3968_v17 }
 0x724   :  { %1784 = vmatpush.msra.mxu3 %v4139_v11  ;;  %1871 = vmatpush.msrb.mxu0 %v4084_v45 }
 0x725   :  { %1852 = vmatpush.msrb.mxu2 %v3973_v18 }
 0x726   :  { %1785 = vmatpush.msra.mxu3 %v4151_v4  ;;  %1872 = vmatpush.msrb.mxu0 %v4096_v47 }
 0x727   :  { %1853 = vmatpush.msrb.mxu2 %v3979_v42 }
 0x728   :  { %1786 = vmatpush.msra.mxu3 %v4159_v52  ;;  %1873 = vmatpush.msrb.mxu0 %v4106_v6 }
 0x729   :  { %1854 = vmatpush.msrb.mxu2 %v3985_v3 }
 0x72a   :  { %3160 = vmatmul.msk.f32.vlgmr.msrb.gmra.mxu3 %vm239_vm9, %v3901_v41  ;;  %3161 = vmatmul.msk.f32.vlgmr.msra.gmra.mxu2 %vm239_vm9, %v3901_v41  ;;  %v1516_v41 = vpop.f32.mrf.mxu2 }
 0x72b   :  { %1787 = vmatpush.msra.mxu3 %v4169_v53  ;;  %1874 = vmatpush.msrb.mxu0 %v4118_v51  ;;  %v1517_v49 = vadd.f32 %v1516_v41, %v4214_v57 }
 0x72c   :  { %1934 = vmatpush.msra.mxu2 %v4000_v14 }
 0x72d   :  { %1914 = vmatpush.msrb.mxu3 %v4079_v40 }
 0x72e   :  { %1935 = vmatpush.msra.mxu2 %v4016_v20 }
 0x72f   :  { %1915 = vmatpush.msrb.mxu3 %v4089_v5 }
 0x730   :  { %1936 = vmatpush.msra.mxu2 %v4028_v23 }
 0x731   :  { %1916 = vmatpush.msrb.mxu3 %v4101_v48 }
 0x732   :  { %3167 = vmatmul.msk.f32.vlgmr.msrb.gmra.mxu2 %vm239_vm9, %v3926_v44 }
 0x733   :  { %1917 = vmatpush.msrb.mxu3 %v4113_v50  ;;  %1937 = vmatpush.msra.mxu2 %v4040_v26 }
 0x735   :  { %2061 = vmatpush.msrb.mxu2 %v4009_v19 }
 0x737   :  { %2062 = vmatpush.msrb.mxu2 %v4023_v22 }
 0x739   :  { %2063 = vmatpush.msrb.mxu2 %v4035_v25 }
 0x73b   :  { %2064 = vmatpush.msrb.mxu2 %v4047_v27 }
 0x7a0   :  { %v1619_v39 = vpop.f32.mrf.mxu0 }
 0x7a1   :  { %v1620_v7 = vadd.f32 %v4244_v33, %v1619_v39 }
 0x7a5   :  { %v1579_v34 = vpop.f32.mrf.mxu3  ;;  %v1599_v32 = vpop.f32.mrf.mxu2 }
 0x7a6   :  { %v1622_v60 = vadd.f32 %v1579_v34, %v1517_v49  ;;  %v1642_v54 = vadd.f32 %v1599_v32, %v1537_v46  ;;  %v1557_v49 = vadd.f32 %v4236_v63, %v1556_v30 }
 0x7a8   :  { %v3157_v10 = vmul.f32 -1.442695, %v1622_v60  ;;  %v3158_v8 = vmul.f32 -1.442695, %v1642_v54 }
 0x7aa   :  { %3343 = vpow2.f32 %v3157_v10 }
 0x7ab   :  { %3345 = vpow2.f32 %v3158_v8 }
 0x7b0   :  { %v3344_v35 = vpop.eup %3343 }
 0x7b1   :  { %v3346_v21 = vpop.eup %3345  ;;  %v1626_v62 = vadd.f32 1.0, %v3344_v35 }
 0x7b2   :  { %v1646_v29 = vadd.f32 1.0, %v3346_v21 }
 0x7b3   :  { %3347 = vrcp.f32 %v1626_v62  ;;  %v1638_v59 = vand.u32 2147483648, %v1626_v62  ;;  %v1636_v0 = vand.u32 2147483647, %v1626_v62  ;;  %vm1632_vm12 = vweird.f32 %v1626_v62 }
 0x7b4   :  { %3349 = vrcp.f32 %v1646_v29  ;;  %v1658_v32 = vand.u32 2147483648, %v1646_v29  ;;  %vm1652_vm0 = vweird.f32 %v1646_v29  ;;  %v1656_v60 = vand.u32 2147483647, %v1646_v29 }
 0x7b5   :  { %v1639_v16 = vor.u32 1.1754944e-38, %v1638_v59  ;;  %vm1637_vm14 = vcmp.eq.f32.partialorder %v1636_v0, 8.507059e+37 }
 0x7b6   :  { %v1659_v8 = vor.u32 1.1754944e-38, %v1658_v32  ;;  %vm1657_vm2 = vcmp.eq.f32.partialorder %v1656_v60, 8.507059e+37 }
 0x7b9   :  { %v3348_v1 = vpop.eup %3347 }
 0x7ba   :  { %v3350_v58 = vpop.eup %3349  ;;  %v1628_v28 = vmul.f32 %v3348_v1, %v1626_v62  ;;  %vm1633_vm11 = vweird.f32 %v3348_v1 }
 0x7bb   :  { %v1648_v31 = vmul.f32 %v3350_v58, %v1646_v29  ;;  %vm1634_vm13 = vmor %vm1632_vm12, %vm1633_vm11  ;;  %vm1653_vm15 = vweird.f32 %v3350_v58 }
 0x7bc   :  { %v1629_v43 = vsub.f32 1.0, %v1628_v28  ;;  %vm1654_vm1 = vmor %vm1652_vm0, %vm1653_vm15 }
 0x7bd   :  { %v1649_v36 = vsub.f32 1.0, %v1648_v31 }
 0x7be   :  { %v1630_v55 = vmul.f32 %v3348_v1, %v1629_v43 }
 0x7bf   :  { %v1650_v56 = vmul.f32 %v3350_v58, %v1649_v36 }
 0x7c0   :  { %v1631_v2 = vadd.f32 %v3348_v1, %v1630_v55 }
 0x7c1   :  { %v1651_v46 = vadd.f32 %v3350_v58, %v1650_v56 }
 0x7c2   :  { %v1635_v41 = vsel %vm1634_vm13, %v3348_v1, %v1631_v2 }
 0x7c3   :  { %v1640_v15 = vsel %vm1637_vm14, %v1639_v16, %v1635_v41  ;;  %v1655_v10 = vsel %vm1654_vm1, %v3350_v58, %v1651_v46 }
 0x7c4   :  { %v1662_v34 = vmul.f32 %v1640_v15, %v1620_v7  ;;  %v1660_v35 = vsel %vm1657_vm2, %v1659_v8, %v1655_v10 }
 0x7c5   :  { %v1665_v21 = vsub.f32 1.0, %v1660_v35  ;;  %v1667_v28 = vmul.f32 %v1660_v35, %v4275_v61 }
 0x7c6   :  { %v1663_v54 = vadd.f32 %v1662_v34, %v1557_v49  ;;  %v1726_v49 = vpop.f32.mrf.mxu2 }
 0x7c7   :  { %v1727_v8 = vadd.f32 %v4236_v63, %v1726_v49 }
 0x7c8   :  { %3351 = vtanh.f32 %v1663_v54 }
 0x7ce   :  { %v3352_v62 = vpop.eup %3351 }
 0x7cf   :  { %v1666_v1 = vmul.f32 %v3352_v62, %v1665_v21 }
 0x7d1   :  { %v4318_v31 = vadd.f32 %v1667_v28, %v1666_v1 }
 0x7d3   :  { %3162 = vmatmul.msk.f32.vlgmr.msra.gmra.mxu0 %vm239_vm9, %v4318_v31  ;;  %3163 = vmatmul.msk.f32.vlgmr.msra.gmra.mxu1 %vm239_vm9, %v4318_v31 }
 0x7d4   :  { %3164 = vmatmul.msk.f32.vlgmr.msra.gmra.mxu3 %vm239_vm9, %v4318_v31  ;;  %2021 = vmatpush.msra.mxu1 %v3968_v17  ;;  %v1706_v17 = vpop.f32.mrf.mxu3 }
 0x7d5   :  { %1954 = vmatpush.msra.mxu0 %v4139_v11  ;;  %2041 = vmatpush.msra.mxu3 %v4084_v45 }
 0x7d6   :  { %2022 = vmatpush.msra.mxu1 %v3973_v18 }
 0x7d7   :  { %1955 = vmatpush.msra.mxu0 %v4151_v4  ;;  %2042 = vmatpush.msra.mxu3 %v4096_v47 }
 0x7d8   :  { %2023 = vmatpush.msra.mxu1 %v3979_v42  ;;  %v1707_v42 = vadd.f32 %v1706_v17, %v4225_v38 }
 0x7d9   :  { %1956 = vmatpush.msra.mxu0 %v4159_v52  ;;  %2043 = vmatpush.msra.mxu3 %v4106_v6 }
 0x7da   :  { %2024 = vmatpush.msra.mxu1 %v3985_v3 }
 0x7db   :  { %3168 = vmatmul.msk.f32.vlgmr.msrb.gmra.mxu0 %vm239_vm9, %v3926_v44  ;;  %3169 = vmatmul.msk.f32.vlgmr.msrb.gmra.mxu1 %vm239_vm9, %v3926_v44  ;;  %v1686_v44 = vpop.f32.mrf.mxu1 }
 0x7dc   :  { %1957 = vmatpush.msra.mxu0 %v4169_v53  ;;  %2044 = vmatpush.msra.mxu3 %v4118_v51  ;;  %v1687_v18 = vadd.f32 %v1686_v44, %v4214_v57 }
 0x7dd   :  { %2104 = vmatpush.msrb.mxu1 %v4000_v14 }
 0x7de   :  { %2084 = vmatpush.msrb.mxu0 %v4079_v40 }
 0x7df   :  { %2105 = vmatpush.msrb.mxu1 %v4016_v20 }
 0x7e0   :  { %2085 = vmatpush.msrb.mxu0 %v4089_v5 }
 0x7e1   :  { %2106 = vmatpush.msrb.mxu1 %v4028_v23 }
 0x7e2   :  { %2086 = vmatpush.msrb.mxu0 %v4101_v48 }
 0x7e3   :  { %3175 = vmatmul.msk.f32.vlgmr.msra.gmra.mxu1 %vm239_vm9, %v3951_v24 }
 0x7e4   :  { %2087 = vmatpush.msrb.mxu0 %v4113_v50  ;;  %2107 = vmatpush.msrb.mxu1 %v4040_v26 }
 0x7e6   :  { %2231 = vmatpush.msra.mxu1 %v4009_v19 }
 0x7e8   :  { %2232 = vmatpush.msra.mxu1 %v4023_v22 }
 0x7ea   :  { %2233 = vmatpush.msra.mxu1 %v4035_v25 }
 0x7ec   :  { %2234 = vmatpush.msra.mxu1 %v4047_v27 }
 0x850   :  { %v1749_v3 = vpop.f32.mrf.mxu0  ;;  %v1769_v29 = vpop.f32.mrf.mxu1 }
 0x851   :  { %v1792_v58 = vadd.f32 %v1749_v3, %v1687_v18  ;;  %v1812_v43 = vadd.f32 %v1769_v29, %v1707_v42  ;;  %v3213_v18 = vsel %vm2822_vm8, 1.0, %v4816_v37  ;;  %v3219_v42 = vsel %vm2921_vm10, 1.0, %v4816_v37 }
 0x852   :  { %v3241_v29 = vpack.i.bf16 %v3219_v42, %v3213_v18 }
 0x853   :  { %v3165_v59 = vmul.f32 -1.442695, %v1792_v58  ;;  %v3166_v36 = vmul.f32 -1.442695, %v1812_v43 }
 0x854   :  { %3242 = vperm.xlu2 %3240, %v3241_v29  }
 0x855   :  { %3353 = vpow2.f32 %v3165_v59 }
 0x856   :  { %3355 = vpow2.f32 %v3166_v36 }
 0x857   :  { %v1789_v54 = vpop.f32.mrf.mxu3 }
 0x858   :  { %v1790_v21 = vadd.f32 %v4244_v33, %v1789_v54 }
 0x85b   :  { %v3354_v55 = vpop.eup %3353 }
 0x85c   :  { %v3356_v0 = vpop.eup %3355  ;;  %v1796_v39 = vadd.f32 1.0, %v3354_v55 }
 0x85d   :  { %v1816_v56 = vadd.f32 1.0, %v3356_v0 }
 0x85e   :  { %3357 = vrcp.f32 %v1796_v39  ;;  %v1808_v46 = vand.u32 2147483648, %v1796_v39  ;;  %v1806_v32 = vand.u32 2147483647, %v1796_v39  ;;  %vm1802_vm4 = vweird.f32 %v1796_v39 }
 0x85f   :  { %3359 = vrcp.f32 %v1816_v56  ;;  %v1828_v44 = vand.u32 2147483648, %v1816_v56  ;;  %vm1822_vm11 = vweird.f32 %v1816_v56  ;;  %v1826_v3 = vand.u32 2147483647, %v1816_v56 }
 0x860   :  { %v1809_v35 = vor.u32 1.1754944e-38, %v1808_v46  ;;  %vm1807_vm7 = vcmp.eq.f32.partialorder %v1806_v32, 8.507059e+37 }
 0x861   :  { %v1829_v59 = vor.u32 1.1754944e-38, %v1828_v44  ;;  %vm1827_vm13 = vcmp.eq.f32.partialorder %v1826_v3, 8.507059e+37 }
 0x864   :  { %v3358_v2 = vpop.eup %3357 }
 0x865   :  { %v3360_v30 = vpop.eup %3359  ;;  %v1798_v16 = vmul.f32 %v3358_v2, %v1796_v39  ;;  %vm1803_vm3 = vweird.f32 %v3358_v2 }
 0x866   :  { %v1818_v7 = vmul.f32 %v3360_v30, %v1816_v56  ;;  %vm1804_vm5 = vmor %vm1802_vm4, %vm1803_vm3  ;;  %vm1823_vm6 = vweird.f32 %v3360_v30  ;;  %v4377_v56 = vld [vmem:[%s4798_s5 + $0x78] sm:$0xff]  ;;  %vm2855_vm3 = vcmp.gt.s32.totalorder %v3573_v12, 4 }
 0x867   :  { %v1799_v41 = vsub.f32 1.0, %v1798_v16  ;;  %vm1824_vm12 = vmor %vm1822_vm11, %vm1823_vm6  ;;  %v3215_v3 = vsel %vm2855_vm3, 1.0, %v4816_v37  ;;  %v4444_v37 = vld [vmem:[%s4798_s5 + $0x98] sm:$0xff] }
 0x868   :  { %v1819_v15 = vsub.f32 1.0, %v1818_v7  ;;  %v4393_v7 = vld [vmem:[%s4798_s5 + $0x68] sm:$0xff]  ;;  %2860 = vperm.xlu2 %3240, %v3215_v3  }
 0x869   :  { %v1800_v34 = vmul.f32 %v3358_v2, %v1799_v41 }
 0x86a   :  { %v1820_v60 = vmul.f32 %v3360_v30, %v1819_v15 }
 0x86b   :  { %v1801_v10 = vadd.f32 %v3358_v2, %v1800_v34 }
 0x86c   :  { %v1821_v1 = vadd.f32 %v3360_v30, %v1820_v60 }
 0x86d   :  { %v1805_v62 = vsel %vm1804_vm5, %v3358_v2, %v1801_v10 }
 0x86e   :  { %v1810_v28 = vsel %vm1807_vm7, %v1809_v35, %v1805_v62  ;;  %v1825_v43 = vsel %vm1824_vm12, %v3360_v30, %v1821_v1  ;;  %v4385_v30 = vld [vmem:[%s4798_s5 + $0x70] sm:$0xff]  ;;  %v1896_v35 = vpop.f32.mrf.mxu1 }
 0x86f   :  { %v1832_v17 = vmul.f32 %v1810_v28, %v1790_v21  ;;  %v1830_v36 = vsel %vm1827_vm13, %v1829_v59, %v1825_v43 }
 0x870   :  { %v1835_v55 = vsub.f32 1.0, %v1830_v36  ;;  %v1837_v2 = vmul.f32 %v1830_v36, %v4318_v31 }
 0x871   :  { %v1833_v58 = vadd.f32 %v1832_v17, %v1727_v8  ;;  %v1897_v17 = vadd.f32 %v4236_v63, %v1896_v35 }
 0x873   :  { %3361 = vtanh.f32 %v1833_v58 }
 0x879   :  { %v3362_v0 = vpop.eup %3361 }
 0x87a   :  { %v1836_v39 = vmul.f32 %v3362_v0, %v1835_v55 }
 0x87c   :  { %v4366_v16 = vadd.f32 %v1837_v2, %v1836_v39 }
 0x87e   :  { %3170 = vmatmul.msk.f32.vlgmr.msrb.gmra.mxu3 %vm239_vm9, %v4366_v16  ;;  %3171 = vmatmul.msk.f32.vlgmr.msra.gmra.mxu2 %vm239_vm9, %v4366_v16 }
 0x87f   :  { %3172 = vmatmul.msk.f32.vlgmr.msra.gmra.mxu0 %vm239_vm9, %v4366_v16  ;;  %2191 = vmatpush.msra.mxu2 %v4377_v56 }
 0x880   :  { %2124 = vmatpush.msrb.mxu3 %v4139_v11  ;;  %2211 = vmatpush.msra.mxu0 %v4084_v45  ;;  %v4401_v45 = vld [vmem:[%s4798_s5 + $0x60] sm:$0xff] }
 0x881   :  { %2192 = vmatpush.msra.mxu2 %v4385_v30 }
 0x882   :  { %2125 = vmatpush.msrb.mxu3 %v4151_v4  ;;  %2212 = vmatpush.msra.mxu0 %v4096_v47 }
 0x883   :  { %2193 = vmatpush.msra.mxu2 %v4393_v7 }
 0x884   :  { %2126 = vmatpush.msrb.mxu3 %v4159_v52  ;;  %2213 = vmatpush.msra.mxu0 %v4106_v6 }
 0x885   :  { %2194 = vmatpush.msra.mxu2 %v4401_v45 }
 0x886   :  { %3176 = vmatmul.msk.f32.vlgmr.msra.gmra.mxu3 %vm239_vm9, %v3951_v24  ;;  %3177 = vmatmul.msk.f32.vlgmr.msrb.gmra.mxu2 %vm239_vm9, %v3951_v24  ;;  %v1856_v24 = vpop.f32.mrf.mxu2 }
 0x887   :  { %2127 = vmatpush.msrb.mxu3 %v4169_v53  ;;  %2214 = vmatpush.msra.mxu0 %v4118_v51 }
 0x888   :  { %2274 = vmatpush.msrb.mxu2 %v4000_v14  ;;  %v1876_v14 = vpop.f32.mrf.mxu0 }
 0x889   :  { %2254 = vmatpush.msra.mxu3 %v4079_v40 }
 0x88a   :  { %2275 = vmatpush.msrb.mxu2 %v4016_v20  ;;  %v1857_v20 = vadd.f32 %v1856_v24, %v4214_v57  ;;  %v4452_v24 = vld [vmem:[%s4798_s5 + $0x90] sm:$0xff] }
 0x88b   :  { %2255 = vmatpush.msra.mxu3 %v4089_v5 }
 0x88c   :  { %2276 = vmatpush.msrb.mxu2 %v4028_v23  ;;  %v1877_v23 = vadd.f32 %v1876_v14, %v4225_v38  ;;  %v4496_v14 = vld [vmem:[%s4799_s6 + $0x90] sm:$0xff] }
 0x88d   :  { %2256 = vmatpush.msra.mxu3 %v4101_v48 }
 0x88e   :  { %3183 = vmatmul.msk.f32.vlgmr.msra.gmra.mxu2 %vm239_vm9, %v3995_v13 }
 0x88f   :  { %2257 = vmatpush.msra.mxu3 %v4113_v50  ;;  %2277 = vmatpush.msrb.mxu2 %v4040_v26 }
 0x891   :  { %2401 = vmatpush.msra.mxu2 %v4009_v19 }
 0x893   :  { %2402 = vmatpush.msra.mxu2 %v4023_v22 }
 0x895   :  { %2403 = vmatpush.msra.mxu2 %v4035_v25 }
 0x897   :  { %2404 = vmatpush.msra.mxu2 %v4047_v27 }
 0x8fc   :  { %v1959_v54 = vpop.f32.mrf.mxu0 }
 0x8fd   :  { %v1960_v62 = vadd.f32 %v4244_v33, %v1959_v54 }
 0x901   :  { %v1919_v40 = vpop.f32.mrf.mxu3  ;;  %v1939_v5 = vpop.f32.mrf.mxu2 }
 0x902   :  { %v1962_v47 = vadd.f32 %v1919_v40, %v1857_v20  ;;  %v1982_v48 = vadd.f32 %v1939_v5, %v1877_v23  ;;  %v4502_v20 = vld [vmem:[%s4799_s6 + $0x68] sm:$0xff]  ;;  %v4516_v5 = vld [vmem:[%s4799_s6 + $0x60] sm:$0xff] }
 0x903   :  { %v4508_v23 = vld [vmem:[%s4799_s6 + $0x88] sm:$0xff] }
 0x904   :  { %v3173_v6 = vmul.f32 -1.442695, %v1962_v47  ;;  %v3174_v26 = vmul.f32 -1.442695, %v1982_v48  ;;  %v4817_v40 = vld [vmem:[#allocation5_spill] sm:$0xff]  ;;  %v3430_v48 = vld [vmem:[%s4798_s5 + $0xb8] sm:$0xff] }
 0x905   :  { %v4522_v47 = vld [vmem:[%s4799_s6 + $0x80] sm:$0xff] }
 0x906   :  { %3363 = vpow2.f32 %v3173_v6  ;;  %v3431_v6 = vld [vmem:[%s4798_s5 + $0xb0] sm:$0xff] }
 0x907   :  { %3365 = vpow2.f32 %v3174_v26  ;;  %v3432_v26 = vld [vmem:[%s4798_s5 + $0xa8] sm:$0xff] }
 0x90c   :  { %v3364_v19 = vpop.eup %3363 }
 0x90d   :  { %v3366_v22 = vpop.eup %3365  ;;  %v1966_v50 = vadd.f32 1.0, %v3364_v19  ;;  %v3433_v19 = vld [vmem:[%s4798_s5 + $0xa0] sm:$0xff] }
 0x90e   :  { %v1986_v25 = vadd.f32 1.0, %v3366_v22  ;;  %v2026_v22 = vpop.f32.mrf.mxu1 }
 0x90f   :  { %3367 = vrcp.f32 %v1966_v50  ;;  %v1978_v49 = vand.u32 2147483648, %v1966_v50  ;;  %v1976_v60 = vand.u32 2147483647, %v1966_v50  ;;  %vm1972_vm15 = vweird.f32 %v1966_v50 }
 0x910   :  { %3369 = vrcp.f32 %v1986_v25  ;;  %v1998_v42 = vand.u32 2147483648, %v1986_v25  ;;  %vm1992_vm4 = vweird.f32 %v1986_v25  ;;  %v1996_v29 = vand.u32 2147483647, %v1986_v25 }
 0x911   :  { %v1979_v21 = vor.u32 1.1754944e-38, %v1978_v49  ;;  %vm1977_vm1 = vcmp.eq.f32.partialorder %v1976_v60, 8.507059e+37 }
 0x912   :  { %v1999_v59 = vor.u32 1.1754944e-38, %v1998_v42  ;;  %vm1997_vm6 = vcmp.eq.f32.partialorder %v1996_v29, 8.507059e+37 }
 0x915   :  { %v3368_v27 = vpop.eup %3367 }
 0x916   :  { %v3370_v51 = vpop.eup %3369  ;;  %v1968_v41 = vmul.f32 %v3368_v27, %v1966_v50  ;;  %vm1973_vm14 = vweird.f32 %v3368_v27  ;;  %v2046_v50 = vpop.f32.mrf.mxu3 }
 0x917   :  { %v1988_v15 = vmul.f32 %v3370_v51, %v1986_v25  ;;  %vm1974_vm0 = vmor %vm1972_vm15, %vm1973_vm14  ;;  %vm1993_vm2 = vweird.f32 %v3370_v51  ;;  %v2027_v25 = vadd.f32 %v2026_v22, %v4214_v57 }
 0x918   :  { %v1969_v46 = vsub.f32 1.0, %v1968_v41  ;;  %vm1994_vm5 = vmor %vm1992_vm4, %vm1993_vm2 }
 0x919   :  { %v1989_v34 = vsub.f32 1.0, %v1988_v15 }
 0x91a   :  { %v1970_v32 = vmul.f32 %v3368_v27, %v1969_v46 }
 0x91b   :  { %v1990_v10 = vmul.f32 %v3370_v51, %v1989_v34 }
 0x91c   :  { %v1971_v8 = vadd.f32 %v3368_v27, %v1970_v32 }
 0x91d   :  { %v1991_v44 = vadd.f32 %v3370_v51, %v1990_v10 }
 0x91e   :  { %v1975_v1 = vsel %vm1974_vm0, %v3368_v27, %v1971_v8  ;;  %v2047_v27 = vadd.f32 %v2046_v50, %v4225_v38 }
 0x91f   :  { %v1980_v28 = vsel %vm1977_vm1, %v1979_v21, %v1975_v1  ;;  %v1995_v43 = vsel %vm1994_vm5, %v3370_v51, %v1991_v44 }
 0x920   :  { %v2002_v18 = vmul.f32 %v1980_v28, %v1960_v62  ;;  %v2000_v36 = vsel %vm1997_vm6, %v1999_v59, %v1995_v43 }
 0x921   :  { %v2005_v55 = vsub.f32 1.0, %v2000_v36  ;;  %v2007_v12 = vmul.f32 %v2000_v36, %v4366_v16 }
 0x922   :  { %v2003_v58 = vadd.f32 %v2002_v18, %v1897_v17 }
 0x924   :  { %3371 = vtanh.f32 %v2003_v58  ;;  %v2066_v58 = vpop.f32.mrf.mxu2 }
 0x92a   :  { %v3372_v0 = vpop.eup %3371 }
 0x92b   :  { %v2006_v39 = vmul.f32 %v3372_v0, %v2005_v55 }
 0x92d   :  { %v4431_v2 = vadd.f32 %v2007_v12, %v2006_v39  ;;  %v2067_v39 = vadd.f32 %v4236_v63, %v2066_v58  ;;  %v4554_v63 = vld [vmem:[%s4799_s6 + $0xb8] sm:$0xff] }
 0x92f   :  { %3178 = vmatmul.msk.f32.vlgmr.msrb.gmra.mxu0 %vm239_vm9, %v4431_v2  ;;  %3179 = vmatmul.msk.f32.vlgmr.msrb.gmra.mxu1 %vm239_vm9, %v4431_v2 }
 0x930   :  { %3180 = vmatmul.msk.f32.vlgmr.msrb.gmra.mxu3 %vm239_vm9, %v4431_v2  ;;  %2361 = vmatpush.msrb.mxu1 %v4377_v56 }
 0x931   :  { %2294 = vmatpush.msrb.mxu0 %v4139_v11  ;;  %2381 = vmatpush.msrb.mxu3 %v4444_v37  ;;  %v4460_v11 = vld [vmem:[%s4798_s5 + $0x88] sm:$0xff] }
 0x932   :  { %2362 = vmatpush.msrb.mxu1 %v4385_v30 }
 0x933   :  { %2295 = vmatpush.msrb.mxu0 %v4151_v4  ;;  %2382 = vmatpush.msrb.mxu3 %v4452_v24  ;;  %v4472_v4 = vld [vmem:[%s4798_s5 + $0x80] sm:$0xff] }
 0x934   :  { %2363 = vmatpush.msrb.mxu1 %v4393_v7 }
 0x935   :  { %2296 = vmatpush.msrb.mxu0 %v4159_v52  ;;  %2383 = vmatpush.msrb.mxu3 %v4460_v11  ;;  %v4478_v52 = vld [vmem:[%s4799_s6 + $0x78] sm:$0xff] }
 0x936   :  { %2364 = vmatpush.msrb.mxu1 %v4401_v45 }
 0x937   :  { %3184 = vmatmul.msk.f32.vlgmr.msra.gmra.mxu0 %vm239_vm9, %v3995_v13  ;;  %3185 = vmatmul.msk.f32.vlgmr.msra.gmra.mxu1 %vm239_vm9, %v3995_v13  ;;  %v4484_v13 = vld [vmem:[%s4799_s6 + $0x98] sm:$0xff] }
 0x938   :  { %2297 = vmatpush.msrb.mxu0 %v4169_v53  ;;  %2384 = vmatpush.msrb.mxu3 %v4472_v4  ;;  %v4490_v53 = vld [vmem:[%s4799_s6 + $0x70] sm:$0xff] }
 0x939   :  { %2444 = vmatpush.msra.mxu1 %v4484_v13 }
 0x93a   :  { %2424 = vmatpush.msra.mxu0 %v4478_v52 }
 0x93b   :  { %2445 = vmatpush.msra.mxu1 %v4496_v14 }
 0x93c   :  { %2425 = vmatpush.msra.mxu0 %v4490_v53 }
 0x93d   :  { %2446 = vmatpush.msra.mxu1 %v4508_v23 }
 0x93e   :  { %2426 = vmatpush.msra.mxu0 %v4502_v20 }
 0x93f   :  { %3191 = vmatmul.msk.f32.vlgmr.msrb.gmra.mxu1 %vm239_vm9, %v4817_v40 }
 0x940   :  { %2427 = vmatpush.msra.mxu0 %v4516_v5  ;;  %2447 = vmatpush.msra.mxu1 %v4522_v47 }
 0x942   :  { %2575 = vmatpush.msrb.mxu1 %v3430_v48 }
 0x944   :  { %2576 = vmatpush.msrb.mxu1 %v3431_v6 }
 0x946   :  { %2577 = vmatpush.msrb.mxu1 %v3432_v26 }
 0x948   :  { %2578 = vmatpush.msrb.mxu1 %v3433_v19 }
 0x9ac   :  { %v2089_v51 = vpop.f32.mrf.mxu0  ;;  %v2109_v41 = vpop.f32.mrf.mxu1 }
 0x9ad   :  { %v2132_v15 = vadd.f32 %v2089_v51, %v2027_v25  ;;  %v2152_v46 = vadd.f32 %v2109_v41, %v2047_v27 }
 0x9af   :  { %v3181_v49 = vmul.f32 -1.442695, %v2132_v15  ;;  %v3182_v34 = vmul.f32 -1.442695, %v2152_v46  ;;  %v4562_v46 = vld [vmem:[%s4799_s6 + $0xb0] sm:$0xff] }
 0x9b1   :  { %3373 = vpow2.f32 %v3181_v49 }
 0x9b2   :  { %3375 = vpow2.f32 %v3182_v34 }
 0x9b3   :  { %v2129_v3 = vpop.f32.mrf.mxu3 }
 0x9b4   :  { %v2130_v59 = vadd.f32 %v4244_v33, %v2129_v3 }
 0x9b7   :  { %v3374_v32 = vpop.eup %3373 }
 0x9b8   :  { %v3376_v60 = vpop.eup %3375  ;;  %v2136_v54 = vadd.f32 1.0, %v3374_v32 }
 0x9b9   :  { %v2156_v10 = vadd.f32 1.0, %v3376_v60 }
 0x9ba   :  { %3377 = vrcp.f32 %v2136_v54  ;;  %v2148_v44 = vand.u32 2147483648, %v2136_v54  ;;  %v2146_v18 = vand.u32 2147483647, %v2136_v54  ;;  %vm2142_vm8 = vweird.f32 %v2136_v54 }
 0x9bb   :  { %3379 = vrcp.f32 %v2156_v10  ;;  %v2168_v12 = vand.u32 2147483648, %v2156_v10  ;;  %vm2162_vm13 = vweird.f32 %v2156_v10  ;;  %v2166_v6 = vand.u32 2147483647, %v2156_v10 }
 0x9bc   :  { %v2149_v43 = vor.u32 1.1754944e-38, %v2148_v44  ;;  %vm2147_vm11 = vcmp.eq.f32.partialorder %v2146_v18, 8.507059e+37 }
 0x9bd   :  { %v2169_v22 = vor.u32 1.1754944e-38, %v2168_v12  ;;  %vm2167_vm15 = vcmp.eq.f32.partialorder %v2166_v6, 8.507059e+37 }
 0x9c0   :  { %v3378_v8 = vpop.eup %3377 }
 0x9c1   :  { %v3380_v35 = vpop.eup %3379  ;;  %v2138_v21 = vmul.f32 %v3378_v8, %v2136_v54  ;;  %vm2143_vm7 = vweird.f32 %v3378_v8 }
 0x9c2   :  { %v2158_v62 = vmul.f32 %v3380_v35, %v2156_v10  ;;  %vm2144_vm10 = vmor %vm2142_vm8, %vm2143_vm7  ;;  %vm2163_vm12 = vweird.f32 %v3380_v35 }
 0x9c3   :  { %v2139_v1 = vsub.f32 1.0, %v2138_v21  ;;  %vm2164_vm14 = vmor %vm2162_vm13, %vm2163_vm12 }
 0x9c4   :  { %v2159_v28 = vsub.f32 1.0, %v2158_v62 }
 0x9c5   :  { %v2140_v17 = vmul.f32 %v3378_v8, %v2139_v1 }
 0x9c6   :  { %v2160_v42 = vmul.f32 %v3380_v35, %v2159_v28  ;;  %v2236_v28 = vpop.f32.mrf.mxu1 }
 0x9c7   :  { %v2141_v29 = vadd.f32 %v3378_v8, %v2140_v17 }
 0x9c8   :  { %v2161_v55 = vadd.f32 %v3380_v35, %v2160_v42 }
 0x9c9   :  { %v2145_v36 = vsel %vm2144_vm10, %v3378_v8, %v2141_v29  ;;  %v4605_v29 = vld [vmem:[%s4800_s7 + $0x5] ss:$0 sm:$0xff]  ;;  %s3031_s7 = sshll.u32 %s3469_s20, 4  ;;  %s3032_s7 = int_to_ptr.vmem [resolvable:$true] %s3031_s7 }
 0x9ca   :  { %v2150_v0 = vsel %vm2147_vm11, %v2149_v43, %v2145_v36  ;;  %v2165_v19 = vsel %vm2164_vm14, %v3380_v35, %v2161_v55  ;;  %v2237_v58 = vadd.f32 %v4605_v29, %v2236_v28  ;;  %v2701_v28 = vld [vmem:[%s4802_s9 + $0x40] sm:$0xff] }
 0x9cb   :  { %v2172_v48 = vmul.f32 %v2150_v0, %v2130_v59  ;;  %v2170_v50 = vsel %vm2167_vm15, %v2169_v22, %v2165_v19  ;;  %v2700_v22 = vld [vmem:[%s4802_s9 + $0x38] sm:$0xff] }
 0x9cc   :  { %v2175_v25 = vsub.f32 1.0, %v2170_v50  ;;  %v2177_v41 = vmul.f32 %v2170_v50, %v4431_v2  ;;  %v4614_v50 = vpop.permute.xlu1 %3231 }
 0x9cd   :  { %v2173_v26 = vadd.f32 %v2172_v48, %v2067_v39 }
 0x9cf   :  { %3381 = vtanh.f32 %v2173_v26 }
 0x9d5   :  { %v3382_v27 = vpop.eup %3381 }
 0x9d6   :  { %v2176_v51 = vmul.f32 %v3382_v27, %v2175_v25  ;;  %v2699_v25 = vld [vmem:[%s4802_s9 + $0x30] sm:$0xff]  ;;  %v2698_v27 = vld [vmem:[%s4802_s9 + $0x28] sm:$0xff] }
 0x9d8   :  { %v4542_v15 = vadd.f32 %v2177_v41, %v2176_v51  ;;  %v2697_v51 = vld [vmem:[%s4802_s9 + $0x20] sm:$0xff]  ;;  %v2712_v41 = vld [vmem:[%s4802_s9 + $0x98] sm:$0xff] }
 0x9da   :  { %3186 = vmatmul.msk.f32.vlgmr.msra.gmra.mxu3 %vm239_vm9, %v4542_v15  ;;  %3187 = vmatmul.msk.f32.vlgmr.msrb.gmra.mxu2 %vm239_vm9, %v4542_v15 }
 0x9db   :  { %3188 = vmatmul.msk.f32.vlgmr.msrb.gmra.mxu0 %vm239_vm9, %v4542_v15  ;;  %2535 = vmatpush.msrb.mxu2 %v4377_v56  ;;  %v4570_v56 = vld [vmem:[%s4799_s6 + $0xa8] sm:$0xff] }
 0x9dc   :  { %2464 = vmatpush.msra.mxu3 %v4554_v63  ;;  %2555 = vmatpush.msrb.mxu0 %v4444_v37  ;;  %v2216_v37 = vpop.f32.mrf.mxu0 }
 0x9dd   :  { %2536 = vmatpush.msrb.mxu2 %v4385_v30  ;;  %v4582_v30 = vld [vmem:[%s4799_s6 + $0xa0] sm:$0xff] }
 0x9de   :  { %2465 = vmatpush.msra.mxu3 %v4562_v46  ;;  %2556 = vmatpush.msrb.mxu0 %v4452_v24 }
 0x9df   :  { %2537 = vmatpush.msrb.mxu2 %v4393_v7  ;;  %v4591_v7 = vrot.slane %v4273_v9, 6 }
 0x9e0   :  { %2466 = vmatpush.msra.mxu3 %v4570_v56  ;;  %2557 = vmatpush.msrb.mxu0 %v4460_v11  ;;  %v2217_v11 = vadd.f32 %v2216_v37, %v4225_v38  ;;  %v4651_v37 = vpop.permute.xlu2 %3242 }
 0x9e1   :  { %2538 = vmatpush.msrb.mxu2 %v4401_v45  ;;  %v2196_v45 = vpop.f32.mrf.mxu2 }
 0x9e2   :  { %3192 = vmatmul.msk.f32.vlgmr.msrb.gmra.mxu3 %vm239_vm9, %v4817_v40  ;;  %3193 = vmatmul.msk.f32.vlgmr.msra.gmra.mxu2 %vm239_vm9, %v4817_v40  ;;  %v2197_v24 = vadd.f32 %v2196_v45, %v4214_v57  ;;  %v4637_v45 = vpop.permute.xlu1 %3236 }
 0x9e3   :  { %2467 = vmatpush.msra.mxu3 %v4582_v30  ;;  %2558 = vmatpush.msrb.mxu0 %v4472_v4 }
 0x9e4   :  { %2618 = vmatpush.msra.mxu2 %v4484_v13 }
 0x9e5   :  { %2598 = vmatpush.msrb.mxu3 %v4478_v52 }
 0x9e6   :  { %2619 = vmatpush.msra.mxu2 %v4496_v14 }
 0x9e7   :  { %2599 = vmatpush.msrb.mxu3 %v4490_v53 }
 0x9e8   :  { %2620 = vmatpush.msra.mxu2 %v4508_v23 }
 0x9e9   :  { %2600 = vmatpush.msrb.mxu3 %v4502_v20 }
 0x9ea   :  { %3199 = vmatmul.msk.f32.vlgmr.msrb.gmra.mxu2 %vm239_vm9, %v4591_v7 }
 0x9eb   :  { %2601 = vmatpush.msrb.mxu3 %v4516_v5  ;;  %2621 = vmatpush.msra.mxu2 %v4522_v47 }
 0xa58   :  { %v2299_v21 = vpop.f32.mrf.mxu0 }
 0xa59   :  { %v2300_v17 = vadd.f32 %v4244_v33, %v2299_v21  ;;  %v2702_v21 = vld [vmem:[%s4802_s9 + $0x48] sm:$0xff] }
 0xa5d   :  { %v2259_v4 = vpop.f32.mrf.mxu3  ;;  %v2279_v9 = vpop.f32.mrf.mxu2 }
 0xa5e   :  { %v2302_v52 = vadd.f32 %v2259_v4, %v2197_v24  ;;  %v2322_v13 = vadd.f32 %v2279_v9, %v2217_v11  ;;  %v2366_v4 = vpop.f32.mrf.mxu1 }
 0xa60   :  { %v3189_v53 = vmul.f32 -1.442695, %v2302_v52  ;;  %v3190_v14 = vmul.f32 -1.442695, %v2322_v13  ;;  %v2367_v52 = vadd.f32 %v2366_v4, %v4214_v57 }
 0xa62   :  { %3383 = vpow2.f32 %v3189_v53 }
 0xa63   :  { %3385 = vpow2.f32 %v3190_v14 }
 0xa65   :  { %v2386_v9 = vpop.f32.mrf.mxu3 }
 0xa66   :  { %v2387_v13 = vadd.f32 %v2386_v9, %v4225_v38 }
 0xa68   :  { %v3384_v20 = vpop.eup %3383 }
 0xa69   :  { %v3386_v23 = vpop.eup %3385  ;;  %v2306_v40 = vadd.f32 1.0, %v3384_v20 }
 0xa6a   :  { %v2326_v5 = vadd.f32 1.0, %v3386_v23 }
 0xa6b   :  { %3387 = vrcp.f32 %v2306_v40  ;;  %v2318_v54 = vand.u32 2147483648, %v2306_v40  ;;  %v2316_v35 = vand.u32 2147483647, %v2306_v40  ;;  %vm2312_vm1 = vweird.f32 %v2306_v40 }
 0xa6c   :  { %3389 = vrcp.f32 %v2326_v5  ;;  %v2338_v59 = vand.u32 2147483648, %v2326_v5  ;;  %vm2332_vm5 = vweird.f32 %v2326_v5  ;;  %v2336_v36 = vand.u32 2147483647, %v2326_v5 }
 0xa6d   :  { %v2319_v44 = vor.u32 1.1754944e-38, %v2318_v54  ;;  %vm2317_vm3 = vcmp.eq.f32.partialorder %v2316_v35, 8.507059e+37  ;;  %v2695_v54 = vld [vmem:[%s4802_s9 + $0x10] sm:$0xff]  ;;  %v2694_v35 = vld [vmem:[%s4802_s9 + $0x8] sm:$0xff] }
 0xa6e   :  { %v2339_v33 = vor.u32 1.1754944e-38, %v2338_v59  ;;  %vm2337_vm7 = vcmp.eq.f32.partialorder %v2336_v36, 8.507059e+37 }
 0xa71   :  { %v3388_v47 = vpop.eup %3387 }
 0xa72   :  { %v3390_v49 = vpop.eup %3389  ;;  %v2308_v34 = vmul.f32 %v3388_v47, %v2306_v40  ;;  %vm2313_vm0 = vweird.f32 %v3388_v47 }
 0xa73   :  { %v2328_v32 = vmul.f32 %v3390_v49, %v2326_v5  ;;  %vm2314_vm2 = vmor %vm2312_vm1, %vm2313_vm0  ;;  %vm2333_vm4 = vweird.f32 %v3390_v49 }
 0xa74   :  { %v2309_v60 = vsub.f32 1.0, %v2308_v34  ;;  %vm2334_vm6 = vmor %vm2332_vm5, %vm2333_vm4  ;;  %v2696_v34 = vld [vmem:[%s4802_s9 + $0x18] sm:$0xff] }
 0xa75   :  { %v2329_v10 = vsub.f32 1.0, %v2328_v32  ;;  %v2704_v32 = vld [vmem:[%s4802_s9 + $0x58] sm:$0xff] }
 0xa76   :  { %v2310_v8 = vmul.f32 %v3388_v47, %v2309_v60  ;;  %v2708_v60 = vld [vmem:[%s4802_s9 + $0x78] sm:$0xff]  ;;  %2813 = vmatpush.msrb.mxu2 %v2704_v32  ;;  %v2717_v32 = vld [vmem:[%s4802_s9 + $0xc0] sm:$0xff] }
 0xa77   :  { %v2330_v62 = vmul.f32 %v3390_v49, %v2329_v10  ;;  %v2703_v10 = vld [vmem:[%s4802_s9 + $0x50] sm:$0xff] }
 0xa78   :  { %v2311_v1 = vadd.f32 %v3388_v47, %v2310_v8  ;;  %v2707_v8 = vld [vmem:[%s4802_s9 + $0x70] sm:$0xff]  ;;  %2814 = vmatpush.msrb.mxu2 %v2703_v10 }
 0xa79   :  { %v2331_v3 = vadd.f32 %v3390_v49, %v2330_v62  ;;  %v2706_v62 = vld [vmem:[%s4802_s9 + $0x68] sm:$0xff] }
 0xa7a   :  { %v2315_v18 = vsel %vm2314_vm2, %v3388_v47, %v2311_v1  ;;  %v2693_v1 = vld [vmem:[%s4802_s9] sm:$0xff]  ;;  %2815 = vmatpush.msrb.mxu2 %v2702_v21 }
 0xa7b   :  { %v2320_v42 = vsel %vm2317_vm3, %v2319_v44, %v2315_v18  ;;  %v2335_v0 = vsel %vm2334_vm6, %v3390_v49, %v2331_v3 }
 0xa7c   :  { %v2342_v43 = vmul.f32 %v2320_v42, %v2300_v17  ;;  %v2340_v39 = vsel %vm2337_vm7, %v2339_v33, %v2335_v0  ;;  %v2705_v17 = vld [vmem:[%s4802_s9 + $0x60] sm:$0xff]  ;;  %2816 = vmatpush.msrb.mxu2 %v2701_v28 }
 0xa7d   :  { %v2345_v12 = vsub.f32 1.0, %v2340_v39  ;;  %v2347_v26 = vmul.f32 %v2340_v39, %v4542_v15 }
 0xa7e   :  { %v2343_v55 = vadd.f32 %v2342_v43, %v2237_v58 }
 0xa80   :  { %3391 = vtanh.f32 %v2343_v55 }
 0xa86   :  { %v3392_v48 = vpop.eup %3391 }
 0xa87   :  { %v2346_v6 = vmul.f32 %v3392_v48, %v2345_v12  ;;  %v2406_v12 = vpop.f32.mrf.mxu2 }
 0xa89   :  { %v4609_v19 = vadd.f32 %v2347_v26, %v2346_v6  ;;  %v4701_v6 = vld [vmem:[%s4801_s8 + $0x5] ss:$0 sm:$0xff] }
 0xa8b   :  { %3194 = vmatmul.msk.f32.vlgmr.msra.gmra.mxu0 %vm239_vm9, %v4609_v19  ;;  %3195 = vmatmul.msk.f32.vlgmr.msra.gmra.mxu1 %vm239_vm9, %v4609_v19 }
 0xa8c   :  { %3196 = vmatmul.msk.f32.vlgmr.msra.gmra.mxu3 %vm239_vm9, %v4609_v19  ;;  %2758 = vmatpush.msra.mxu1 %v2700_v22 }
 0xa8d   :  { %2638 = vmatpush.msra.mxu0 %v4554_v63  ;;  %v2711_v63 = vld [vmem:[%s4802_s9 + $0x90] sm:$0xff]  ;;  %2781 = vmatpush.msra.mxu3 %v2696_v34 }
 0xa8e   :  { %2759 = vmatpush.msra.mxu1 %v2699_v25 }
 0xa8f   :  { %2639 = vmatpush.msra.mxu0 %v4562_v46  ;;  %v3238_v46 = vunpack.i.l.bf16 %v4637_v45  ;;  %2782 = vmatpush.msra.mxu3 %v2695_v54  ;;  %v3239_v54 = vunpack.i.h.bf16 %v4637_v45 }
 0xa90   :  { %2760 = vmatpush.msra.mxu1 %v2698_v27 }
 0xa91   :  { %2640 = vmatpush.msra.mxu0 %v4570_v56  ;;  %v2710_v56 = vld [vmem:[%s4802_s9 + $0x88] sm:$0xff]  ;;  %v2742_v24 = vmul.f32 %v3238_v46, %v4318_v31  ;;  %2783 = vmatpush.msra.mxu3 %v2694_v35 }
 0xa92   :  { %2761 = vmatpush.msra.mxu1 %v2697_v51  ;;  %v2407_v51 = vadd.f32 %v4605_v29, %v2406_v12 }
 0xa93   :  { %3200 = vmatmul.msk.f32.vlgmr.msrb.gmra.mxu0 %vm239_vm9, %v4591_v7  ;;  %3201 = vmatmul.msk.f32.vlgmr.msrb.gmra.mxu1 %vm239_vm9, %v4591_v7  ;;  %v2709_v7 = vld [vmem:[%s4802_s9 + $0x80] sm:$0xff] }
 0xa94   :  { %2879 = vmatpush.msrb.mxu1 %v2712_v41  ;;  %2641 = vmatpush.msra.mxu0 %v4582_v30  ;;  %v2861_v30 = vpop.permute.xlu2 %2860 }
 0xa95   :  { %v2863_v11 = vmul.f32 %v2861_v30, %v4542_v15  ;;  %2784 = vmatpush.msra.mxu3 %v2693_v1 }
 0xa96   :  { %2880 = vmatpush.msrb.mxu1 %v2711_v63  ;;  %2846 = vmatpush.msrb.mxu0 %v2708_v60 }
 0xa98   :  { %2881 = vmatpush.msrb.mxu1 %v2710_v56  ;;  %2847 = vmatpush.msrb.mxu0 %v2707_v8 }
 0xa9a   :  { %2882 = vmatpush.msrb.mxu1 %v2709_v7  ;;  %2848 = vmatpush.msrb.mxu0 %v2706_v62 }
 0xa9b   :  { %3209 = vmatmul.msk.f32.vlgmr.msra.gmra.mxu1 %vm239_vm9, %v2742_v24 }
 0xa9c   :  { %2849 = vmatpush.msrb.mxu0 %v2705_v17  ;;  %v2723_v17 = vld [vmem:[%s4802_s9 + $0xf0] sm:$0xff] }
 0xaa3   :  { %3216 = vmatmul.msk.f32.vlgmr.msrb.gmra.mxu1 %vm239_vm9, %v2863_v11 }
 0xb08   :  { %v2429_v53 = vpop.f32.mrf.mxu0  ;;  %v2449_v14 = vpop.f32.mrf.mxu1 }
 0xb09   :  { %v2472_v20 = vadd.f32 %v2429_v53, %v2367_v52  ;;  %v2492_v23 = vadd.f32 %v2449_v14, %v2387_v13  ;;  %v2716_v53 = vld [vmem:[%s4802_s9 + $0xb8] sm:$0xff] }
 0xb0a   :  { %v2720_v14 = vld [vmem:[%s4802_s9 + $0xd8] sm:$0xff] }
 0xb0b   :  { %v3197_v40 = vmul.f32 -1.442695, %v2472_v20  ;;  %v3198_v31 = vmul.f32 -1.442695, %v2492_v23  ;;  %v2715_v20 = vld [vmem:[%s4802_s9 + $0xb0] sm:$0xff] }
 0xb0c   :  { %v2719_v23 = vld [vmem:[%s4802_s9 + $0xd0] sm:$0xff] }
 0xb0d   :  { %3393 = vpow2.f32 %v3197_v40  ;;  %v3234_v40 = vunpack.i.h.bf16 %v4614_v50 }
 0xb0e   :  { %3395 = vpow2.f32 %v3198_v31  ;;  %v3233_v31 = vunpack.i.l.bf16 %v4614_v50 }
 0xb0f   :  { %v2469_v33 = vpop.f32.mrf.mxu3  ;;  %v2797_v34 = vmul.f32 %v3234_v40, %v4366_v16  ;;  %v2896_v16 = vmul.f32 %v3239_v54, %v4609_v19 }
 0xb10   :  { %v2470_v26 = vadd.f32 %v4701_v6, %v2469_v33  ;;  %v2733_v50 = vmul.f32 %v3233_v31, %v4275_v61  ;;  %v3245_v61 = vunpack.i.h.bf16 %v4651_v37  ;;  %v2560_v8 = vpop.f32.mrf.mxu0 }
 0xb11   :  { %v2561_v21 = vadd.f32 %v2560_v8, %v4225_v38  ;;  %v2721_v38 = vld [vmem:[%s4802_s9 + $0xe0] sm:$0xff] }
 0xb13   :  { %v3394_v5 = vpop.eup %3393 }
 0xb14   :  { %v3396_v47 = vpop.eup %3395  ;;  %v2476_v49 = vadd.f32 1.0, %v3394_v5  ;;  %v2714_v5 = vld [vmem:[%s4802_s9 + $0xa8] sm:$0xff] }
 0xb15   :  { %v2496_v15 = vadd.f32 1.0, %v3396_v47  ;;  %v3244_v47 = vunpack.i.l.bf16 %v4651_v37 }
 0xb16   :  { %3397 = vrcp.f32 %v2476_v49  ;;  %v2488_v59 = vand.u32 2147483648, %v2476_v49  ;;  %v2486_v55 = vand.u32 2147483647, %v2476_v49  ;;  %vm2482_vm10 = vweird.f32 %v2476_v49 }
 0xb17   :  { %3399 = vrcp.f32 %v2496_v15  ;;  %v2508_v41 = vand.u32 2147483648, %v2496_v15  ;;  %vm2502_vm14 = vweird.f32 %v2496_v15  ;;  %v2506_v46 = vand.u32 2147483647, %v2496_v15 }
 0xb18   :  { %v2489_v48 = vor.u32 1.1754944e-38, %v2488_v59  ;;  %vm2487_vm12 = vcmp.eq.f32.partialorder %v2486_v55, 8.507059e+37  ;;  %v2830_v60 = vmul.f32 %v3244_v47, %v4431_v2  ;;  %v2540_v2 = vpop.f32.mrf.mxu2 }
 0xb19   :  { %v2509_v24 = vor.u32 1.1754944e-38, %v2508_v41  ;;  %vm2507_vm0 = vcmp.eq.f32.partialorder %v2506_v46, 8.507059e+37  ;;  %v2541_v35 = vadd.f32 %v2540_v2, %v4214_v57  ;;  %v2722_v57 = vld [vmem:[%s4802_s9 + $0xe8] sm:$0xff] }
 0xb1c   :  { %v3398_v44 = vpop.eup %3397 }
 0xb1d   :  { %v3400_v18 = vpop.eup %3399  ;;  %v2478_v42 = vmul.f32 %v3398_v44, %v2476_v49  ;;  %vm2483_vm8 = vweird.f32 %v3398_v44  ;;  %v2718_v49 = vld [vmem:[%s4802_s9 + $0xc8] sm:$0xff] }
 0xb1e   :  { %v2498_v3 = vmul.f32 %v3400_v18, %v2496_v15  ;;  %vm2484_vm11 = vmor %vm2482_vm10, %vm2483_vm8  ;;  %vm2503_vm13 = vweird.f32 %v3400_v18  ;;  %v2713_v15 = vld [vmem:[%s4802_s9 + $0xa0] sm:$0xff]  ;;  %vm3024_vm10 = vcmask 58368  }
 0xb1f   :  { %v2479_v58 = vsub.f32 1.0, %v2478_v42  ;;  %vm2504_vm15 = vmor %vm2502_vm14, %vm2503_vm13 }
 0xb20   :  { %v2499_v43 = vsub.f32 1.0, %v2498_v3 }
 0xb21   :  { %v2480_v36 = vmul.f32 %v3398_v44, %v2479_v58 }
 0xb22   :  { %v2500_v0 = vmul.f32 %v3400_v18, %v2499_v43  ;;  %v2996_v43 = vld [vmem:[%s4804_s11 + $0x18] sm:$0xff] }
 0xb23   :  { %v2481_v39 = vadd.f32 %v3398_v44, %v2480_v36  ;;  %3016 = vmatpush.msra.mxu1 %v2996_v43 }
 0xb24   :  { %v2501_v25 = vadd.f32 %v3400_v18, %v2500_v0 }
 0xb25   :  { %v2485_v22 = vsel %vm2484_vm11, %v3398_v44, %v2481_v39 }
 0xb26   :  { %v2490_v27 = vsel %vm2487_vm12, %v2489_v48, %v2485_v22  ;;  %v2505_v7 = vsel %vm2504_vm15, %v3400_v18, %v2501_v25 }
 0xb27   :  { %v2512_v63 = vmul.f32 %v2490_v27, %v2470_v26  ;;  %v2510_v30 = vsel %vm2507_vm0, %v2509_v24, %v2505_v7 }
 0xb28   :  { %v2515_v11 = vsub.f32 1.0, %v2510_v30  ;;  %v2517_v52 = vmul.f32 %v2510_v30, %v4609_v19  ;;  %v2724_v19 = vld [vmem:[%s4802_s9 + $0xf8] sm:$0xff] }
 0xb29   :  { %v2513_v56 = vadd.f32 %v2512_v63, %v2407_v51  ;;  %v2580_v51 = vpop.f32.mrf.mxu1 }
 0xb2a   :  { %v2581_v24 = vadd.f32 %v4605_v29, %v2580_v51  ;;  %v2995_v29 = vld [vmem:[%s4804_s11 + $0x10] sm:$0xff] }
 0xb2b   :  { %3401 = vtanh.f32 %v2513_v56  ;;  %3017 = vmatpush.msra.mxu1 %v2995_v29 }
 0xb31   :  { %v3402_v4 = vpop.eup %3401 }
 0xb32   :  { %v2516_v9 = vmul.f32 %v3402_v4, %v2515_v11 }
 0xb34   :  { %v4706_v13 = vadd.f32 %v2517_v52, %v2516_v9 }
 0xb36   :  { %3202 = vmatmul.msk.f32.vlgmr.msrb.gmra.mxu3 %vm239_vm9, %v4706_v13  ;;  %3203 = vmatmul.msk.f32.vlgmr.msra.gmra.mxu2 %vm239_vm9, %v4706_v13  ;;  %v2929_v10 = vmul.f32 %v3245_v61, %v4706_v13 }
 0xb37   :  { %3204 = vmatmul.msk.f32.vlgmr.msra.gmra.mxu0 %vm239_vm9, %v4706_v13  ;;  %2912 = vmatpush.msrb.mxu3 %v2716_v53 }
 0xb38   :  { %2945 = vmatpush.msra.mxu2 %v2720_v14  ;;  %2978 = vmatpush.msra.mxu0 %v2724_v19 }
 0xb39   :  { %2913 = vmatpush.msrb.mxu3 %v2715_v20 }
 0xb3a   :  { %2946 = vmatpush.msra.mxu2 %v2719_v23  ;;  %2979 = vmatpush.msra.mxu0 %v2723_v17 }
 0xb3b   :  { %2914 = vmatpush.msrb.mxu3 %v2714_v5  ;;  %v2960_v5 = vpop.permute.xlu0 %2959 }
 0xb3c   :  { %2947 = vmatpush.msra.mxu2 %v2718_v49  ;;  %2980 = vmatpush.msra.mxu0 %v2722_v57  ;;  %v2994_v49 = vld [vmem:[%s4804_s11 + $0x8] sm:$0xff] }
 0xb3d   :  { %2915 = vmatpush.msrb.mxu3 %v2713_v15  ;;  %3018 = vmatpush.msra.mxu1 %v2994_v49  ;;  %v2993_v15 = vld [vmem:[%s4804_s11] sm:$0xff] }
 0xb3e   :  { %3210 = vmatmul.msk.f32.vlgmr.msra.gmra.mxu3 %vm239_vm9, %v2733_v50  ;;  %3212 = vmatmul.msk.f32.vlgmr.msrb.gmra.mxu2 %vm239_vm9, %v2797_v34  ;;  %v2763_v50 = vpop.f32.mrf.mxu1 }
 0xb3f   :  { %3214 = vmatmul.msk.f32.vlgmr.msrb.gmra.mxu0 %vm239_vm9, %v2830_v60  ;;  %2948 = vmatpush.msra.mxu2 %v2717_v32 }
 0xb40   :  { %2981 = vmatpush.msra.mxu0 %v2721_v38  ;;  %3019 = vmatpush.msra.mxu1 %v2993_v15 }
 0xb46   :  { %3218 = vmatmul.msk.f32.vlgmr.msrb.gmra.mxu3 %vm239_vm9, %v2896_v16  ;;  %3220 = vmatmul.msk.f32.vlgmr.msra.gmra.mxu2 %vm239_vm9, %v2929_v10  ;;  %v2884_v16 = vpop.f32.mrf.mxu1 }
 0xbb4   :  { %v2643_v22 = vpop.f32.mrf.mxu0 }
 0xbb5   :  { %v2644_v63 = vadd.f32 %v4701_v6, %v2643_v22 }
 0xbb9   :  { %v2603_v62 = vpop.f32.mrf.mxu3  ;;  %v2623_v1 = vpop.f32.mrf.mxu2 }
 0xbba   :  { %v2646_v28 = vadd.f32 %v2603_v62, %v2541_v35  ;;  %v2666_v45 = vadd.f32 %v2623_v1, %v2561_v21  ;;  %v3251_v62 = vld [vmem:[%s4803_s10] ss:$0 sm:$0xff] }
 0xbbc   :  { %v3205_v44 = vmul.f32 -1.442695, %v2646_v28  ;;  %v3206_v37 = vmul.f32 -1.442695, %v2666_v45  ;;  %v2851_v54 = vpop.f32.mrf.mxu0 }
 0xbbe   :  { %3403 = vpow2.f32 %v3205_v44 }
 0xbbf   :  { %3405 = vpow2.f32 %v3206_v37  ;;  %v3252_v37 = vld [vmem:[%s4805_s12] ss:$0 sm:$0xff] }
 0xbc1   :  { %v2818_v32 = vpop.f32.mrf.mxu2 }
 0xbc4   :  { %v3404_v18 = vpop.eup %3403 }
 0xbc5   :  { %v3406_v42 = vpop.eup %3405  ;;  %v2650_v3 = vadd.f32 1.0, %v3404_v18 }
 0xbc6   :  { %v2670_v58 = vadd.f32 1.0, %v3406_v42 }
 0xbc7   :  { %3407 = vrcp.f32 %v2650_v3  ;;  %v2662_v39 = vand.u32 2147483648, %v2650_v3  ;;  %v2660_v26 = vand.u32 2147483647, %v2650_v3  ;;  %vm2656_vm2 = vweird.f32 %v2650_v3 }
 0xbc8   :  { %3409 = vrcp.f32 %v2670_v58  ;;  %v2682_v11 = vand.u32 2147483648, %v2670_v58  ;;  %vm2676_vm6 = vweird.f32 %v2670_v58  ;;  %v2680_v4 = vand.u32 2147483647, %v2670_v58 }
 0xbc9   :  { %v2663_v41 = vor.u32 1.1754944e-38, %v2662_v39  ;;  %vm2661_vm4 = vcmp.eq.f32.partialorder %v2660_v26, 8.507059e+37  ;;  %v2950_v35 = vpop.f32.mrf.mxu2 }
 0xbca   :  { %v2683_v53 = vor.u32 1.1754944e-38, %v2682_v11  ;;  %vm2681_vm8 = vcmp.eq.f32.partialorder %v2680_v4, 8.507059e+37 }
 0xbcd   :  { %v3408_v59 = vpop.eup %3407 }
 0xbce   :  { %v3410_v36 = vpop.eup %3409  ;;  %v2652_v55 = vmul.f32 %v3408_v59, %v2650_v3  ;;  %vm2657_vm1 = vweird.f32 %v3408_v59 }
 0xbcf   :  { %v2672_v0 = vmul.f32 %v3410_v36, %v2670_v58  ;;  %vm2658_vm3 = vmor %vm2656_vm2, %vm2657_vm1  ;;  %vm2677_vm5 = vweird.f32 %v3410_v36 }
 0xbd0   :  { %v2653_v33 = vsub.f32 1.0, %v2652_v55  ;;  %vm2678_vm7 = vmor %vm2676_vm6, %vm2677_vm5 }
 0xbd1   :  { %v2673_v12 = vsub.f32 1.0, %v2672_v0 }
 0xbd2   :  { %v2654_v48 = vmul.f32 %v3408_v59, %v2653_v33 }
 0xbd3   :  { %v2674_v25 = vmul.f32 %v3410_v36, %v2673_v12 }
 0xbd4   :  { %v2655_v27 = vadd.f32 %v3408_v59, %v2654_v48 }
 0xbd5   :  { %v2675_v7 = vadd.f32 %v3410_v36, %v2674_v25 }
 0xbd6   :  { %v2659_v46 = vsel %vm2658_vm3, %v3408_v59, %v2655_v27 }
 0xbd7   :  { %v2664_v56 = vsel %vm2661_vm4, %v2663_v41, %v2659_v46  ;;  %v2679_v52 = vsel %vm2678_vm7, %v3410_v36, %v2675_v7 }
 0xbd8   :  { %v2686_v30 = vmul.f32 %v2664_v56, %v2644_v63  ;;  %v2684_v14 = vsel %vm2681_vm8, %v2683_v53, %v2679_v52 }
 0xbd9   :  { %v2689_v20 = vsub.f32 1.0, %v2684_v14  ;;  %v2691_v40 = vmul.f32 %v2684_v14, %v4706_v13  ;;  %v2786_v13 = vpop.f32.mrf.mxu3 }
 0xbda   :  { %v2687_v9 = vadd.f32 %v2686_v30, %v2581_v24  ;;  %v2787_v34 = vadd.f32 %v2786_v13, %v2763_v50 }
 0xbdc   :  { %3411 = vtanh.f32 %v2687_v9  ;;  %v2821_v60 = vadd.f32 %v2818_v32, %v2787_v34 }
 0xbde   :  { %v2854_v61 = vadd.f32 %v2851_v54, %v2821_v60 }
 0xbe0   :  { %v2887_v10 = vadd.f32 %v2884_v16, %v2854_v61 }
 0xbe1   :  { %v2917_v2 = vpop.f32.mrf.mxu3 }
 0xbe2   :  { %v3412_v6 = vpop.eup %3411  ;;  %v2920_v8 = vadd.f32 %v2917_v2, %v2887_v10 }
 0xbe3   :  { %v2690_v23 = vmul.f32 %v3412_v6, %v2689_v20 }
 0xbe4   :  { %v2953_v21 = vadd.f32 %v2950_v35, %v2920_v8 }
 0xbe5   :  { %v2692_v31 = vadd.f32 %v2691_v40, %v2690_v23 }
 0xbe7   :  { %v2962_v47 = vmul.f32 %v2960_v5, %v2692_v31 }
 0xbe9   :  { %3222 = vmatmul.msk.f32.vlgmr.msra.gmra.mxu0 %vm239_vm9, %v2962_v47 }
 0xc66   :  { %v2983_v1 = vpop.f32.mrf.mxu0 }
 0xc67   :  { %v2986_v28 = vadd.f32 %v2983_v1, %v2953_v21 }
 0xc69   :  { %v2991_v45 = vadd.f32 %v3251_v62, %v2986_v28 }
 0xc6b   :  { %v2992_v44 = vmax.f32 %v2991_v45, 0.0 }
 0xc6d   :  { %3223 = vmatmul.msk.f32.vlgmr.msra.gmra.mxu1 %vm239_vm9, %v2992_v44 }
 0xcea   :  { %v3021_v19 = vpop.f32.mrf.mxu1 }
 0xceb   :  { %v3022_v17 = vadd.f32 %v3252_v37, %v3021_v19 }
 0xced   :  { %3025 = vst.msk [vmem:[#allocation2] sm:$0x3] %vm3024_vm10, %v3022_v17 }
 0xcee   :  { %3036 = dma.vmem_to_hbm [thread:$0]  %s3032_s7, 32, %s3034_s23, [#allocation3]  }
 0xcef   :  { %3464 = dma.done.wait [#allocation3], 32  }
 0xcf0   :  { %3465 = vsyncadd [#allocation3], 4294967264 }
 0xcf1   :  { %3041 = vsyncpa [#allocation3], 1 }

</bundles_post_ra>
